<compile_context>
chip_gen: v6e
topology: v6e:2x2x1
jax: 0.10.0
libtpu: 0.0.40
codegen_flags: <defaults>
</compile_context>

<pallas_src>
import functools
import math

import jax
import jax.numpy as jnp
from jax.experimental import pallas as pl
from jax.experimental.pallas import tpu as pltpu


# ----------------------------- kernel ----------------------------------------


def _mish(x):
    # x * tanh(softplus(x)) == x * n/(n+2) with n = e*(e+2), e = exp(x).
    # Clamp the exp argument so (1+e)^2 never overflows; for x>30 the ratio is 1.0
    # in f32 anyway (same as tanh(softplus(x))).
    e = jnp.exp(jnp.minimum(x, 30.0))
    n = e * (e + 2.0)
    return x * (n * pl.reciprocal(n + 2.0))


def _encoder_kernel(x_ref, emask_ref, kmask_ref, g_ref, beta_ref,
                    wqkv_ref, bqkv_ref, wo_ref, bo_ref, wffn_ref, bffn_ref,
                    o_ref, x_state,
                    *, num_heads, num_ffn_layers, eps, matmul_dtype):
    layer = pl.program_id(1)
    bt, m, h = x_ref.shape                 # (batch_tile, nodes, hidden)
    n_rows = bt * m
    d = h // num_heads
    inv_sqrt_d = 1.0 / math.sqrt(d)

    # Load the input activations once per batch block; layers carry them in VMEM.
    @pl.when(layer == 0)
    def _():
        for b in range(bt):
            x_state[b * m:(b + 1) * m, :] = x_ref[b].astype(jnp.float32)

    x = x_state[...]                                   # (bt*m, H) f32

    # Hoisted LN gamma/beta broadcasts (shared by both LN sites in this layer).
    g = jnp.broadcast_to(g_ref[...].astype(jnp.float32), (n_rows, h))
    beta = jnp.broadcast_to(beta_ref[...].astype(jnp.float32), (n_rows, h))

    def layernorm(t):
        mean = jnp.mean(t, axis=-1, keepdims=True)
        tc = t - mean
        # torch.std is unbiased (divide by H-1); denominator is (std + eps).
        std = jnp.sqrt(jnp.sum(tc * tc, axis=-1, keepdims=True) * (1.0 / (h - 1)))
        return g * (tc * pl.reciprocal(std + eps)) + beta

    # Grid-resident weight stacks, dynamically indexed by the layer program id.
    wqkv = wqkv_ref[layer]                             # (H, 3H)
    bqkv = bqkv_ref[layer]                             # (1, 3H)
    wo = wo_ref[layer]                                 # (H, H)
    bo = bo_ref[layer]                                 # (1, H)

    # ---------------- x = norm(x); x = x + mish(MHSA(x)Wo + bo) ----------------
    xn = layernorm(x)
    qkv = jnp.dot(xn.astype(matmul_dtype), wqkv,
                  preferred_element_type=jnp.float32) + bqkv        # (bt*m, 3H) f32

    emask = emask_ref[...].astype(jnp.float32)         # (bt, m, m) 0/1
    kmask = kmask_ref[...]                             # (bt, 1, m) float; 0 => padded key

    graph_rows = []
    for b in range(bt):
        r0 = b * m
        # Key-mask predicate hoisted out of the head loop (head independent).
        negb = jnp.broadcast_to(kmask[b] == 0.0, (m, m))
        em_b = emask[b]                                # (m, m)
        heads = []
        for hh in range(num_heads):
            qh = qkv[r0:r0 + m, hh * d:(hh + 1) * d].astype(matmul_dtype)
            kh = qkv[r0:r0 + m, h + hh * d:h + (hh + 1) * d].astype(matmul_dtype)
            vh = qkv[r0:r0 + m, 2 * h + hh * d:2 * h + (hh + 1) * d].astype(matmul_dtype)

            # scores[q, k] = <q_h[q], k_h[k]>
            s = jax.lax.dot_general(qh, kh, (((1,), (1,)), ((), ())),
                                    preferred_element_type=jnp.float32)     # (m, m)
            # masked_fill(mask == 0, -1e12) applied BEFORE 1/sqrt(d) scaling (torch order).
            s = jnp.where(negb, -1.0e12, s) * inv_sqrt_d
            p = jnp.exp(s - jnp.max(s, axis=-1, keepdims=True))
            pe = p * em_b
            # Fused softmax + top-k renorm:
            #   softmax(s)*emask / (sum(softmax(s)*emask) + 1e-5)
            #   == pe / (sum(pe) + 1e-5*sum(p))
            denom = (jnp.sum(pe, axis=-1, keepdims=True)
                     + 1e-5 * jnp.sum(p, axis=-1, keepdims=True))
            attn = pe * pl.reciprocal(denom)
            heads.append(jnp.dot(attn.astype(matmul_dtype), vh,
                                 preferred_element_type=jnp.float32))       # (m, d)
        graph_rows.append(jnp.concatenate(heads, axis=-1) if num_heads > 1
                          else heads[0])                                    # (m, H)
    heads_cat = (jnp.concatenate(graph_rows, axis=0) if bt > 1
                 else graph_rows[0])                                        # (bt*m, H)

    # Single full-K output projection (replaces num_heads rank-d folds + adds).
    mhsa = jnp.dot(heads_cat.astype(matmul_dtype), wo,
                   preferred_element_type=jnp.float32) + bo
    x1 = xn + _mish(mhsa)                 # residual uses the NORMED x (as in torch code)

    # ---------------- x = norm(x); x = x + FFN(x) ------------------------------
    xn2 = layernorm(x1)
    f = xn2
    for j in range(num_ffn_layers):
        idx = layer * num_ffn_layers + j
        f = jnp.dot(f.astype(matmul_dtype), wffn_ref[idx],
                    preferred_element_type=jnp.float32) + bffn_ref[idx]
        f = _mish(f)
    x2 = xn2 + f

    x_state[...] = x2

    # Write the output exactly once per batch block (last layer only).
    @pl.when(layer == pl.num_programs(1) - 1)
    def _():
        for b in range(bt):
            o_ref[b] = x2[b * m:(b + 1) * m, :].astype(o_ref.dtype)


# ----------------------------- wrapper ----------------------------------------


def encoder_forward(x, edge, mask, params, *, num_heads, num_neighbors,
                    matmul_dtype=jnp.float32, eps=1e-6, batch_tile=None):
    bsz, m, h = x.shape
    layers = params["layers"]
    num_layers = len(layers)
    num_ffn = len(layers[0]["ffn"])

    # Batch tile: pack several graphs per grid step to fill MXU rows (~256 rows).
    if batch_tile is None:
        target = max(1, 256 // m)
        batch_tile = 1
        for bt in range(1, min(bsz, target) + 1):
            if bsz % bt == 0:
                batch_tile = bt
    assert bsz % batch_tile == 0, "batch_tile must divide batch size"

    # Hoisted top-k neighbor mask: depends only on `edge`; computed once per forward.
    # Shipped as bf16 (exact for 0/1) to cut its HBM/VMEM footprint 2x.
    rank = jnp.argsort(jnp.argsort(-edge, axis=-1), axis=-1)
    edge_mask = (rank < num_neighbors).astype(jnp.bfloat16)
    kmask = mask.reshape(bsz, 1, m).astype(jnp.float32)

    # Fused / stacked weights (stored as (in_features, out_features), i.e. torch W^T).
    wqkv = jnp.stack([jnp.concatenate([lp["Wq"], lp["Wk"], lp["Wv"]], axis=1)
                      for lp in layers]).astype(matmul_dtype)                 # (L, H, 3H)
    bqkv = jnp.stack([jnp.concatenate([lp["bq"], lp["bk"], lp["bv"]])[None, :]
                      for lp in layers]).astype(jnp.float32)                  # (L, 1, 3H)
    wo = jnp.stack([lp["Wo"] for lp in layers]).astype(matmul_dtype)          # (L, H, H)
    bo = jnp.stack([lp["bo"][None, :] for lp in layers]).astype(jnp.float32)  # (L, 1, H)
    # FFN weights flattened to (L*F, H, H) so the kernel needs only one dynamic
    # leading-axis index (layer * F + j).
    wffn = jnp.concatenate([jnp.stack([wf for (wf, _) in lp["ffn"]])
                            for lp in layers], axis=0).astype(matmul_dtype)   # (L*F, H, H)
    bffn = jnp.concatenate([jnp.stack([bf[None, :] for (_, bf) in lp["ffn"]])
                            for lp in layers], axis=0).astype(jnp.float32)    # (L*F, 1, H)

    g = params["norm_g"].reshape(1, h).astype(jnp.float32)
    beta = params["norm_b"].reshape(1, h).astype(jnp.float32)

    kernel = functools.partial(_encoder_kernel, num_heads=num_heads,
                               num_ffn_layers=num_ffn, eps=eps,
                               matmul_dtype=matmul_dtype)

    bt = batch_tile
    lf = num_layers * num_ffn

    return pl.pallas_call(
        kernel,
        out_shape=jax.ShapeDtypeStruct((bsz, m, h), x.dtype),
        grid_spec=pltpu.PrefetchScalarGridSpec(
            num_scalar_prefetch=0,
            grid=(bsz // bt, num_layers),
            in_specs=[
                pl.BlockSpec((bt, m, h), lambda b, l: (b, 0, 0)),            # x
                pl.BlockSpec((bt, m, m), lambda b, l: (b, 0, 0)),            # top-k edge mask
                pl.BlockSpec((bt, 1, m), lambda b, l: (b, 0, 0)),            # key mask
                pl.BlockSpec((1, h), lambda b, l: (0, 0)),                   # LN gamma
                pl.BlockSpec((1, h), lambda b, l: (0, 0)),                   # LN beta
                # Weight stacks: constant block index => fetched once, VMEM-resident.
                pl.BlockSpec((num_layers, h, 3 * h), lambda b, l: (0, 0, 0)),    # Wqkv
                pl.BlockSpec((num_layers, 1, 3 * h), lambda b, l: (0, 0, 0)),    # bqkv
                pl.BlockSpec((num_layers, h, h), lambda b, l: (0, 0, 0)),        # Wo
                pl.BlockSpec((num_layers, 1, h), lambda b, l: (0, 0, 0)),        # bo
                pl.BlockSpec((lf, h, h), lambda b, l: (0, 0, 0)),                # FFN weights
                pl.BlockSpec((lf, 1, h), lambda b, l: (0, 0, 0)),                # FFN biases
            ],
            out_specs=pl.BlockSpec((bt, m, h), lambda b, l: (b, 0, 0)),
            scratch_shapes=[pltpu.VMEM((bt * m, h), jnp.float32)],           # layer-carried act.
        ),
        compiler_params=pltpu.CompilerParams(
            dimension_semantics=("parallel", "arbitrary"),
        ),
    )(x, edge_mask, kmask, g, beta, wqkv, bqkv, wo, bo, wffn, bffn)


# ----------------------------- params & reference -----------------------------


def init_params(key, hidden, num_mhsa_layers, num_ffn_layers):
    bound = 1.0 / math.sqrt(hidden)

    def lin_init(k):
        k1, k2 = jax.random.split(k)
        w = jax.random.uniform(k1, (hidden, hidden), jnp.float32, -bound, bound)
        b = jax.random.uniform(k2, (hidden,), jnp.float32, -bound, bound)
        return w, b

    layers = []
    for lk in jax.random.split(key, num_mhsa_layers):
        ks = jax.random.split(lk, 4 + num_ffn_layers)
        wq, bq = lin_init(ks[0])
        wk, bk = lin_init(ks[1])
        wv, bv = lin_init(ks[2])
        wo, bo = lin_init(ks[3])
        ffn = [lin_init(ks[4 + j]) for j in range(num_ffn_layers)]
        layers.append(dict(Wq=wq, bq=bq, Wk=wk, bk=bk, Wv=wv, bv=bv, Wo=wo, bo=bo, ffn=ffn))
    return dict(norm_g=jnp.ones((hidden,), jnp.float32),
                norm_b=jnp.zeros((hidden,), jnp.float32),
                layers=layers)


def ref_encoder(x, edge, mask, params, num_heads, num_neighbors, eps=1e-6):
    # Pure-JAX reference mirroring the PyTorch forward (eval mode).
    bsz, m, h = x.shape
    d = h // num_heads
    g, bn = params["norm_g"], params["norm_b"]

    def norm(t):
        mean = t.mean(-1, keepdims=True)
        std = jnp.sqrt(((t - mean) ** 2).sum(-1, keepdims=True) / (h - 1))
        return g * (t - mean) / (std + eps) + bn

    def mish(t):
        return t * jnp.tanh(jax.nn.softplus(t))

    rank = jnp.argsort(jnp.argsort(-edge, axis=-1), axis=-1)
    emask = (rank < num_neighbors).astype(jnp.float32)

    for lp in params["layers"]:
        xn = norm(x)
        q = (xn @ lp["Wq"] + lp["bq"]).reshape(bsz, m, num_heads, d).transpose(0, 2, 1, 3)
        k = (xn @ lp["Wk"] + lp["bk"]).reshape(bsz, m, num_heads, d).transpose(0, 2, 1, 3)
        v = (xn @ lp["Wv"] + lp["bv"]).reshape(bsz, m, num_heads, d).transpose(0, 2, 1, 3)
        s = jnp.einsum("bhmd,bhnd->bhmn", q, k)
        s = jnp.where(mask[:, None, None, :] == 0, -1.0e12, s)
        s = jax.nn.softmax(s / math.sqrt(d), axis=-1)
        s = s * emask[:, None, :, :]
        s = s / (s.sum(-1, keepdims=True) + 1e-5)
        a = jnp.einsum("bhmn,bhnd->bhmd", s, v).transpose(0, 2, 1, 3).reshape(bsz, m, h)
        x = xn + mish(a @ lp["Wo"] + lp["bo"])

        xn = norm(x)
        f = xn
        for (wf, bf) in lp["ffn"]:
            f = mish(f @ wf + bf)
        x = xn + f
    return x


# ----------------------------- main --------------------------------------------


if __name__ == "__main__":
    B, M, H = 4, 8, 32
    NUM_HEADS = 4
    NUM_NEIGHBORS = 3
    NUM_MHSA_LAYERS = 2
    NUM_FFN_LAYERS = 2

    key = jax.random.PRNGKey(0)
    kx, ke, kp = jax.random.split(key, 3)
    x = jax.random.normal(kx, (B, M, H), jnp.float32)
    edge = jax.random.normal(ke, (B, M, M), jnp.float32)
    mask = jnp.ones((B, M), jnp.float32)
    mask = mask.at[1, -2:].set(0.0).at[3, -3:].set(0.0)   # a few padded nodes

    params = init_params(kp, H, NUM_MHSA_LAYERS, NUM_FFN_LAYERS)

    ref = ref_encoder(x, edge, mask, params, NUM_HEADS, NUM_NEIGHBORS)

    # f32 MXU path, default batch tiling (whole batch packed per grid step).
    fwd = jax.jit(functools.partial(encoder_forward, num_heads=NUM_HEADS,
                                    num_neighbors=NUM_NEIGHBORS))
    out = jax.block_until_ready(fwd(x, edge, mask, params))
    assert out.shape == (B, M, H)
    assert jnp.allclose(out, ref, rtol=2e-4, atol=2e-4), \
        float(jnp.max(jnp.abs(out - ref)))

    # f32 path with batch_tile=1 (exercises the multi-block batch axis + revisits).
    fwd_bt1 = jax.jit(functools.partial(encoder_forward, num_heads=NUM_HEADS,
                                        num_neighbors=NUM_NEIGHBORS, batch_tile=1))
    out_bt1 = jax.block_until_ready(fwd_bt1(x, edge, mask, params))
    assert jnp.allclose(out_bt1, ref, rtol=2e-4, atol=2e-4), \
        float(jnp.max(jnp.abs(out_bt1 - ref)))

    # bf16 MXU-operand path (f32 accumulation; LN/softmax/mish stay f32): loose check.
    fwd_bf16 = jax.jit(functools.partial(encoder_forward, num_heads=NUM_HEADS,
                                         num_neighbors=NUM_NEIGHBORS,
                                         matmul_dtype=jnp.bfloat16))
    out_bf16 = jax.block_until_ready(fwd_bf16(x, edge, mask, params))
    assert out_bf16.shape == (B, M, H)
    assert jnp.allclose(out_bf16, ref, rtol=1e-1, atol=1e-1), \
        float(jnp.max(jnp.abs(out_bf16 - ref)))

    print("KERNEL_OK")
</pallas_src>

<mosaic_0001>
module attributes {stable_mosaic.version = 11 : i64} {
  func.func @_encoder_kernel(%arg0: i32, %arg1: i32, %arg2: memref<4x8x32xf32, #tpu.memory_space<vmem>>, %arg3: memref<4x8x8xbf16, #tpu.memory_space<vmem>>, %arg4: memref<4x1x8xf32, #tpu.memory_space<vmem>>, %arg5: memref<1x32xf32, #tpu.memory_space<vmem>>, %arg6: memref<1x32xf32, #tpu.memory_space<vmem>>, %arg7: memref<2x32x96xf32, #tpu.memory_space<vmem>>, %arg8: memref<2x1x96xf32, #tpu.memory_space<vmem>>, %arg9: memref<2x32x32xf32, #tpu.memory_space<vmem>>, %arg10: memref<2x1x32xf32, #tpu.memory_space<vmem>>, %arg11: memref<4x32x32xf32, #tpu.memory_space<vmem>>, %arg12: memref<4x1x32xf32, #tpu.memory_space<vmem>>, %arg13: memref<4x8x32xf32, #tpu.memory_space<vmem>>, %arg14: memref<32x32xf32, #tpu.memory_space<vmem>>) attributes {dimension_semantics = [#tpu.dimension_semantics<parallel>, #tpu.dimension_semantics<arbitrary>], iteration_bounds = array<i64: 1, 2>, scalar_prefetch = 0 : i64, scratch_operands = 1 : i64, tpu.core_type = #tpu.core_type<tc>, window_params = [{transform_indices = @transform_0, window_bounds = array<i64: 4, 8, 32>}, {transform_indices = @transform_1, window_bounds = array<i64: 4, 8, 8>}, {transform_indices = @transform_2, window_bounds = array<i64: 4, 1, 8>}, {pipeline_mode = #tpu.pipeline_mode<synchronous>, transform_indices = @transform_3, window_bounds = array<i64: 1, 32>}, {pipeline_mode = #tpu.pipeline_mode<synchronous>, transform_indices = @transform_4, window_bounds = array<i64: 1, 32>}, {pipeline_mode = #tpu.pipeline_mode<synchronous>, transform_indices = @transform_5, window_bounds = array<i64: 2, 32, 96>}, {pipeline_mode = #tpu.pipeline_mode<synchronous>, transform_indices = @transform_6, window_bounds = array<i64: 2, 1, 96>}, {pipeline_mode = #tpu.pipeline_mode<synchronous>, transform_indices = @transform_7, window_bounds = array<i64: 2, 32, 32>}, {pipeline_mode = #tpu.pipeline_mode<synchronous>, transform_indices = @transform_8, window_bounds = array<i64: 2, 1, 32>}, {pipeline_mode = #tpu.pipeline_mode<synchronous>, transform_indices = @transform_9, window_bounds = array<i64: 4, 32, 32>}, {pipeline_mode = #tpu.pipeline_mode<synchronous>, transform_indices = @transform_10, window_bounds = array<i64: 4, 1, 32>}, {transform_indices = @transform_11, window_bounds = array<i64: 4, 8, 32>}]} {
    %c0_i32 = arith.constant 0 : i32
    %0 = arith.cmpi eq, %arg1, %c0_i32 : i32
    %1 = arith.extui %0 : i1 to i32
    %c0_i32_0 = arith.constant 0 : i32
    %2 = arith.cmpi ne, %1, %c0_i32_0 : i32
    scf.if %2 {
      %c0_188 = arith.constant 0 : index
      %c0_189 = arith.constant 0 : index
      %c0_190 = arith.constant 0 : index
      %567 = vector.load %arg2[%c0_188, %c0_189, %c0_190] : memref<4x8x32xf32, #tpu.memory_space<vmem>>, vector<1x8x32xf32>
      %568 = vector.shape_cast %567 : vector<1x8x32xf32> to vector<8x32xf32>
      %c0_191 = arith.constant 0 : index
      %c0_192 = arith.constant 0 : index
      %569 = vector.load %arg14[%c0_191, %c0_192] : memref<32x32xf32, #tpu.memory_space<vmem>>, vector<8x32xf32>
      tpu.vector_store %arg14[%c0_191, %c0_192], %568 {strides = array<i32>} : memref<32x32xf32, #tpu.memory_space<vmem>>, vector<8x32xf32>,
      %c1 = arith.constant 1 : index
      %c0_193 = arith.constant 0 : index
      %c0_194 = arith.constant 0 : index
      %570 = vector.load %arg2[%c1, %c0_193, %c0_194] : memref<4x8x32xf32, #tpu.memory_space<vmem>>, vector<1x8x32xf32>
      %571 = vector.shape_cast %570 : vector<1x8x32xf32> to vector<8x32xf32>
      %c8 = arith.constant 8 : index
      %c0_195 = arith.constant 0 : index
      %572 = vector.load %arg14[%c8, %c0_195] : memref<32x32xf32, #tpu.memory_space<vmem>>, vector<8x32xf32>
      tpu.vector_store %arg14[%c8, %c0_195], %571 {strides = array<i32>} : memref<32x32xf32, #tpu.memory_space<vmem>>, vector<8x32xf32>,
      %c2 = arith.constant 2 : index
      %c0_196 = arith.constant 0 : index
      %c0_197 = arith.constant 0 : index
      %573 = vector.load %arg2[%c2, %c0_196, %c0_197] : memref<4x8x32xf32, #tpu.memory_space<vmem>>, vector<1x8x32xf32>
      %574 = vector.shape_cast %573 : vector<1x8x32xf32> to vector<8x32xf32>
      %c16 = arith.constant 16 : index
      %c0_198 = arith.constant 0 : index
      %575 = vector.load %arg14[%c16, %c0_198] : memref<32x32xf32, #tpu.memory_space<vmem>>, vector<8x32xf32>
      tpu.vector_store %arg14[%c16, %c0_198], %574 {strides = array<i32>} : memref<32x32xf32, #tpu.memory_space<vmem>>, vector<8x32xf32>,
      %c3 = arith.constant 3 : index
      %c0_199 = arith.constant 0 : index
      %c0_200 = arith.constant 0 : index
      %576 = vector.load %arg2[%c3, %c0_199, %c0_200] : memref<4x8x32xf32, #tpu.memory_space<vmem>>, vector<1x8x32xf32>
      %577 = vector.shape_cast %576 : vector<1x8x32xf32> to vector<8x32xf32>
      %c24 = arith.constant 24 : index
      %c0_201 = arith.constant 0 : index
      %578 = vector.load %arg14[%c24, %c0_201] : memref<32x32xf32, #tpu.memory_space<vmem>>, vector<8x32xf32>
      tpu.vector_store %arg14[%c24, %c0_201], %577 {strides = array<i32>} : memref<32x32xf32, #tpu.memory_space<vmem>>, vector<8x32xf32>,
    } else {
    }
    %c0 = arith.constant 0 : index
    %c0_1 = arith.constant 0 : index
    %3 = vector.load %arg14[%c0, %c0_1] : memref<32x32xf32, #tpu.memory_space<vmem>>, vector<32x32xf32>
    %c0_2 = arith.constant 0 : index
    %c0_3 = arith.constant 0 : index
    %4 = vector.load %arg5[%c0_2, %c0_3] : memref<1x32xf32, #tpu.memory_space<vmem>>, vector<1x32xf32>
    %5 = vector.shape_cast %4 : vector<1x32xf32> to vector<1x32xf32>
    %6 = vector.broadcast %5 : vector<1x32xf32> to vector<32x32xf32>
    %c0_4 = arith.constant 0 : index
    %c0_5 = arith.constant 0 : index
    %7 = vector.load %arg6[%c0_4, %c0_5] : memref<1x32xf32, #tpu.memory_space<vmem>>, vector<1x32xf32>
    %8 = vector.shape_cast %7 : vector<1x32xf32> to vector<1x32xf32>
    %9 = vector.broadcast %8 : vector<1x32xf32> to vector<32x32xf32>
    %10 = arith.index_cast %arg1 : i32 to index
    %c0_6 = arith.constant 0 : index
    %c0_7 = arith.constant 0 : index
    %11 = vector.load %arg7[%10, %c0_6, %c0_7] : memref<2x32x96xf32, #tpu.memory_space<vmem>>, vector<1x32x96xf32>
    %12 = vector.shape_cast %11 : vector<1x32x96xf32> to vector<32x96xf32>
    %13 = arith.index_cast %arg1 : i32 to index
    %c0_8 = arith.constant 0 : index
    %c0_9 = arith.constant 0 : index
    %14 = vector.load %arg8[%13, %c0_8, %c0_9] : memref<2x1x96xf32, #tpu.memory_space<vmem>>, vector<1x1x96xf32>
    %15 = vector.shape_cast %14 : vector<1x1x96xf32> to vector<1x96xf32>
    %16 = arith.index_cast %arg1 : i32 to index
    %c0_10 = arith.constant 0 : index
    %c0_11 = arith.constant 0 : index
    %17 = vector.load %arg9[%16, %c0_10, %c0_11] : memref<2x32x32xf32, #tpu.memory_space<vmem>>, vector<1x32x32xf32>
    %18 = vector.shape_cast %17 : vector<1x32x32xf32> to vector<32x32xf32>
    %19 = arith.index_cast %arg1 : i32 to index
    %c0_12 = arith.constant 0 : index
    %c0_13 = arith.constant 0 : index
    %20 = vector.load %arg10[%19, %c0_12, %c0_13] : memref<2x1x32xf32, #tpu.memory_space<vmem>>, vector<1x1x32xf32>
    %21 = vector.shape_cast %20 : vector<1x1x32xf32> to vector<1x32xf32>
    %cst = arith.constant dense<0.000000e+00> : vector<32xf32>
    %22 = vector.multi_reduction <add>, %3, %cst [1] : vector<32x32xf32> to vector<32xf32>
    %23 = vector.shape_cast %22 : vector<32xf32> to vector<32x1xf32>
    %cst_14 = arith.constant 3.200000e+01 : f32
    %24 = vector.broadcast %cst_14 : f32 to vector<32x1xf32>
    %25 = arith.divf %23, %24 : vector<32x1xf32>
    %26 = vector.broadcast %25 : vector<32x1xf32> to vector<32x32xf32>
    %27 = arith.subf %3, %26 : vector<32x32xf32>
    %28 = arith.mulf %27, %27 : vector<32x32xf32>
    %cst_15 = arith.constant dense<0.000000e+00> : vector<32xf32>
    %29 = vector.multi_reduction <add>, %28, %cst_15 [1] : vector<32x32xf32> to vector<32xf32>
    %30 = vector.shape_cast %29 : vector<32xf32> to vector<32x1xf32>
    %cst_16 = arith.constant 0.0322580636 : f32
    %31 = vector.broadcast %cst_16 : f32 to vector<32x1xf32>
    %32 = arith.mulf %30, %31 : vector<32x1xf32>
    %33 = math.sqrt %32 : vector<32x1xf32>
    %cst_17 = arith.constant 9.99999997E-7 : f32
    %34 = vector.broadcast %cst_17 : f32 to vector<32x1xf32>
    %35 = arith.addf %33, %34 : vector<32x1xf32>
    %36 = tpu.reciprocal %35 : vector<32x1xf32> -> vector<32x1xf32>
    %37 = vector.broadcast %36 : vector<32x1xf32> to vector<32x32xf32>
    %38 = arith.mulf %27, %37 : vector<32x32xf32>
    %39 = arith.mulf %6, %38 : vector<32x32xf32>
    %40 = arith.addf %39, %9 : vector<32x32xf32>
    %cst_18 = arith.constant dense<0.000000e+00> : vector<32x96xf32>
    %41 = tpu.matmul %40, %12, %cst_18 {dimension_numbers = #tpu.dot_dimension_numbers<[1], [0], [0], [1], [0, 0, 1, 1], [], []>} : vector<32x32xf32>, vector<32x96xf32>, vector<32x96xf32> -> vector<32x96xf32>
    %42 = vector.broadcast %15 : vector<1x96xf32> to vector<32x96xf32>
    %43 = arith.addf %41, %42 : vector<32x96xf32>
    %c0_19 = arith.constant 0 : index
    %c0_20 = arith.constant 0 : index
    %c0_21 = arith.constant 0 : index
    %44 = vector.load %arg3[%c0_19, %c0_20, %c0_21] : memref<4x8x8xbf16, #tpu.memory_space<vmem>>, vector<4x8x8xbf16>
    %45 = arith.extf %44 : vector<4x8x8xbf16> to vector<4x8x8xf32>
    %c0_22 = arith.constant 0 : index
    %c0_23 = arith.constant 0 : index
    %c0_24 = arith.constant 0 : index
    %46 = vector.load %arg4[%c0_22, %c0_23, %c0_24] : memref<4x1x8xf32, #tpu.memory_space<vmem>>, vector<4x1x8xf32>
    %47 = vector.extract_strided_slice %46 {offsets = [0, 0, 0], sizes = [1, 1, 8], strides = [1, 1, 1]} : vector<4x1x8xf32> to vector<1x1x8xf32>
    %48 = vector.shape_cast %47 : vector<1x1x8xf32> to vector<1x8xf32>
    %cst_25 = arith.constant 0.000000e+00 : f32
    %49 = vector.broadcast %cst_25 : f32 to vector<1x8xf32>
    %50 = arith.cmpf oeq, %48, %49 : vector<1x8xf32>
    %51 = vector.shape_cast %50 : vector<1x8xi1> to vector<1x8xi1>
    %52 = vector.broadcast %51 : vector<1x8xi1> to vector<8x8xi1>
    %53 = vector.extract_strided_slice %45 {offsets = [0, 0, 0], sizes = [1, 8, 8], strides = [1, 1, 1]} : vector<4x8x8xf32> to vector<1x8x8xf32>
    %54 = vector.shape_cast %53 : vector<1x8x8xf32> to vector<8x8xf32>
    %55 = vector.extract_strided_slice %43 {offsets = [0, 0], sizes = [8, 8], strides = [1, 1]} : vector<32x96xf32> to vector<8x8xf32>
    %56 = vector.extract_strided_slice %43 {offsets = [0, 32], sizes = [8, 8], strides = [1, 1]} : vector<32x96xf32> to vector<8x8xf32>
    %57 = vector.extract_strided_slice %43 {offsets = [0, 64], sizes = [8, 8], strides = [1, 1]} : vector<32x96xf32> to vector<8x8xf32>
    %cst_26 = arith.constant dense<0.000000e+00> : vector<8x8xf32>
    %58 = tpu.matmul %55, %56, %cst_26 {dimension_numbers = #tpu.dot_dimension_numbers<[1], [1], [0], [0], [0, 0, 1, 0], [], []>} : vector<8x8xf32>, vector<8x8xf32>, vector<8x8xf32> -> vector<8x8xf32>
    %cst_27 = arith.constant -9.99999995E+11 : f32
    %59 = vector.broadcast %cst_27 : f32 to vector<8x8xf32>
    %60 = arith.select %52, %59, %58 : vector<8x8xi1>, vector<8x8xf32>
    %cst_28 = arith.constant 0.353553385 : f32
    %61 = vector.broadcast %cst_28 : f32 to vector<8x8xf32>
    %62 = arith.mulf %60, %61 : vector<8x8xf32>
    %cst_29 = arith.constant dense<0xFF800000> : vector<8xf32>
    %63 = vector.multi_reduction <maximumf>, %62, %cst_29 [1] : vector<8x8xf32> to vector<8xf32>
    %64 = vector.shape_cast %63 : vector<8xf32> to vector<8x1xf32>
    %65 = vector.broadcast %64 : vector<8x1xf32> to vector<8x8xf32>
    %66 = arith.subf %62, %65 : vector<8x8xf32>
    %67 = math.exp %66 : vector<8x8xf32>
    %68 = arith.mulf %67, %54 : vector<8x8xf32>
    %cst_30 = arith.constant dense<0.000000e+00> : vector<8xf32>
    %69 = vector.multi_reduction <add>, %68, %cst_30 [1] : vector<8x8xf32> to vector<8xf32>
    %70 = vector.shape_cast %69 : vector<8xf32> to vector<8x1xf32>
    %cst_31 = arith.constant dense<0.000000e+00> : vector<8xf32>
    %71 = vector.multi_reduction <add>, %67, %cst_31 [1] : vector<8x8xf32> to vector<8xf32>
    %72 = vector.shape_cast %71 : vector<8xf32> to vector<8x1xf32>
    %cst_32 = arith.constant 9.99999974E-6 : f32
    %73 = vector.broadcast %cst_32 : f32 to vector<8x1xf32>
    %74 = arith.mulf %73, %72 : vector<8x1xf32>
    %75 = arith.addf %70, %74 : vector<8x1xf32>
    %76 = tpu.reciprocal %75 : vector<8x1xf32> -> vector<8x1xf32>
    %77 = vector.broadcast %76 : vector<8x1xf32> to vector<8x8xf32>
    %78 = arith.mulf %68, %77 : vector<8x8xf32>
    %cst_33 = arith.constant dense<0.000000e+00> : vector<8x8xf32>
    %79 = tpu.matmul %78, %57, %cst_33 {dimension_numbers = #tpu.dot_dimension_numbers<[1], [0], [0], [1], [0, 0, 1, 1], [], []>} : vector<8x8xf32>, vector<8x8xf32>, vector<8x8xf32> -> vector<8x8xf32>
    %80 = vector.extract_strided_slice %43 {offsets = [0, 8], sizes = [8, 8], strides = [1, 1]} : vector<32x96xf32> to vector<8x8xf32>
    %81 = vector.extract_strided_slice %43 {offsets = [0, 40], sizes = [8, 8], strides = [1, 1]} : vector<32x96xf32> to vector<8x8xf32>
    %82 = vector.extract_strided_slice %43 {offsets = [0, 72], sizes = [8, 8], strides = [1, 1]} : vector<32x96xf32> to vector<8x8xf32>
    %cst_34 = arith.constant dense<0.000000e+00> : vector<8x8xf32>
    %83 = tpu.matmul %80, %81, %cst_34 {dimension_numbers = #tpu.dot_dimension_numbers<[1], [1], [0], [0], [0, 0, 1, 0], [], []>} : vector<8x8xf32>, vector<8x8xf32>, vector<8x8xf32> -> vector<8x8xf32>
    %cst_35 = arith.constant -9.99999995E+11 : f32
    %84 = vector.broadcast %cst_35 : f32 to vector<8x8xf32>
    %85 = arith.select %52, %84, %83 : vector<8x8xi1>, vector<8x8xf32>
    %cst_36 = arith.constant 0.353553385 : f32
    %86 = vector.broadcast %cst_36 : f32 to vector<8x8xf32>
    %87 = arith.mulf %85, %86 : vector<8x8xf32>
    %cst_37 = arith.constant dense<0xFF800000> : vector<8xf32>
    %88 = vector.multi_reduction <maximumf>, %87, %cst_37 [1] : vector<8x8xf32> to vector<8xf32>
    %89 = vector.shape_cast %88 : vector<8xf32> to vector<8x1xf32>
    %90 = vector.broadcast %89 : vector<8x1xf32> to vector<8x8xf32>
    %91 = arith.subf %87, %90 : vector<8x8xf32>
    %92 = math.exp %91 : vector<8x8xf32>
    %93 = arith.mulf %92, %54 : vector<8x8xf32>
    %cst_38 = arith.constant dense<0.000000e+00> : vector<8xf32>
    %94 = vector.multi_reduction <add>, %93, %cst_38 [1] : vector<8x8xf32> to vector<8xf32>
    %95 = vector.shape_cast %94 : vector<8xf32> to vector<8x1xf32>
    %cst_39 = arith.constant dense<0.000000e+00> : vector<8xf32>
    %96 = vector.multi_reduction <add>, %92, %cst_39 [1] : vector<8x8xf32> to vector<8xf32>
    %97 = vector.shape_cast %96 : vector<8xf32> to vector<8x1xf32>
    %cst_40 = arith.constant 9.99999974E-6 : f32
    %98 = vector.broadcast %cst_40 : f32 to vector<8x1xf32>
    %99 = arith.mulf %98, %97 : vector<8x1xf32>
    %100 = arith.addf %95, %99 : vector<8x1xf32>
    %101 = tpu.reciprocal %100 : vector<8x1xf32> -> vector<8x1xf32>
    %102 = vector.broadcast %101 : vector<8x1xf32> to vector<8x8xf32>
    %103 = arith.mulf %93, %102 : vector<8x8xf32>
    %cst_41 = arith.constant dense<0.000000e+00> : vector<8x8xf32>
    %104 = tpu.matmul %103, %82, %cst_41 {dimension_numbers = #tpu.dot_dimension_numbers<[1], [0], [0], [1], [0, 0, 1, 1], [], []>} : vector<8x8xf32>, vector<8x8xf32>, vector<8x8xf32> -> vector<8x8xf32>
    %105 = vector.extract_strided_slice %43 {offsets = [0, 16], sizes = [8, 8], strides = [1, 1]} : vector<32x96xf32> to vector<8x8xf32>
    %106 = vector.extract_strided_slice %43 {offsets = [0, 48], sizes = [8, 8], strides = [1, 1]} : vector<32x96xf32> to vector<8x8xf32>
    %107 = vector.extract_strided_slice %43 {offsets = [0, 80], sizes = [8, 8], strides = [1, 1]} : vector<32x96xf32> to vector<8x8xf32>
    %cst_42 = arith.constant dense<0.000000e+00> : vector<8x8xf32>
    %108 = tpu.matmul %105, %106, %cst_42 {dimension_numbers = #tpu.dot_dimension_numbers<[1], [1], [0], [0], [0, 0, 1, 0], [], []>} : vector<8x8xf32>, vector<8x8xf32>, vector<8x8xf32> -> vector<8x8xf32>
    %cst_43 = arith.constant -9.99999995E+11 : f32
    %109 = vector.broadcast %cst_43 : f32 to vector<8x8xf32>
    %110 = arith.select %52, %109, %108 : vector<8x8xi1>, vector<8x8xf32>
    %cst_44 = arith.constant 0.353553385 : f32
    %111 = vector.broadcast %cst_44 : f32 to vector<8x8xf32>
    %112 = arith.mulf %110, %111 : vector<8x8xf32>
    %cst_45 = arith.constant dense<0xFF800000> : vector<8xf32>
    %113 = vector.multi_reduction <maximumf>, %112, %cst_45 [1] : vector<8x8xf32> to vector<8xf32>
    %114 = vector.shape_cast %113 : vector<8xf32> to vector<8x1xf32>
    %115 = vector.broadcast %114 : vector<8x1xf32> to vector<8x8xf32>
    %116 = arith.subf %112, %115 : vector<8x8xf32>
    %117 = math.exp %116 : vector<8x8xf32>
    %118 = arith.mulf %117, %54 : vector<8x8xf32>
    %cst_46 = arith.constant dense<0.000000e+00> : vector<8xf32>
    %119 = vector.multi_reduction <add>, %118, %cst_46 [1] : vector<8x8xf32> to vector<8xf32>
    %120 = vector.shape_cast %119 : vector<8xf32> to vector<8x1xf32>
    %cst_47 = arith.constant dense<0.000000e+00> : vector<8xf32>
    %121 = vector.multi_reduction <add>, %117, %cst_47 [1] : vector<8x8xf32> to vector<8xf32>
    %122 = vector.shape_cast %121 : vector<8xf32> to vector<8x1xf32>
    %cst_48 = arith.constant 9.99999974E-6 : f32
    %123 = vector.broadcast %cst_48 : f32 to vector<8x1xf32>
    %124 = arith.mulf %123, %122 : vector<8x1xf32>
    %125 = arith.addf %120, %124 : vector<8x1xf32>
    %126 = tpu.reciprocal %125 : vector<8x1xf32> -> vector<8x1xf32>
    %127 = vector.broadcast %126 : vector<8x1xf32> to vector<8x8xf32>
    %128 = arith.mulf %118, %127 : vector<8x8xf32>
    %cst_49 = arith.constant dense<0.000000e+00> : vector<8x8xf32>
    %129 = tpu.matmul %128, %107, %cst_49 {dimension_numbers = #tpu.dot_dimension_numbers<[1], [0], [0], [1], [0, 0, 1, 1], [], []>} : vector<8x8xf32>, vector<8x8xf32>, vector<8x8xf32> -> vector<8x8xf32>
    %130 = vector.extract_strided_slice %43 {offsets = [0, 24], sizes = [8, 8], strides = [1, 1]} : vector<32x96xf32> to vector<8x8xf32>
    %131 = vector.extract_strided_slice %43 {offsets = [0, 56], sizes = [8, 8], strides = [1, 1]} : vector<32x96xf32> to vector<8x8xf32>
    %132 = vector.extract_strided_slice %43 {offsets = [0, 88], sizes = [8, 8], strides = [1, 1]} : vector<32x96xf32> to vector<8x8xf32>
    %cst_50 = arith.constant dense<0.000000e+00> : vector<8x8xf32>
    %133 = tpu.matmul %130, %131, %cst_50 {dimension_numbers = #tpu.dot_dimension_numbers<[1], [1], [0], [0], [0, 0, 1, 0], [], []>} : vector<8x8xf32>, vector<8x8xf32>, vector<8x8xf32> -> vector<8x8xf32>
    %cst_51 = arith.constant -9.99999995E+11 : f32
    %134 = vector.broadcast %cst_51 : f32 to vector<8x8xf32>
    %135 = arith.select %52, %134, %133 : vector<8x8xi1>, vector<8x8xf32>
    %cst_52 = arith.constant 0.353553385 : f32
    %136 = vector.broadcast %cst_52 : f32 to vector<8x8xf32>
    %137 = arith.mulf %135, %136 : vector<8x8xf32>
    %cst_53 = arith.constant dense<0xFF800000> : vector<8xf32>
    %138 = vector.multi_reduction <maximumf>, %137, %cst_53 [1] : vector<8x8xf32> to vector<8xf32>
    %139 = vector.shape_cast %138 : vector<8xf32> to vector<8x1xf32>
    %140 = vector.broadcast %139 : vector<8x1xf32> to vector<8x8xf32>
    %141 = arith.subf %137, %140 : vector<8x8xf32>
    %142 = math.exp %141 : vector<8x8xf32>
    %143 = arith.mulf %142, %54 : vector<8x8xf32>
    %cst_54 = arith.constant dense<0.000000e+00> : vector<8xf32>
    %144 = vector.multi_reduction <add>, %143, %cst_54 [1] : vector<8x8xf32> to vector<8xf32>
    %145 = vector.shape_cast %144 : vector<8xf32> to vector<8x1xf32>
    %cst_55 = arith.constant dense<0.000000e+00> : vector<8xf32>
    %146 = vector.multi_reduction <add>, %142, %cst_55 [1] : vector<8x8xf32> to vector<8xf32>
    %147 = vector.shape_cast %146 : vector<8xf32> to vector<8x1xf32>
    %cst_56 = arith.constant 9.99999974E-6 : f32
    %148 = vector.broadcast %cst_56 : f32 to vector<8x1xf32>
    %149 = arith.mulf %148, %147 : vector<8x1xf32>
    %150 = arith.addf %145, %149 : vector<8x1xf32>
    %151 = tpu.reciprocal %150 : vector<8x1xf32> -> vector<8x1xf32>
    %152 = vector.broadcast %151 : vector<8x1xf32> to vector<8x8xf32>
    %153 = arith.mulf %143, %152 : vector<8x8xf32>
    %cst_57 = arith.constant dense<0.000000e+00> : vector<8x8xf32>
    %154 = tpu.matmul %153, %132, %cst_57 {dimension_numbers = #tpu.dot_dimension_numbers<[1], [0], [0], [1], [0, 0, 1, 1], [], []>} : vector<8x8xf32>, vector<8x8xf32>, vector<8x8xf32> -> vector<8x8xf32>
    %155 = tpu.concatenate %79, %104, %129, %154 in 1 : vector<8x8xf32>, vector<8x8xf32>, vector<8x8xf32>, vector<8x8xf32> -> vector<8x32xf32>
    %156 = vector.extract_strided_slice %46 {offsets = [1, 0, 0], sizes = [1, 1, 8], strides = [1, 1, 1]} : vector<4x1x8xf32> to vector<1x1x8xf32>
    %157 = vector.shape_cast %156 : vector<1x1x8xf32> to vector<1x8xf32>
    %cst_58 = arith.constant 0.000000e+00 : f32
    %158 = vector.broadcast %cst_58 : f32 to vector<1x8xf32>
    %159 = arith.cmpf oeq, %157, %158 : vector<1x8xf32>
    %160 = vector.shape_cast %159 : vector<1x8xi1> to vector<1x8xi1>
    %161 = vector.broadcast %160 : vector<1x8xi1> to vector<8x8xi1>
    %162 = vector.extract_strided_slice %45 {offsets = [1, 0, 0], sizes = [1, 8, 8], strides = [1, 1, 1]} : vector<4x8x8xf32> to vector<1x8x8xf32>
    %163 = vector.shape_cast %162 : vector<1x8x8xf32> to vector<8x8xf32>
    %164 = vector.extract_strided_slice %43 {offsets = [8, 0], sizes = [8, 8], strides = [1, 1]} : vector<32x96xf32> to vector<8x8xf32>
    %165 = vector.extract_strided_slice %43 {offsets = [8, 32], sizes = [8, 8], strides = [1, 1]} : vector<32x96xf32> to vector<8x8xf32>
    %166 = vector.extract_strided_slice %43 {offsets = [8, 64], sizes = [8, 8], strides = [1, 1]} : vector<32x96xf32> to vector<8x8xf32>
    %cst_59 = arith.constant dense<0.000000e+00> : vector<8x8xf32>
    %167 = tpu.matmul %164, %165, %cst_59 {dimension_numbers = #tpu.dot_dimension_numbers<[1], [1], [0], [0], [0, 0, 1, 0], [], []>} : vector<8x8xf32>, vector<8x8xf32>, vector<8x8xf32> -> vector<8x8xf32>
    %cst_60 = arith.constant -9.99999995E+11 : f32
    %168 = vector.broadcast %cst_60 : f32 to vector<8x8xf32>
    %169 = arith.select %161, %168, %167 : vector<8x8xi1>, vector<8x8xf32>
    %cst_61 = arith.constant 0.353553385 : f32
    %170 = vector.broadcast %cst_61 : f32 to vector<8x8xf32>
    %171 = arith.mulf %169, %170 : vector<8x8xf32>
    %cst_62 = arith.constant dense<0xFF800000> : vector<8xf32>
    %172 = vector.multi_reduction <maximumf>, %171, %cst_62 [1] : vector<8x8xf32> to vector<8xf32>
    %173 = vector.shape_cast %172 : vector<8xf32> to vector<8x1xf32>
    %174 = vector.broadcast %173 : vector<8x1xf32> to vector<8x8xf32>
    %175 = arith.subf %171, %174 : vector<8x8xf32>
    %176 = math.exp %175 : vector<8x8xf32>
    %177 = arith.mulf %176, %163 : vector<8x8xf32>
    %cst_63 = arith.constant dense<0.000000e+00> : vector<8xf32>
    %178 = vector.multi_reduction <add>, %177, %cst_63 [1] : vector<8x8xf32> to vector<8xf32>
    %179 = vector.shape_cast %178 : vector<8xf32> to vector<8x1xf32>
    %cst_64 = arith.constant dense<0.000000e+00> : vector<8xf32>
    %180 = vector.multi_reduction <add>, %176, %cst_64 [1] : vector<8x8xf32> to vector<8xf32>
    %181 = vector.shape_cast %180 : vector<8xf32> to vector<8x1xf32>
    %cst_65 = arith.constant 9.99999974E-6 : f32
    %182 = vector.broadcast %cst_65 : f32 to vector<8x1xf32>
    %183 = arith.mulf %182, %181 : vector<8x1xf32>
    %184 = arith.addf %179, %183 : vector<8x1xf32>
    %185 = tpu.reciprocal %184 : vector<8x1xf32> -> vector<8x1xf32>
    %186 = vector.broadcast %185 : vector<8x1xf32> to vector<8x8xf32>
    %187 = arith.mulf %177, %186 : vector<8x8xf32>
    %cst_66 = arith.constant dense<0.000000e+00> : vector<8x8xf32>
    %188 = tpu.matmul %187, %166, %cst_66 {dimension_numbers = #tpu.dot_dimension_numbers<[1], [0], [0], [1], [0, 0, 1, 1], [], []>} : vector<8x8xf32>, vector<8x8xf32>, vector<8x8xf32> -> vector<8x8xf32>
    %189 = vector.extract_strided_slice %43 {offsets = [8, 8], sizes = [8, 8], strides = [1, 1]} : vector<32x96xf32> to vector<8x8xf32>
    %190 = vector.extract_strided_slice %43 {offsets = [8, 40], sizes = [8, 8], strides = [1, 1]} : vector<32x96xf32> to vector<8x8xf32>
    %191 = vector.extract_strided_slice %43 {offsets = [8, 72], sizes = [8, 8], strides = [1, 1]} : vector<32x96xf32> to vector<8x8xf32>
    %cst_67 = arith.constant dense<0.000000e+00> : vector<8x8xf32>
    %192 = tpu.matmul %189, %190, %cst_67 {dimension_numbers = #tpu.dot_dimension_numbers<[1], [1], [0], [0], [0, 0, 1, 0], [], []>} : vector<8x8xf32>, vector<8x8xf32>, vector<8x8xf32> -> vector<8x8xf32>
    %cst_68 = arith.constant -9.99999995E+11 : f32
    %193 = vector.broadcast %cst_68 : f32 to vector<8x8xf32>
    %194 = arith.select %161, %193, %192 : vector<8x8xi1>, vector<8x8xf32>
    %cst_69 = arith.constant 0.353553385 : f32
    %195 = vector.broadcast %cst_69 : f32 to vector<8x8xf32>
    %196 = arith.mulf %194, %195 : vector<8x8xf32>
    %cst_70 = arith.constant dense<0xFF800000> : vector<8xf32>
    %197 = vector.multi_reduction <maximumf>, %196, %cst_70 [1] : vector<8x8xf32> to vector<8xf32>
    %198 = vector.shape_cast %197 : vector<8xf32> to vector<8x1xf32>
    %199 = vector.broadcast %198 : vector<8x1xf32> to vector<8x8xf32>
    %200 = arith.subf %196, %199 : vector<8x8xf32>
    %201 = math.exp %200 : vector<8x8xf32>
    %202 = arith.mulf %201, %163 : vector<8x8xf32>
    %cst_71 = arith.constant dense<0.000000e+00> : vector<8xf32>
    %203 = vector.multi_reduction <add>, %202, %cst_71 [1] : vector<8x8xf32> to vector<8xf32>
    %204 = vector.shape_cast %203 : vector<8xf32> to vector<8x1xf32>
    %cst_72 = arith.constant dense<0.000000e+00> : vector<8xf32>
    %205 = vector.multi_reduction <add>, %201, %cst_72 [1] : vector<8x8xf32> to vector<8xf32>
    %206 = vector.shape_cast %205 : vector<8xf32> to vector<8x1xf32>
    %cst_73 = arith.constant 9.99999974E-6 : f32
    %207 = vector.broadcast %cst_73 : f32 to vector<8x1xf32>
    %208 = arith.mulf %207, %206 : vector<8x1xf32>
    %209 = arith.addf %204, %208 : vector<8x1xf32>
    %210 = tpu.reciprocal %209 : vector<8x1xf32> -> vector<8x1xf32>
    %211 = vector.broadcast %210 : vector<8x1xf32> to vector<8x8xf32>
    %212 = arith.mulf %202, %211 : vector<8x8xf32>
    %cst_74 = arith.constant dense<0.000000e+00> : vector<8x8xf32>
    %213 = tpu.matmul %212, %191, %cst_74 {dimension_numbers = #tpu.dot_dimension_numbers<[1], [0], [0], [1], [0, 0, 1, 1], [], []>} : vector<8x8xf32>, vector<8x8xf32>, vector<8x8xf32> -> vector<8x8xf32>
    %214 = vector.extract_strided_slice %43 {offsets = [8, 16], sizes = [8, 8], strides = [1, 1]} : vector<32x96xf32> to vector<8x8xf32>
    %215 = vector.extract_strided_slice %43 {offsets = [8, 48], sizes = [8, 8], strides = [1, 1]} : vector<32x96xf32> to vector<8x8xf32>
    %216 = vector.extract_strided_slice %43 {offsets = [8, 80], sizes = [8, 8], strides = [1, 1]} : vector<32x96xf32> to vector<8x8xf32>
    %cst_75 = arith.constant dense<0.000000e+00> : vector<8x8xf32>
    %217 = tpu.matmul %214, %215, %cst_75 {dimension_numbers = #tpu.dot_dimension_numbers<[1], [1], [0], [0], [0, 0, 1, 0], [], []>} : vector<8x8xf32>, vector<8x8xf32>, vector<8x8xf32> -> vector<8x8xf32>
    %cst_76 = arith.constant -9.99999995E+11 : f32
    %218 = vector.broadcast %cst_76 : f32 to vector<8x8xf32>
    %219 = arith.select %161, %218, %217 : vector<8x8xi1>, vector<8x8xf32>
    %cst_77 = arith.constant 0.353553385 : f32
    %220 = vector.broadcast %cst_77 : f32 to vector<8x8xf32>
    %221 = arith.mulf %219, %220 : vector<8x8xf32>
    %cst_78 = arith.constant dense<0xFF800000> : vector<8xf32>
    %222 = vector.multi_reduction <maximumf>, %221, %cst_78 [1] : vector<8x8xf32> to vector<8xf32>
    %223 = vector.shape_cast %222 : vector<8xf32> to vector<8x1xf32>
    %224 = vector.broadcast %223 : vector<8x1xf32> to vector<8x8xf32>
    %225 = arith.subf %221, %224 : vector<8x8xf32>
    %226 = math.exp %225 : vector<8x8xf32>
    %227 = arith.mulf %226, %163 : vector<8x8xf32>
    %cst_79 = arith.constant dense<0.000000e+00> : vector<8xf32>
    %228 = vector.multi_reduction <add>, %227, %cst_79 [1] : vector<8x8xf32> to vector<8xf32>
    %229 = vector.shape_cast %228 : vector<8xf32> to vector<8x1xf32>
    %cst_80 = arith.constant dense<0.000000e+00> : vector<8xf32>
    %230 = vector.multi_reduction <add>, %226, %cst_80 [1] : vector<8x8xf32> to vector<8xf32>
    %231 = vector.shape_cast %230 : vector<8xf32> to vector<8x1xf32>
    %cst_81 = arith.constant 9.99999974E-6 : f32
    %232 = vector.broadcast %cst_81 : f32 to vector<8x1xf32>
    %233 = arith.mulf %232, %231 : vector<8x1xf32>
    %234 = arith.addf %229, %233 : vector<8x1xf32>
    %235 = tpu.reciprocal %234 : vector<8x1xf32> -> vector<8x1xf32>
    %236 = vector.broadcast %235 : vector<8x1xf32> to vector<8x8xf32>
    %237 = arith.mulf %227, %236 : vector<8x8xf32>
    %cst_82 = arith.constant dense<0.000000e+00> : vector<8x8xf32>
    %238 = tpu.matmul %237, %216, %cst_82 {dimension_numbers = #tpu.dot_dimension_numbers<[1], [0], [0], [1], [0, 0, 1, 1], [], []>} : vector<8x8xf32>, vector<8x8xf32>, vector<8x8xf32> -> vector<8x8xf32>
    %239 = vector.extract_strided_slice %43 {offsets = [8, 24], sizes = [8, 8], strides = [1, 1]} : vector<32x96xf32> to vector<8x8xf32>
    %240 = vector.extract_strided_slice %43 {offsets = [8, 56], sizes = [8, 8], strides = [1, 1]} : vector<32x96xf32> to vector<8x8xf32>
    %241 = vector.extract_strided_slice %43 {offsets = [8, 88], sizes = [8, 8], strides = [1, 1]} : vector<32x96xf32> to vector<8x8xf32>
    %cst_83 = arith.constant dense<0.000000e+00> : vector<8x8xf32>
    %242 = tpu.matmul %239, %240, %cst_83 {dimension_numbers = #tpu.dot_dimension_numbers<[1], [1], [0], [0], [0, 0, 1, 0], [], []>} : vector<8x8xf32>, vector<8x8xf32>, vector<8x8xf32> -> vector<8x8xf32>
    %cst_84 = arith.constant -9.99999995E+11 : f32
    %243 = vector.broadcast %cst_84 : f32 to vector<8x8xf32>
    %244 = arith.select %161, %243, %242 : vector<8x8xi1>, vector<8x8xf32>
    %cst_85 = arith.constant 0.353553385 : f32
    %245 = vector.broadcast %cst_85 : f32 to vector<8x8xf32>
    %246 = arith.mulf %244, %245 : vector<8x8xf32>
    %cst_86 = arith.constant dense<0xFF800000> : vector<8xf32>
    %247 = vector.multi_reduction <maximumf>, %246, %cst_86 [1] : vector<8x8xf32> to vector<8xf32>
    %248 = vector.shape_cast %247 : vector<8xf32> to vector<8x1xf32>
    %249 = vector.broadcast %248 : vector<8x1xf32> to vector<8x8xf32>
    %250 = arith.subf %246, %249 : vector<8x8xf32>
    %251 = math.exp %250 : vector<8x8xf32>
    %252 = arith.mulf %251, %163 : vector<8x8xf32>
    %cst_87 = arith.constant dense<0.000000e+00> : vector<8xf32>
    %253 = vector.multi_reduction <add>, %252, %cst_87 [1] : vector<8x8xf32> to vector<8xf32>
    %254 = vector.shape_cast %253 : vector<8xf32> to vector<8x1xf32>
    %cst_88 = arith.constant dense<0.000000e+00> : vector<8xf32>
    %255 = vector.multi_reduction <add>, %251, %cst_88 [1] : vector<8x8xf32> to vector<8xf32>
    %256 = vector.shape_cast %255 : vector<8xf32> to vector<8x1xf32>
    %cst_89 = arith.constant 9.99999974E-6 : f32
    %257 = vector.broadcast %cst_89 : f32 to vector<8x1xf32>
    %258 = arith.mulf %257, %256 : vector<8x1xf32>
    %259 = arith.addf %254, %258 : vector<8x1xf32>
    %260 = tpu.reciprocal %259 : vector<8x1xf32> -> vector<8x1xf32>
    %261 = vector.broadcast %260 : vector<8x1xf32> to vector<8x8xf32>
    %262 = arith.mulf %252, %261 : vector<8x8xf32>
    %cst_90 = arith.constant dense<0.000000e+00> : vector<8x8xf32>
    %263 = tpu.matmul %262, %241, %cst_90 {dimension_numbers = #tpu.dot_dimension_numbers<[1], [0], [0], [1], [0, 0, 1, 1], [], []>} : vector<8x8xf32>, vector<8x8xf32>, vector<8x8xf32> -> vector<8x8xf32>
    %264 = tpu.concatenate %188, %213, %238, %263 in 1 : vector<8x8xf32>, vector<8x8xf32>, vector<8x8xf32>, vector<8x8xf32> -> vector<8x32xf32>
    %265 = vector.extract_strided_slice %46 {offsets = [2, 0, 0], sizes = [1, 1, 8], strides = [1, 1, 1]} : vector<4x1x8xf32> to vector<1x1x8xf32>
    %266 = vector.shape_cast %265 : vector<1x1x8xf32> to vector<1x8xf32>
    %cst_91 = arith.constant 0.000000e+00 : f32
    %267 = vector.broadcast %cst_91 : f32 to vector<1x8xf32>
    %268 = arith.cmpf oeq, %266, %267 : vector<1x8xf32>
    %269 = vector.shape_cast %268 : vector<1x8xi1> to vector<1x8xi1>
    %270 = vector.broadcast %269 : vector<1x8xi1> to vector<8x8xi1>
    %271 = vector.extract_strided_slice %45 {offsets = [2, 0, 0], sizes = [1, 8, 8], strides = [1, 1, 1]} : vector<4x8x8xf32> to vector<1x8x8xf32>
    %272 = vector.shape_cast %271 : vector<1x8x8xf32> to vector<8x8xf32>
    %273 = vector.extract_strided_slice %43 {offsets = [16, 0], sizes = [8, 8], strides = [1, 1]} : vector<32x96xf32> to vector<8x8xf32>
    %274 = vector.extract_strided_slice %43 {offsets = [16, 32], sizes = [8, 8], strides = [1, 1]} : vector<32x96xf32> to vector<8x8xf32>
    %275 = vector.extract_strided_slice %43 {offsets = [16, 64], sizes = [8, 8], strides = [1, 1]} : vector<32x96xf32> to vector<8x8xf32>
    %cst_92 = arith.constant dense<0.000000e+00> : vector<8x8xf32>
    %276 = tpu.matmul %273, %274, %cst_92 {dimension_numbers = #tpu.dot_dimension_numbers<[1], [1], [0], [0], [0, 0, 1, 0], [], []>} : vector<8x8xf32>, vector<8x8xf32>, vector<8x8xf32> -> vector<8x8xf32>
    %cst_93 = arith.constant -9.99999995E+11 : f32
    %277 = vector.broadcast %cst_93 : f32 to vector<8x8xf32>
    %278 = arith.select %270, %277, %276 : vector<8x8xi1>, vector<8x8xf32>
    %cst_94 = arith.constant 0.353553385 : f32
    %279 = vector.broadcast %cst_94 : f32 to vector<8x8xf32>
    %280 = arith.mulf %278, %279 : vector<8x8xf32>
    %cst_95 = arith.constant dense<0xFF800000> : vector<8xf32>
    %281 = vector.multi_reduction <maximumf>, %280, %cst_95 [1] : vector<8x8xf32> to vector<8xf32>
    %282 = vector.shape_cast %281 : vector<8xf32> to vector<8x1xf32>
    %283 = vector.broadcast %282 : vector<8x1xf32> to vector<8x8xf32>
    %284 = arith.subf %280, %283 : vector<8x8xf32>
    %285 = math.exp %284 : vector<8x8xf32>
    %286 = arith.mulf %285, %272 : vector<8x8xf32>
    %cst_96 = arith.constant dense<0.000000e+00> : vector<8xf32>
    %287 = vector.multi_reduction <add>, %286, %cst_96 [1] : vector<8x8xf32> to vector<8xf32>
    %288 = vector.shape_cast %287 : vector<8xf32> to vector<8x1xf32>
    %cst_97 = arith.constant dense<0.000000e+00> : vector<8xf32>
    %289 = vector.multi_reduction <add>, %285, %cst_97 [1] : vector<8x8xf32> to vector<8xf32>
    %290 = vector.shape_cast %289 : vector<8xf32> to vector<8x1xf32>
    %cst_98 = arith.constant 9.99999974E-6 : f32
    %291 = vector.broadcast %cst_98 : f32 to vector<8x1xf32>
    %292 = arith.mulf %291, %290 : vector<8x1xf32>
    %293 = arith.addf %288, %292 : vector<8x1xf32>
    %294 = tpu.reciprocal %293 : vector<8x1xf32> -> vector<8x1xf32>
    %295 = vector.broadcast %294 : vector<8x1xf32> to vector<8x8xf32>
    %296 = arith.mulf %286, %295 : vector<8x8xf32>
    %cst_99 = arith.constant dense<0.000000e+00> : vector<8x8xf32>
    %297 = tpu.matmul %296, %275, %cst_99 {dimension_numbers = #tpu.dot_dimension_numbers<[1], [0], [0], [1], [0, 0, 1, 1], [], []>} : vector<8x8xf32>, vector<8x8xf32>, vector<8x8xf32> -> vector<8x8xf32>
    %298 = vector.extract_strided_slice %43 {offsets = [16, 8], sizes = [8, 8], strides = [1, 1]} : vector<32x96xf32> to vector<8x8xf32>
    %299 = vector.extract_strided_slice %43 {offsets = [16, 40], sizes = [8, 8], strides = [1, 1]} : vector<32x96xf32> to vector<8x8xf32>
    %300 = vector.extract_strided_slice %43 {offsets = [16, 72], sizes = [8, 8], strides = [1, 1]} : vector<32x96xf32> to vector<8x8xf32>
    %cst_100 = arith.constant dense<0.000000e+00> : vector<8x8xf32>
    %301 = tpu.matmul %298, %299, %cst_100 {dimension_numbers = #tpu.dot_dimension_numbers<[1], [1], [0], [0], [0, 0, 1, 0], [], []>} : vector<8x8xf32>, vector<8x8xf32>, vector<8x8xf32> -> vector<8x8xf32>
    %cst_101 = arith.constant -9.99999995E+11 : f32
    %302 = vector.broadcast %cst_101 : f32 to vector<8x8xf32>
    %303 = arith.select %270, %302, %301 : vector<8x8xi1>, vector<8x8xf32>
    %cst_102 = arith.constant 0.353553385 : f32
    %304 = vector.broadcast %cst_102 : f32 to vector<8x8xf32>
    %305 = arith.mulf %303, %304 : vector<8x8xf32>
    %cst_103 = arith.constant dense<0xFF800000> : vector<8xf32>
    %306 = vector.multi_reduction <maximumf>, %305, %cst_103 [1] : vector<8x8xf32> to vector<8xf32>
    %307 = vector.shape_cast %306 : vector<8xf32> to vector<8x1xf32>
    %308 = vector.broadcast %307 : vector<8x1xf32> to vector<8x8xf32>
    %309 = arith.subf %305, %308 : vector<8x8xf32>
    %310 = math.exp %309 : vector<8x8xf32>
    %311 = arith.mulf %310, %272 : vector<8x8xf32>
    %cst_104 = arith.constant dense<0.000000e+00> : vector<8xf32>
    %312 = vector.multi_reduction <add>, %311, %cst_104 [1] : vector<8x8xf32> to vector<8xf32>
    %313 = vector.shape_cast %312 : vector<8xf32> to vector<8x1xf32>
    %cst_105 = arith.constant dense<0.000000e+00> : vector<8xf32>
    %314 = vector.multi_reduction <add>, %310, %cst_105 [1] : vector<8x8xf32> to vector<8xf32>
    %315 = vector.shape_cast %314 : vector<8xf32> to vector<8x1xf32>
    %cst_106 = arith.constant 9.99999974E-6 : f32
    %316 = vector.broadcast %cst_106 : f32 to vector<8x1xf32>
    %317 = arith.mulf %316, %315 : vector<8x1xf32>
    %318 = arith.addf %313, %317 : vector<8x1xf32>
    %319 = tpu.reciprocal %318 : vector<8x1xf32> -> vector<8x1xf32>
    %320 = vector.broadcast %319 : vector<8x1xf32> to vector<8x8xf32>
    %321 = arith.mulf %311, %320 : vector<8x8xf32>
    %cst_107 = arith.constant dense<0.000000e+00> : vector<8x8xf32>
    %322 = tpu.matmul %321, %300, %cst_107 {dimension_numbers = #tpu.dot_dimension_numbers<[1], [0], [0], [1], [0, 0, 1, 1], [], []>} : vector<8x8xf32>, vector<8x8xf32>, vector<8x8xf32> -> vector<8x8xf32>
    %323 = vector.extract_strided_slice %43 {offsets = [16, 16], sizes = [8, 8], strides = [1, 1]} : vector<32x96xf32> to vector<8x8xf32>
    %324 = vector.extract_strided_slice %43 {offsets = [16, 48], sizes = [8, 8], strides = [1, 1]} : vector<32x96xf32> to vector<8x8xf32>
    %325 = vector.extract_strided_slice %43 {offsets = [16, 80], sizes = [8, 8], strides = [1, 1]} : vector<32x96xf32> to vector<8x8xf32>
    %cst_108 = arith.constant dense<0.000000e+00> : vector<8x8xf32>
    %326 = tpu.matmul %323, %324, %cst_108 {dimension_numbers = #tpu.dot_dimension_numbers<[1], [1], [0], [0], [0, 0, 1, 0], [], []>} : vector<8x8xf32>, vector<8x8xf32>, vector<8x8xf32> -> vector<8x8xf32>
    %cst_109 = arith.constant -9.99999995E+11 : f32
    %327 = vector.broadcast %cst_109 : f32 to vector<8x8xf32>
    %328 = arith.select %270, %327, %326 : vector<8x8xi1>, vector<8x8xf32>
    %cst_110 = arith.constant 0.353553385 : f32
    %329 = vector.broadcast %cst_110 : f32 to vector<8x8xf32>
    %330 = arith.mulf %328, %329 : vector<8x8xf32>
    %cst_111 = arith.constant dense<0xFF800000> : vector<8xf32>
    %331 = vector.multi_reduction <maximumf>, %330, %cst_111 [1] : vector<8x8xf32> to vector<8xf32>
    %332 = vector.shape_cast %331 : vector<8xf32> to vector<8x1xf32>
    %333 = vector.broadcast %332 : vector<8x1xf32> to vector<8x8xf32>
    %334 = arith.subf %330, %333 : vector<8x8xf32>
    %335 = math.exp %334 : vector<8x8xf32>
    %336 = arith.mulf %335, %272 : vector<8x8xf32>
    %cst_112 = arith.constant dense<0.000000e+00> : vector<8xf32>
    %337 = vector.multi_reduction <add>, %336, %cst_112 [1] : vector<8x8xf32> to vector<8xf32>
    %338 = vector.shape_cast %337 : vector<8xf32> to vector<8x1xf32>
    %cst_113 = arith.constant dense<0.000000e+00> : vector<8xf32>
    %339 = vector.multi_reduction <add>, %335, %cst_113 [1] : vector<8x8xf32> to vector<8xf32>
    %340 = vector.shape_cast %339 : vector<8xf32> to vector<8x1xf32>
    %cst_114 = arith.constant 9.99999974E-6 : f32
    %341 = vector.broadcast %cst_114 : f32 to vector<8x1xf32>
    %342 = arith.mulf %341, %340 : vector<8x1xf32>
    %343 = arith.addf %338, %342 : vector<8x1xf32>
    %344 = tpu.reciprocal %343 : vector<8x1xf32> -> vector<8x1xf32>
    %345 = vector.broadcast %344 : vector<8x1xf32> to vector<8x8xf32>
    %346 = arith.mulf %336, %345 : vector<8x8xf32>
    %cst_115 = arith.constant dense<0.000000e+00> : vector<8x8xf32>
    %347 = tpu.matmul %346, %325, %cst_115 {dimension_numbers = #tpu.dot_dimension_numbers<[1], [0], [0], [1], [0, 0, 1, 1], [], []>} : vector<8x8xf32>, vector<8x8xf32>, vector<8x8xf32> -> vector<8x8xf32>
    %348 = vector.extract_strided_slice %43 {offsets = [16, 24], sizes = [8, 8], strides = [1, 1]} : vector<32x96xf32> to vector<8x8xf32>
    %349 = vector.extract_strided_slice %43 {offsets = [16, 56], sizes = [8, 8], strides = [1, 1]} : vector<32x96xf32> to vector<8x8xf32>
    %350 = vector.extract_strided_slice %43 {offsets = [16, 88], sizes = [8, 8], strides = [1, 1]} : vector<32x96xf32> to vector<8x8xf32>
    %cst_116 = arith.constant dense<0.000000e+00> : vector<8x8xf32>
    %351 = tpu.matmul %348, %349, %cst_116 {dimension_numbers = #tpu.dot_dimension_numbers<[1], [1], [0], [0], [0, 0, 1, 0], [], []>} : vector<8x8xf32>, vector<8x8xf32>, vector<8x8xf32> -> vector<8x8xf32>
    %cst_117 = arith.constant -9.99999995E+11 : f32
    %352 = vector.broadcast %cst_117 : f32 to vector<8x8xf32>
    %353 = arith.select %270, %352, %351 : vector<8x8xi1>, vector<8x8xf32>
    %cst_118 = arith.constant 0.353553385 : f32
    %354 = vector.broadcast %cst_118 : f32 to vector<8x8xf32>
    %355 = arith.mulf %353, %354 : vector<8x8xf32>
    %cst_119 = arith.constant dense<0xFF800000> : vector<8xf32>
    %356 = vector.multi_reduction <maximumf>, %355, %cst_119 [1] : vector<8x8xf32> to vector<8xf32>
    %357 = vector.shape_cast %356 : vector<8xf32> to vector<8x1xf32>
    %358 = vector.broadcast %357 : vector<8x1xf32> to vector<8x8xf32>
    %359 = arith.subf %355, %358 : vector<8x8xf32>
    %360 = math.exp %359 : vector<8x8xf32>
    %361 = arith.mulf %360, %272 : vector<8x8xf32>
    %cst_120 = arith.constant dense<0.000000e+00> : vector<8xf32>
    %362 = vector.multi_reduction <add>, %361, %cst_120 [1] : vector<8x8xf32> to vector<8xf32>
    %363 = vector.shape_cast %362 : vector<8xf32> to vector<8x1xf32>
    %cst_121 = arith.constant dense<0.000000e+00> : vector<8xf32>
    %364 = vector.multi_reduction <add>, %360, %cst_121 [1] : vector<8x8xf32> to vector<8xf32>
    %365 = vector.shape_cast %364 : vector<8xf32> to vector<8x1xf32>
    %cst_122 = arith.constant 9.99999974E-6 : f32
    %366 = vector.broadcast %cst_122 : f32 to vector<8x1xf32>
    %367 = arith.mulf %366, %365 : vector<8x1xf32>
    %368 = arith.addf %363, %367 : vector<8x1xf32>
    %369 = tpu.reciprocal %368 : vector<8x1xf32> -> vector<8x1xf32>
    %370 = vector.broadcast %369 : vector<8x1xf32> to vector<8x8xf32>
    %371 = arith.mulf %361, %370 : vector<8x8xf32>
    %cst_123 = arith.constant dense<0.000000e+00> : vector<8x8xf32>
    %372 = tpu.matmul %371, %350, %cst_123 {dimension_numbers = #tpu.dot_dimension_numbers<[1], [0], [0], [1], [0, 0, 1, 1], [], []>} : vector<8x8xf32>, vector<8x8xf32>, vector<8x8xf32> -> vector<8x8xf32>
    %373 = tpu.concatenate %297, %322, %347, %372 in 1 : vector<8x8xf32>, vector<8x8xf32>, vector<8x8xf32>, vector<8x8xf32> -> vector<8x32xf32>
    %374 = vector.extract_strided_slice %46 {offsets = [3, 0, 0], sizes = [1, 1, 8], strides = [1, 1, 1]} : vector<4x1x8xf32> to vector<1x1x8xf32>
    %375 = vector.shape_cast %374 : vector<1x1x8xf32> to vector<1x8xf32>
    %cst_124 = arith.constant 0.000000e+00 : f32
    %376 = vector.broadcast %cst_124 : f32 to vector<1x8xf32>
    %377 = arith.cmpf oeq, %375, %376 : vector<1x8xf32>
    %378 = vector.shape_cast %377 : vector<1x8xi1> to vector<1x8xi1>
    %379 = vector.broadcast %378 : vector<1x8xi1> to vector<8x8xi1>
    %380 = vector.extract_strided_slice %45 {offsets = [3, 0, 0], sizes = [1, 8, 8], strides = [1, 1, 1]} : vector<4x8x8xf32> to vector<1x8x8xf32>
    %381 = vector.shape_cast %380 : vector<1x8x8xf32> to vector<8x8xf32>
    %382 = vector.extract_strided_slice %43 {offsets = [24, 0], sizes = [8, 8], strides = [1, 1]} : vector<32x96xf32> to vector<8x8xf32>
    %383 = vector.extract_strided_slice %43 {offsets = [24, 32], sizes = [8, 8], strides = [1, 1]} : vector<32x96xf32> to vector<8x8xf32>
    %384 = vector.extract_strided_slice %43 {offsets = [24, 64], sizes = [8, 8], strides = [1, 1]} : vector<32x96xf32> to vector<8x8xf32>
    %cst_125 = arith.constant dense<0.000000e+00> : vector<8x8xf32>
    %385 = tpu.matmul %382, %383, %cst_125 {dimension_numbers = #tpu.dot_dimension_numbers<[1], [1], [0], [0], [0, 0, 1, 0], [], []>} : vector<8x8xf32>, vector<8x8xf32>, vector<8x8xf32> -> vector<8x8xf32>
    %cst_126 = arith.constant -9.99999995E+11 : f32
    %386 = vector.broadcast %cst_126 : f32 to vector<8x8xf32>
    %387 = arith.select %379, %386, %385 : vector<8x8xi1>, vector<8x8xf32>
    %cst_127 = arith.constant 0.353553385 : f32
    %388 = vector.broadcast %cst_127 : f32 to vector<8x8xf32>
    %389 = arith.mulf %387, %388 : vector<8x8xf32>
    %cst_128 = arith.constant dense<0xFF800000> : vector<8xf32>
    %390 = vector.multi_reduction <maximumf>, %389, %cst_128 [1] : vector<8x8xf32> to vector<8xf32>
    %391 = vector.shape_cast %390 : vector<8xf32> to vector<8x1xf32>
    %392 = vector.broadcast %391 : vector<8x1xf32> to vector<8x8xf32>
    %393 = arith.subf %389, %392 : vector<8x8xf32>
    %394 = math.exp %393 : vector<8x8xf32>
    %395 = arith.mulf %394, %381 : vector<8x8xf32>
    %cst_129 = arith.constant dense<0.000000e+00> : vector<8xf32>
    %396 = vector.multi_reduction <add>, %395, %cst_129 [1] : vector<8x8xf32> to vector<8xf32>
    %397 = vector.shape_cast %396 : vector<8xf32> to vector<8x1xf32>
    %cst_130 = arith.constant dense<0.000000e+00> : vector<8xf32>
    %398 = vector.multi_reduction <add>, %394, %cst_130 [1] : vector<8x8xf32> to vector<8xf32>
    %399 = vector.shape_cast %398 : vector<8xf32> to vector<8x1xf32>
    %cst_131 = arith.constant 9.99999974E-6 : f32
    %400 = vector.broadcast %cst_131 : f32 to vector<8x1xf32>
    %401 = arith.mulf %400, %399 : vector<8x1xf32>
    %402 = arith.addf %397, %401 : vector<8x1xf32>
    %403 = tpu.reciprocal %402 : vector<8x1xf32> -> vector<8x1xf32>
    %404 = vector.broadcast %403 : vector<8x1xf32> to vector<8x8xf32>
    %405 = arith.mulf %395, %404 : vector<8x8xf32>
    %cst_132 = arith.constant dense<0.000000e+00> : vector<8x8xf32>
    %406 = tpu.matmul %405, %384, %cst_132 {dimension_numbers = #tpu.dot_dimension_numbers<[1], [0], [0], [1], [0, 0, 1, 1], [], []>} : vector<8x8xf32>, vector<8x8xf32>, vector<8x8xf32> -> vector<8x8xf32>
    %407 = vector.extract_strided_slice %43 {offsets = [24, 8], sizes = [8, 8], strides = [1, 1]} : vector<32x96xf32> to vector<8x8xf32>
    %408 = vector.extract_strided_slice %43 {offsets = [24, 40], sizes = [8, 8], strides = [1, 1]} : vector<32x96xf32> to vector<8x8xf32>
    %409 = vector.extract_strided_slice %43 {offsets = [24, 72], sizes = [8, 8], strides = [1, 1]} : vector<32x96xf32> to vector<8x8xf32>
    %cst_133 = arith.constant dense<0.000000e+00> : vector<8x8xf32>
    %410 = tpu.matmul %407, %408, %cst_133 {dimension_numbers = #tpu.dot_dimension_numbers<[1], [1], [0], [0], [0, 0, 1, 0], [], []>} : vector<8x8xf32>, vector<8x8xf32>, vector<8x8xf32> -> vector<8x8xf32>
    %cst_134 = arith.constant -9.99999995E+11 : f32
    %411 = vector.broadcast %cst_134 : f32 to vector<8x8xf32>
    %412 = arith.select %379, %411, %410 : vector<8x8xi1>, vector<8x8xf32>
    %cst_135 = arith.constant 0.353553385 : f32
    %413 = vector.broadcast %cst_135 : f32 to vector<8x8xf32>
    %414 = arith.mulf %412, %413 : vector<8x8xf32>
    %cst_136 = arith.constant dense<0xFF800000> : vector<8xf32>
    %415 = vector.multi_reduction <maximumf>, %414, %cst_136 [1] : vector<8x8xf32> to vector<8xf32>
    %416 = vector.shape_cast %415 : vector<8xf32> to vector<8x1xf32>
    %417 = vector.broadcast %416 : vector<8x1xf32> to vector<8x8xf32>
    %418 = arith.subf %414, %417 : vector<8x8xf32>
    %419 = math.exp %418 : vector<8x8xf32>
    %420 = arith.mulf %419, %381 : vector<8x8xf32>
    %cst_137 = arith.constant dense<0.000000e+00> : vector<8xf32>
    %421 = vector.multi_reduction <add>, %420, %cst_137 [1] : vector<8x8xf32> to vector<8xf32>
    %422 = vector.shape_cast %421 : vector<8xf32> to vector<8x1xf32>
    %cst_138 = arith.constant dense<0.000000e+00> : vector<8xf32>
    %423 = vector.multi_reduction <add>, %419, %cst_138 [1] : vector<8x8xf32> to vector<8xf32>
    %424 = vector.shape_cast %423 : vector<8xf32> to vector<8x1xf32>
    %cst_139 = arith.constant 9.99999974E-6 : f32
    %425 = vector.broadcast %cst_139 : f32 to vector<8x1xf32>
    %426 = arith.mulf %425, %424 : vector<8x1xf32>
    %427 = arith.addf %422, %426 : vector<8x1xf32>
    %428 = tpu.reciprocal %427 : vector<8x1xf32> -> vector<8x1xf32>
    %429 = vector.broadcast %428 : vector<8x1xf32> to vector<8x8xf32>
    %430 = arith.mulf %420, %429 : vector<8x8xf32>
    %cst_140 = arith.constant dense<0.000000e+00> : vector<8x8xf32>
    %431 = tpu.matmul %430, %409, %cst_140 {dimension_numbers = #tpu.dot_dimension_numbers<[1], [0], [0], [1], [0, 0, 1, 1], [], []>} : vector<8x8xf32>, vector<8x8xf32>, vector<8x8xf32> -> vector<8x8xf32>
    %432 = vector.extract_strided_slice %43 {offsets = [24, 16], sizes = [8, 8], strides = [1, 1]} : vector<32x96xf32> to vector<8x8xf32>
    %433 = vector.extract_strided_slice %43 {offsets = [24, 48], sizes = [8, 8], strides = [1, 1]} : vector<32x96xf32> to vector<8x8xf32>
    %434 = vector.extract_strided_slice %43 {offsets = [24, 80], sizes = [8, 8], strides = [1, 1]} : vector<32x96xf32> to vector<8x8xf32>
    %cst_141 = arith.constant dense<0.000000e+00> : vector<8x8xf32>
    %435 = tpu.matmul %432, %433, %cst_141 {dimension_numbers = #tpu.dot_dimension_numbers<[1], [1], [0], [0], [0, 0, 1, 0], [], []>} : vector<8x8xf32>, vector<8x8xf32>, vector<8x8xf32> -> vector<8x8xf32>
    %cst_142 = arith.constant -9.99999995E+11 : f32
    %436 = vector.broadcast %cst_142 : f32 to vector<8x8xf32>
    %437 = arith.select %379, %436, %435 : vector<8x8xi1>, vector<8x8xf32>
    %cst_143 = arith.constant 0.353553385 : f32
    %438 = vector.broadcast %cst_143 : f32 to vector<8x8xf32>
    %439 = arith.mulf %437, %438 : vector<8x8xf32>
    %cst_144 = arith.constant dense<0xFF800000> : vector<8xf32>
    %440 = vector.multi_reduction <maximumf>, %439, %cst_144 [1] : vector<8x8xf32> to vector<8xf32>
    %441 = vector.shape_cast %440 : vector<8xf32> to vector<8x1xf32>
    %442 = vector.broadcast %441 : vector<8x1xf32> to vector<8x8xf32>
    %443 = arith.subf %439, %442 : vector<8x8xf32>
    %444 = math.exp %443 : vector<8x8xf32>
    %445 = arith.mulf %444, %381 : vector<8x8xf32>
    %cst_145 = arith.constant dense<0.000000e+00> : vector<8xf32>
    %446 = vector.multi_reduction <add>, %445, %cst_145 [1] : vector<8x8xf32> to vector<8xf32>
    %447 = vector.shape_cast %446 : vector<8xf32> to vector<8x1xf32>
    %cst_146 = arith.constant dense<0.000000e+00> : vector<8xf32>
    %448 = vector.multi_reduction <add>, %444, %cst_146 [1] : vector<8x8xf32> to vector<8xf32>
    %449 = vector.shape_cast %448 : vector<8xf32> to vector<8x1xf32>
    %cst_147 = arith.constant 9.99999974E-6 : f32
    %450 = vector.broadcast %cst_147 : f32 to vector<8x1xf32>
    %451 = arith.mulf %450, %449 : vector<8x1xf32>
    %452 = arith.addf %447, %451 : vector<8x1xf32>
    %453 = tpu.reciprocal %452 : vector<8x1xf32> -> vector<8x1xf32>
    %454 = vector.broadcast %453 : vector<8x1xf32> to vector<8x8xf32>
    %455 = arith.mulf %445, %454 : vector<8x8xf32>
    %cst_148 = arith.constant dense<0.000000e+00> : vector<8x8xf32>
    %456 = tpu.matmul %455, %434, %cst_148 {dimension_numbers = #tpu.dot_dimension_numbers<[1], [0], [0], [1], [0, 0, 1, 1], [], []>} : vector<8x8xf32>, vector<8x8xf32>, vector<8x8xf32> -> vector<8x8xf32>
    %457 = vector.extract_strided_slice %43 {offsets = [24, 24], sizes = [8, 8], strides = [1, 1]} : vector<32x96xf32> to vector<8x8xf32>
    %458 = vector.extract_strided_slice %43 {offsets = [24, 56], sizes = [8, 8], strides = [1, 1]} : vector<32x96xf32> to vector<8x8xf32>
    %459 = vector.extract_strided_slice %43 {offsets = [24, 88], sizes = [8, 8], strides = [1, 1]} : vector<32x96xf32> to vector<8x8xf32>
    %cst_149 = arith.constant dense<0.000000e+00> : vector<8x8xf32>
    %460 = tpu.matmul %457, %458, %cst_149 {dimension_numbers = #tpu.dot_dimension_numbers<[1], [1], [0], [0], [0, 0, 1, 0], [], []>} : vector<8x8xf32>, vector<8x8xf32>, vector<8x8xf32> -> vector<8x8xf32>
    %cst_150 = arith.constant -9.99999995E+11 : f32
    %461 = vector.broadcast %cst_150 : f32 to vector<8x8xf32>
    %462 = arith.select %379, %461, %460 : vector<8x8xi1>, vector<8x8xf32>
    %cst_151 = arith.constant 0.353553385 : f32
    %463 = vector.broadcast %cst_151 : f32 to vector<8x8xf32>
    %464 = arith.mulf %462, %463 : vector<8x8xf32>
    %cst_152 = arith.constant dense<0xFF800000> : vector<8xf32>
    %465 = vector.multi_reduction <maximumf>, %464, %cst_152 [1] : vector<8x8xf32> to vector<8xf32>
    %466 = vector.shape_cast %465 : vector<8xf32> to vector<8x1xf32>
    %467 = vector.broadcast %466 : vector<8x1xf32> to vector<8x8xf32>
    %468 = arith.subf %464, %467 : vector<8x8xf32>
    %469 = math.exp %468 : vector<8x8xf32>
    %470 = arith.mulf %469, %381 : vector<8x8xf32>
    %cst_153 = arith.constant dense<0.000000e+00> : vector<8xf32>
    %471 = vector.multi_reduction <add>, %470, %cst_153 [1] : vector<8x8xf32> to vector<8xf32>
    %472 = vector.shape_cast %471 : vector<8xf32> to vector<8x1xf32>
    %cst_154 = arith.constant dense<0.000000e+00> : vector<8xf32>
    %473 = vector.multi_reduction <add>, %469, %cst_154 [1] : vector<8x8xf32> to vector<8xf32>
    %474 = vector.shape_cast %473 : vector<8xf32> to vector<8x1xf32>
    %cst_155 = arith.constant 9.99999974E-6 : f32
    %475 = vector.broadcast %cst_155 : f32 to vector<8x1xf32>
    %476 = arith.mulf %475, %474 : vector<8x1xf32>
    %477 = arith.addf %472, %476 : vector<8x1xf32>
    %478 = tpu.reciprocal %477 : vector<8x1xf32> -> vector<8x1xf32>
    %479 = vector.broadcast %478 : vector<8x1xf32> to vector<8x8xf32>
    %480 = arith.mulf %470, %479 : vector<8x8xf32>
    %cst_156 = arith.constant dense<0.000000e+00> : vector<8x8xf32>
    %481 = tpu.matmul %480, %459, %cst_156 {dimension_numbers = #tpu.dot_dimension_numbers<[1], [0], [0], [1], [0, 0, 1, 1], [], []>} : vector<8x8xf32>, vector<8x8xf32>, vector<8x8xf32> -> vector<8x8xf32>
    %482 = tpu.concatenate %406, %431, %456, %481 in 1 : vector<8x8xf32>, vector<8x8xf32>, vector<8x8xf32>, vector<8x8xf32> -> vector<8x32xf32>
    %483 = tpu.concatenate %155, %264, %373, %482 in 0 : vector<8x32xf32>, vector<8x32xf32>, vector<8x32xf32>, vector<8x32xf32> -> vector<32x32xf32>
    %cst_157 = arith.constant dense<0.000000e+00> : vector<32x32xf32>
    %484 = tpu.matmul %483, %18, %cst_157 {dimension_numbers = #tpu.dot_dimension_numbers<[1], [0], [0], [1], [0, 0, 1, 1], [], []>} : vector<32x32xf32>, vector<32x32xf32>, vector<32x32xf32> -> vector<32x32xf32>
    %485 = vector.broadcast %21 : vector<1x32xf32> to vector<32x32xf32>
    %486 = arith.addf %484, %485 : vector<32x32xf32>
    %cst_158 = arith.constant 3.000000e+01 : f32
    %487 = vector.broadcast %cst_158 : f32 to vector<32x32xf32>
    %488 = arith.minimumf %486, %487 : vector<32x32xf32>
    %489 = math.exp %488 : vector<32x32xf32>
    %cst_159 = arith.constant 2.000000e+00 : f32
    %490 = vector.broadcast %cst_159 : f32 to vector<32x32xf32>
    %491 = arith.addf %489, %490 : vector<32x32xf32>
    %492 = arith.mulf %489, %491 : vector<32x32xf32>
    %cst_160 = arith.constant 2.000000e+00 : f32
    %493 = vector.broadcast %cst_160 : f32 to vector<32x32xf32>
    %494 = arith.addf %492, %493 : vector<32x32xf32>
    %495 = tpu.reciprocal %494 : vector<32x32xf32> -> vector<32x32xf32>
    %496 = arith.mulf %492, %495 : vector<32x32xf32>
    %497 = arith.mulf %486, %496 : vector<32x32xf32>
    %498 = arith.addf %40, %497 : vector<32x32xf32>
    %cst_161 = arith.constant dense<0.000000e+00> : vector<32xf32>
    %499 = vector.multi_reduction <add>, %498, %cst_161 [1] : vector<32x32xf32> to vector<32xf32>
    %500 = vector.shape_cast %499 : vector<32xf32> to vector<32x1xf32>
    %cst_162 = arith.constant 3.200000e+01 : f32
    %501 = vector.broadcast %cst_162 : f32 to vector<32x1xf32>
    %502 = arith.divf %500, %501 : vector<32x1xf32>
    %503 = vector.broadcast %502 : vector<32x1xf32> to vector<32x32xf32>
    %504 = arith.subf %498, %503 : vector<32x32xf32>
    %505 = arith.mulf %504, %504 : vector<32x32xf32>
    %cst_163 = arith.constant dense<0.000000e+00> : vector<32xf32>
    %506 = vector.multi_reduction <add>, %505, %cst_163 [1] : vector<32x32xf32> to vector<32xf32>
    %507 = vector.shape_cast %506 : vector<32xf32> to vector<32x1xf32>
    %cst_164 = arith.constant 0.0322580636 : f32
    %508 = vector.broadcast %cst_164 : f32 to vector<32x1xf32>
    %509 = arith.mulf %507, %508 : vector<32x1xf32>
    %510 = math.sqrt %509 : vector<32x1xf32>
    %cst_165 = arith.constant 9.99999997E-7 : f32
    %511 = vector.broadcast %cst_165 : f32 to vector<32x1xf32>
    %512 = arith.addf %510, %511 : vector<32x1xf32>
    %513 = tpu.reciprocal %512 : vector<32x1xf32> -> vector<32x1xf32>
    %514 = vector.broadcast %513 : vector<32x1xf32> to vector<32x32xf32>
    %515 = arith.mulf %504, %514 : vector<32x32xf32>
    %516 = arith.mulf %6, %515 : vector<32x32xf32>
    %517 = arith.addf %516, %9 : vector<32x32xf32>
    %c2_i32 = arith.constant 2 : i32
    %518 = arith.muli %arg1, %c2_i32 : i32
    %c0_i32_166 = arith.constant 0 : i32
    %519 = arith.addi %518, %c0_i32_166 : i32
    %520 = arith.index_cast %519 : i32 to index
    %c0_167 = arith.constant 0 : index
    %c0_168 = arith.constant 0 : index
    %521 = vector.load %arg11[%520, %c0_167, %c0_168] : memref<4x32x32xf32, #tpu.memory_space<vmem>>, vector<1x32x32xf32>
    %522 = vector.shape_cast %521 : vector<1x32x32xf32> to vector<32x32xf32>
    %cst_169 = arith.constant dense<0.000000e+00> : vector<32x32xf32>
    %523 = tpu.matmul %517, %522, %cst_169 {dimension_numbers = #tpu.dot_dimension_numbers<[1], [0], [0], [1], [0, 0, 1, 1], [], []>} : vector<32x32xf32>, vector<32x32xf32>, vector<32x32xf32> -> vector<32x32xf32>
    %524 = arith.index_cast %519 : i32 to index
    %c0_170 = arith.constant 0 : index
    %c0_171 = arith.constant 0 : index
    %525 = vector.load %arg12[%524, %c0_170, %c0_171] : memref<4x1x32xf32, #tpu.memory_space<vmem>>, vector<1x1x32xf32>
    %526 = vector.shape_cast %525 : vector<1x1x32xf32> to vector<1x32xf32>
    %527 = vector.broadcast %526 : vector<1x32xf32> to vector<32x32xf32>
    %528 = arith.addf %523, %527 : vector<32x32xf32>
    %cst_172 = arith.constant 3.000000e+01 : f32
    %529 = vector.broadcast %cst_172 : f32 to vector<32x32xf32>
    %530 = arith.minimumf %528, %529 : vector<32x32xf32>
    %531 = math.exp %530 : vector<32x32xf32>
    %cst_173 = arith.constant 2.000000e+00 : f32
    %532 = vector.broadcast %cst_173 : f32 to vector<32x32xf32>
    %533 = arith.addf %531, %532 : vector<32x32xf32>
    %534 = arith.mulf %531, %533 : vector<32x32xf32>
    %cst_174 = arith.constant 2.000000e+00 : f32
    %535 = vector.broadcast %cst_174 : f32 to vector<32x32xf32>
    %536 = arith.addf %534, %535 : vector<32x32xf32>
    %537 = tpu.reciprocal %536 : vector<32x32xf32> -> vector<32x32xf32>
    %538 = arith.mulf %534, %537 : vector<32x32xf32>
    %539 = arith.mulf %528, %538 : vector<32x32xf32>
    %c2_i32_175 = arith.constant 2 : i32
    %540 = arith.muli %arg1, %c2_i32_175 : i32
    %c1_i32 = arith.constant 1 : i32
    %541 = arith.addi %540, %c1_i32 : i32
    %542 = arith.index_cast %541 : i32 to index
    %c0_176 = arith.constant 0 : index
    %c0_177 = arith.constant 0 : index
    %543 = vector.load %arg11[%542, %c0_176, %c0_177] : memref<4x32x32xf32, #tpu.memory_space<vmem>>, vector<1x32x32xf32>
    %544 = vector.shape_cast %543 : vector<1x32x32xf32> to vector<32x32xf32>
    %cst_178 = arith.constant dense<0.000000e+00> : vector<32x32xf32>
    %545 = tpu.matmul %539, %544, %cst_178 {dimension_numbers = #tpu.dot_dimension_numbers<[1], [0], [0], [1], [0, 0, 1, 1], [], []>} : vector<32x32xf32>, vector<32x32xf32>, vector<32x32xf32> -> vector<32x32xf32>
    %546 = arith.index_cast %541 : i32 to index
    %c0_179 = arith.constant 0 : index
    %c0_180 = arith.constant 0 : index
    %547 = vector.load %arg12[%546, %c0_179, %c0_180] : memref<4x1x32xf32, #tpu.memory_space<vmem>>, vector<1x1x32xf32>
    %548 = vector.shape_cast %547 : vector<1x1x32xf32> to vector<1x32xf32>
    %549 = vector.broadcast %548 : vector<1x32xf32> to vector<32x32xf32>
    %550 = arith.addf %545, %549 : vector<32x32xf32>
    %cst_181 = arith.constant 3.000000e+01 : f32
    %551 = vector.broadcast %cst_181 : f32 to vector<32x32xf32>
    %552 = arith.minimumf %550, %551 : vector<32x32xf32>
    %553 = math.exp %552 : vector<32x32xf32>
    %cst_182 = arith.constant 2.000000e+00 : f32
    %554 = vector.broadcast %cst_182 : f32 to vector<32x32xf32>
    %555 = arith.addf %553, %554 : vector<32x32xf32>
    %556 = arith.mulf %553, %555 : vector<32x32xf32>
    %cst_183 = arith.constant 2.000000e+00 : f32
    %557 = vector.broadcast %cst_183 : f32 to vector<32x32xf32>
    %558 = arith.addf %556, %557 : vector<32x32xf32>
    %559 = tpu.reciprocal %558 : vector<32x32xf32> -> vector<32x32xf32>
    %560 = arith.mulf %556, %559 : vector<32x32xf32>
    %561 = arith.mulf %550, %560 : vector<32x32xf32>
    %562 = arith.addf %517, %561 : vector<32x32xf32>
    %c0_184 = arith.constant 0 : index
    %c0_185 = arith.constant 0 : index
    %563 = vector.load %arg14[%c0_184, %c0_185] : memref<32x32xf32, #tpu.memory_space<vmem>>, vector<32x32xf32>
    tpu.vector_store %arg14[%c0_184, %c0_185], %562 {strides = array<i32>} : memref<32x32xf32, #tpu.memory_space<vmem>>, vector<32x32xf32>,
    %c1_i32_186 = arith.constant 1 : i32
    %564 = arith.cmpi eq, %arg1, %c1_i32_186 : i32
    %565 = arith.extui %564 : i1 to i32
    %c0_i32_187 = arith.constant 0 : i32
    %566 = arith.cmpi ne, %565, %c0_i32_187 : i32
    scf.if %566 {
      %567 = vector.extract_strided_slice %562 {offsets = [0, 0], sizes = [8, 32], strides = [1, 1]} : vector<32x32xf32> to vector<8x32xf32>
      %c0_188 = arith.constant 0 : index
      %c0_189 = arith.constant 0 : index
      %c0_190 = arith.constant 0 : index
      %568 = vector.load %arg13[%c0_188, %c0_189, %c0_190] : memref<4x8x32xf32, #tpu.memory_space<vmem>>, vector<1x8x32xf32>
      %569 = vector.shape_cast %568 : vector<1x8x32xf32> to vector<8x32xf32>
      %570 = vector.shape_cast %567 : vector<8x32xf32> to vector<1x8x32xf32>
      tpu.vector_store %arg13[%c0_188, %c0_189, %c0_190], %570 {strides = array<i32>} : memref<4x8x32xf32, #tpu.memory_space<vmem>>, vector<1x8x32xf32>,
      %571 = vector.extract_strided_slice %562 {offsets = [8, 0], sizes = [8, 32], strides = [1, 1]} : vector<32x32xf32> to vector<8x32xf32>
      %c1 = arith.constant 1 : index
      %c0_191 = arith.constant 0 : index
      %c0_192 = arith.constant 0 : index
      %572 = vector.load %arg13[%c1, %c0_191, %c0_192] : memref<4x8x32xf32, #tpu.memory_space<vmem>>, vector<1x8x32xf32>
      %573 = vector.shape_cast %572 : vector<1x8x32xf32> to vector<8x32xf32>
      %574 = vector.shape_cast %571 : vector<8x32xf32> to vector<1x8x32xf32>
      tpu.vector_store %arg13[%c1, %c0_191, %c0_192], %574 {strides = array<i32>} : memref<4x8x32xf32, #tpu.memory_space<vmem>>, vector<1x8x32xf32>,
      %575 = vector.extract_strided_slice %562 {offsets = [16, 0], sizes = [8, 32], strides = [1, 1]} : vector<32x32xf32> to vector<8x32xf32>
      %c2 = arith.constant 2 : index
      %c0_193 = arith.constant 0 : index
      %c0_194 = arith.constant 0 : index
      %576 = vector.load %arg13[%c2, %c0_193, %c0_194] : memref<4x8x32xf32, #tpu.memory_space<vmem>>, vector<1x8x32xf32>
      %577 = vector.shape_cast %576 : vector<1x8x32xf32> to vector<8x32xf32>
      %578 = vector.shape_cast %575 : vector<8x32xf32> to vector<1x8x32xf32>
      tpu.vector_store %arg13[%c2, %c0_193, %c0_194], %578 {strides = array<i32>} : memref<4x8x32xf32, #tpu.memory_space<vmem>>, vector<1x8x32xf32>,
      %579 = vector.extract_strided_slice %562 {offsets = [24, 0], sizes = [8, 32], strides = [1, 1]} : vector<32x32xf32> to vector<8x32xf32>
      %c3 = arith.constant 3 : index
      %c0_195 = arith.constant 0 : index
      %c0_196 = arith.constant 0 : index
      %580 = vector.load %arg13[%c3, %c0_195, %c0_196] : memref<4x8x32xf32, #tpu.memory_space<vmem>>, vector<1x8x32xf32>
      %581 = vector.shape_cast %580 : vector<1x8x32xf32> to vector<8x32xf32>
      %582 = vector.shape_cast %579 : vector<8x32xf32> to vector<1x8x32xf32>
      tpu.vector_store %arg13[%c3, %c0_195, %c0_196], %582 {strides = array<i32>} : memref<4x8x32xf32, #tpu.memory_space<vmem>>, vector<1x8x32xf32>,
    } else {
    }
    return
  }
  func.func @transform_0(%arg0: i32, %arg1: i32) -> (i32, i32, i32) {
    %c0_i32 = arith.constant 0 : i32
    %c0_i32_0 = arith.constant 0 : i32
    %c0_i32_1 = arith.constant 0 : i32
    return %arg0, %c0_i32, %c0_i32_0 : i32, i32, i32
  }
  func.func @transform_1(%arg0: i32, %arg1: i32) -> (i32, i32, i32) {
    %c0_i32 = arith.constant 0 : i32
    %c0_i32_0 = arith.constant 0 : i32
    %c0_i32_1 = arith.constant 0 : i32
    return %arg0, %c0_i32, %c0_i32_0 : i32, i32, i32
  }
  func.func @transform_2(%arg0: i32, %arg1: i32) -> (i32, i32, i32) {
    %c0_i32 = arith.constant 0 : i32
    %c0_i32_0 = arith.constant 0 : i32
    %c0_i32_1 = arith.constant 0 : i32
    return %arg0, %c0_i32, %c0_i32_0 : i32, i32, i32
  }
  func.func @transform_3(%arg0: i32, %arg1: i32) -> (i32, i32) {
    %c0_i32 = arith.constant 0 : i32
    %c0_i32_0 = arith.constant 0 : i32
    %c0_i32_1 = arith.constant 0 : i32
    return %c0_i32, %c0_i32_0 : i32, i32
  }
  func.func @transform_4(%arg0: i32, %arg1: i32) -> (i32, i32) {
    %c0_i32 = arith.constant 0 : i32
    %c0_i32_0 = arith.constant 0 : i32
    %c0_i32_1 = arith.constant 0 : i32
    return %c0_i32, %c0_i32_0 : i32, i32
  }
  func.func @transform_5(%arg0: i32, %arg1: i32) -> (i32, i32, i32) {
    %c0_i32 = arith.constant 0 : i32
    %c0_i32_0 = arith.constant 0 : i32
    %c0_i32_1 = arith.constant 0 : i32
    %c0_i32_2 = arith.constant 0 : i32
    return %c0_i32, %c0_i32_0, %c0_i32_1 : i32, i32, i32
  }
  func.func @transform_6(%arg0: i32, %arg1: i32) -> (i32, i32, i32) {
    %c0_i32 = arith.constant 0 : i32
    %c0_i32_0 = arith.constant 0 : i32
    %c0_i32_1 = arith.constant 0 : i32
    %c0_i32_2 = arith.constant 0 : i32
    return %c0_i32, %c0_i32_0, %c0_i32_1 : i32, i32, i32
  }
  func.func @transform_7(%arg0: i32, %arg1: i32) -> (i32, i32, i32) {
    %c0_i32 = arith.constant 0 : i32
    %c0_i32_0 = arith.constant 0 : i32
    %c0_i32_1 = arith.constant 0 : i32
    %c0_i32_2 = arith.constant 0 : i32
    return %c0_i32, %c0_i32_0, %c0_i32_1 : i32, i32, i32
  }
  func.func @transform_8(%arg0: i32, %arg1: i32) -> (i32, i32, i32) {
    %c0_i32 = arith.constant 0 : i32
    %c0_i32_0 = arith.constant 0 : i32
    %c0_i32_1 = arith.constant 0 : i32
    %c0_i32_2 = arith.constant 0 : i32
    return %c0_i32, %c0_i32_0, %c0_i32_1 : i32, i32, i32
  }
  func.func @transform_9(%arg0: i32, %arg1: i32) -> (i32, i32, i32) {
    %c0_i32 = arith.constant 0 : i32
    %c0_i32_0 = arith.constant 0 : i32
    %c0_i32_1 = arith.constant 0 : i32
    %c0_i32_2 = arith.constant 0 : i32
    return %c0_i32, %c0_i32_0, %c0_i32_1 : i32, i32, i32
  }
  func.func @transform_10(%arg0: i32, %arg1: i32) -> (i32, i32, i32) {
    %c0_i32 = arith.constant 0 : i32
    %c0_i32_0 = arith.constant 0 : i32
    %c0_i32_1 = arith.constant 0 : i32
    %c0_i32_2 = arith.constant 0 : i32
    return %c0_i32, %c0_i32_0, %c0_i32_1 : i32, i32, i32
  }
  func.func @transform_11(%arg0: i32, %arg1: i32) -> (i32, i32, i32) {
    %c0_i32 = arith.constant 0 : i32
    %c0_i32_0 = arith.constant 0 : i32
    %c0_i32_1 = arith.constant 0 : i32
    return %arg0, %c0_i32, %c0_i32_0 : i32, i32, i32
  }
}

</mosaic_0001>

<bundles_post_ra>
// kernel: neg.1
= control target key start
LH: loop header
LB: loop body
LE: loop exit
PB: predicated region body
PF: predicated region fallthrough
CT: control target
= control target key end

     0   :  { %s72_s0 = inlined_call_operand.vmem [shape: f32[4,8,8], index: 0, kind: input, shape index: {}]   ;;  %s73_s1 = inlined_call_operand.vmem [shape: f32[4,8,8], index: 1, kind: output, shape index: {}]  }
   0x1   :  { %v2_v0 = vld [vmem:[%s72_s0] sm:$0xff]  ;;  %v32_v1 = vld [vmem:[%s72_s0 + $0x8] sm:$0xff]  ;;  %v34_v2 = vld [vmem:[%s72_s0 + $0x10] sm:$0xff] }
   0x2   :  { %v5_v3 = vxor.u32 2147483648, %v2_v0  ;;  %v12_v4 = vxor.u32 2147483648, %v32_v1  ;;  %v20_v5 = vxor.u32 2147483648, %v34_v2  ;;  %v36_v6 = vld [vmem:[%s72_s0 + $0x18] sm:$0xff] }
   0x3   :  { %v28_v7 = vxor.u32 2147483648, %v36_v6 }
   0x4   :  { %7 = vst [vmem:[%s73_s1] sm:$0xff] %v5_v3  ;;  %33 = vst [vmem:[%s73_s1 + $0x8] sm:$0xff] %v12_v4 }
   0x5   :  { %35 = vst [vmem:[%s73_s1 + $0x10] sm:$0xff] %v20_v5  ;;  %37 = vst [vmem:[%s73_s1 + $0x18] sm:$0xff] %v28_v7 }

// kernel: encoder_forward.1
= control target key start
LH: loop header
LB: loop body
LE: loop exit
PB: predicated region body
PF: predicated region fallthrough
CT: control target
= control target key end

     0   :  { %16 = vsyncpa [#allocation4], 0  ;;  %s4943_s17 = smov 0   ;;  %s4945_s18 = smov 0   ;;  %s5712_s0 = inlined_call_operand.vmem [shape: f32[4,8,32], index: 0, kind: input, shape index: {}]   ;;  %s5713_s1 = inlined_call_operand.vmem [shape: bf16[4,8,8], index: 1, kind: input, shape index: {}]   ;;  %s5714_s2 = inlined_call_operand.vmem [shape: f32[4,1,8], index: 2, kind: input, shape index: {}]   ;;  %s5715_s3 = inlined_call_operand.vmem [shape: f32[1,32], index: 3, kind: input, shape index: {}]   ;;  %s5716_s4 = inlined_call_operand.vmem [shape: f32[1,32], index: 4, kind: input, shape index: {}]   ;;  %s5717_s5 = inlined_call_operand.vmem [shape: f32[2,32,96], index: 5, kind: input, shape index: {}]   ;;  %s5718_s6 = inlined_call_operand.vmem [shape: f32[2,1,96], index: 6, kind: input, shape index: {}]   ;;  %s5719_s7 = inlined_call_operand.vmem [shape: f32[2,32,32], index: 7, kind: input, shape index: {}]   ;;  %s5720_s8 = inlined_call_operand.vmem [shape: f32[2,1,32], index: 8, kind: input, shape index: {}]   ;;  %s5721_s9 = inlined_call_operand.vmem [shape: f32[4,32,32], index: 9, kind: input, shape index: {}]   ;;  %s5722_s10 = inlined_call_operand.vmem [shape: f32[4,1,32], index: 10, kind: input, shape index: {}]   ;;  %s5723_s11 = inlined_call_operand.hbm [shape: f32[4,8,32], index: 11, kind: output, shape index: {}]  }
   0x1   :  { %s4947_s19 = smov 0  }
   0x2 LB: > { %s4198_s20 = sadd.s32 4294967295, %s4862_s19   ;;  %s31_s21 = sadd.s32 1, %s4858_s18  ;;  %s4862_s19 = sphi %s4947_s19, %s22_s19   ;;  %s4858_s18 = sphi %s4945_s18, %s5734_s18   ;;  %s4854_s17 = sphi %s4943_s17, %s5733_s17  }
   0x3   : > { %p32_p0 = scmp.ge.s32.totalorder %s31_s21, 2  ;;  %p4203_p1 = scmp.ge.s32.totalorder %s4862_s19, 1 }
   0x4   : > { %p372_p2 = scmp.lt.s32.totalorder %s4862_s19, 3 }
   0x5   : > { %s5736_s21 = smov (%p32_p0, %s31_s21), 0 }
   0x6   : > { %p373_p3 = pnand %p4203_p1, %p372_p2 }
   0x7   : > { %p4204_p4 = scmp.ne.s32.totalorder (!%p373_p3), %s4854_s17, 0 }
   0x8   : > { %376 = sbr.rel (%p373_p3) target bundleno = 3189 (0xc75), region = 64 }
   0xd   : > { %437 = sbr.rel (%p4204_p4) target bundleno = 21 (0x15), region = 68 }
  0x12   : > { %v438_v0 = vld [vmem:[%s5712_s0] sm:$0xff]  ;;  %vm439_vm0 = vcmask 261120   ;;  %v4205_v1 = vld [vmem:[%s5712_s0 + $0x8] sm:$0xff]  ;;  %v4206_v2 = vld [vmem:[%s5712_s0 + $0x10] sm:$0xff] }
  0x13   : > { %440 = vst.msk [vmem:[#allocation2] sm:$0xff] %vm439_vm0, %v438_v0  ;;  %443 = vst.msk [vmem:[#allocation2 + $0x8] sm:$0xff] %vm439_vm0, %v4205_v1  ;;  %v4207_v3 = vld [vmem:[%s5712_s0 + $0x18] sm:$0xff] }
  0x14   : > { %446 = vst.msk [vmem:[#allocation2 + $0x10] sm:$0xff] %vm439_vm0, %v4206_v2  ;;  %449 = vst.msk [vmem:[#allocation2 + $0x18] sm:$0xff] %vm439_vm0, %v4207_v3 }
  0x15 PF: > { %vm483_vm1 = vcmask 261120   ;;  %s4210_s30 = sshll.u32 %s4854_s17, 5  ;;  %v4992_v43 = vld [vmem:[%s5715_s3] ss:$0 sm:$0xff]  ;;  %v4864_v62 = vmov 0.0   ;;  %vm4865_vm6 = vmmov 0   ;;  %s474_s26 = scalar_lea.vmem %s5718_s6, %s4854_s17 }
  0x16   : > { %s469_s14 = scalar_lea.vmem %s5717_s5, %s4210_s30  ;;  %v4997_v45 = vld [vmem:[%s5716_s4] ss:$0 sm:$0xff]  ;;  %4415 = vmatprep.subr.mxu1 %v4864_v62  ;;  %4417 = vmatprep.mubr.msk.f32.mxu1 %vm4865_vm6, %v4864_v62  ;;  %s4866_s27 = smov 96   ;;  %vm698_vm11 = vcmask 64512  }
  0x17   : > { %v473_v18 = vld [vmem:[%s469_s14 + $0x18] sm:$0xff]  ;;  %v472_v19 = vld [vmem:[%s469_s14 + $0x10] sm:$0xff]  ;;  %v471_v20 = vld [vmem:[%s469_s14 + $0x8] sm:$0xff]  ;;  %s4869_s15 = smov 88   ;;  %s4870_s16 = smov 112  }
  0x18   : > { %4401 = vmatprep.subr.mxu0 %v473_v18  ;;  %v470_v21 = vld [vmem:[%s469_s14] sm:$0xff]  ;;  %s4868_s14 = smov 64   ;;  %s4871_s22 = smov 120  }
  0x19   : > { %4402 = vmatpush3.msra.mxu0 %v473_v18  ;;  %s4872_s23 = smov 80   ;;  %s4873_s24 = smov 104  }
  0x1a   : > { %v450_v4 = vld [vmem:[#allocation2] sm:$0xff]  ;;  %v451_v5 = vld [vmem:[#allocation2 + $0x8] sm:$0xff]  ;;  %4403 = vmatprep.subr.mxu0 %v472_v19  ;;  %s4874_s25 = smov 72   ;;  %s4877_s28 = smov 40  }
  0x1b   : > { %v484_v6 = vsel %vm483_vm1, %v450_v4, 0.0  ;;  %v487_v7 = vsel %vm483_vm1, %v451_v5, 0.0  ;;  %4404 = vmatpush3.msra.mxu0 %v472_v19  ;;  %v452_v22 = vld [vmem:[#allocation2 + $0x10] sm:$0xff]  ;;  %v453_v23 = vld [vmem:[#allocation2 + $0x18] sm:$0xff]  ;;  %s476_s29 = scalar_lea.vmem %s5719_s7, %s4210_s30  ;;  %s481_s13 = scalar_lea.vmem %s5720_s8, %s4854_s17 }
  0x1c   : > { %485 = vadd.xlane.f32.xlu0 %v484_v6  ;;  %4405 = vmatprep.subr.mxu0 %v471_v20  ;;  %v490_v24 = vsel %vm483_vm1, %v452_v22, 0.0  ;;  %v493_v25 = vsel %vm483_vm1, %v453_v23, 0.0  ;;  %p4289_p5 = scmp.ne.s32.totalorder %s4854_s17, 1 }
  0x1d   : > { %4406 = vmatpush3.msra.mxu0 %v471_v20 }
  0x1e   : > { %4407 = vmatprep.subr.mxu0 %v470_v21 }
  0x1f   : > { %4408 = vmatpush3.msra.mxu0 %v470_v21 }
  0x20   : > { %488 = vadd.xlane.f32.xlu0 %v487_v7  ;;  %4430 = vmatprep.subr.mxu0 %v4864_v62 }
  0xa5   : > { %v486_v8 = vpop.xlane.xlu0 %485 }
  0xa6   : > { %v497_v9 = vmul.f32 0.03125, %v486_v8 }
  0xa8   : > { %v501_v10 = vsub.f32 %v450_v4, %v497_v9  ;;  %v5023_v4 = vld [vmem:[%s474_s26] ss:$0 sm:$0xff]  ;;  %s4875_s26 = smov 48  }
  0xa9   : > { %v489_v11 = vpop.xlane.xlu0 %488 }
  0xaa   : > { %v498_v12 = vmul.f32 0.03125, %v489_v11  ;;  %v505_v13 = vmul.f32 %v501_v10, %v501_v10 }
  0xac   : > { %v502_v14 = vsub.f32 %v451_v5, %v498_v12  ;;  %v509_v15 = vsel %vm483_vm1, %v505_v13, 0.0 }
  0xad   : > { %510 = vadd.xlane.f32.xlu1 %v509_v15 }
  0xae   : > { %v506_v16 = vmul.f32 %v502_v14, %v502_v14 }
  0xb0   : > { %v512_v17 = vsel %vm483_vm1, %v506_v16, 0.0 }
  0xb1   : > { %513 = vadd.xlane.f32.xlu1 %v512_v17 }
  0xb5   : > { %491 = vadd.xlane.f32.xlu1 %v490_v24 }
  0xb9   : > { %494 = vadd.xlane.f32.xlu1 %v493_v25 }
 0x136   : > { %v511_v26 = vpop.xlane.xlu1 %510 }
 0x137   : > { %v521_v27 = vmul.f32 0.032258064, %v511_v26 }
 0x139   : > { %4666 = vrsqrt.f32 %v521_v27  ;;  %vm527_vm2 = vcmp.eq.f32.partialorder %v521_v27, inf  ;;  %v530_v32 = vand.u32 2147483648, %v521_v27  ;;  %vm529_vm3 = vcmp.eq.f32.partialorder %v521_v27, 0.0 }
 0x13a   : > { %v514_v28 = vpop.xlane.xlu1 %513 }
 0x13b   : > { %v522_v29 = vmul.f32 0.032258064, %v514_v28  ;;  %v690_v28 = vlaneseq }
 0x13d   : > { %4668 = vrsqrt.f32 %v522_v29  ;;  %vm534_vm4 = vcmp.eq.f32.partialorder %v522_v29, inf  ;;  %v537_v38 = vand.u32 2147483648, %v522_v29  ;;  %vm536_vm5 = vcmp.eq.f32.partialorder %v522_v29, 0.0 }
 0x13e   : > { %v492_v52 = vpop.xlane.xlu1 %491 }
 0x13f   : > { %v499_v53 = vmul.f32 0.03125, %v492_v52 }
 0x141   : > { %v503_v54 = vsub.f32 %v452_v22, %v499_v53 }
 0x142   : > { %v495_v55 = vpop.xlane.xlu1 %494 }
 0x143   : > { %v500_v56 = vmul.f32 0.03125, %v495_v55  ;;  %v507_v57 = vmul.f32 %v503_v54, %v503_v54 }
 0x145   : > { %v504_v58 = vsub.f32 %v453_v23, %v500_v56  ;;  %v515_v59 = vsel %vm483_vm1, %v507_v57, 0.0 }
 0x146   : > { %v4667_v30 = vpop.eup %4666  ;;  %516 = vadd.xlane.f32.xlu1 %v515_v59 }
 0x147   : > { %v526_v31 = vmul.f32 %v4667_v30, %v521_v27  ;;  %v508_v60 = vmul.f32 %v504_v58, %v504_v58  ;;  %v691_v30 = vshrl.u32 %v690_v28, 7 }
 0x149   : > { %v528_v33 = vsel %vm527_vm2, %v521_v27, %v526_v31  ;;  %v518_v61 = vsel %vm483_vm1, %v508_v60, 0.0  ;;  %v5053_v31 = vsub.s32 0, %v691_v30 }
 0x14a   : > { %v4669_v34 = vpop.eup %4668  ;;  %v531_v35 = vsel %vm529_vm3, %v530_v32, %v528_v33  ;;  %519 = vadd.xlane.f32.xlu1 %v518_v61  ;;  %v4867_v32 = vmov 0  }
 0x14b   : > { %v533_v36 = vmul.f32 %v4669_v34, %v522_v29  ;;  %v553_v37 = vadd.f32 1e-06, %v531_v35 }
 0x14d   : > { %v535_v39 = vsel %vm534_vm4, %v522_v29, %v533_v36  ;;  %4670 = vrcp.f32 %v553_v37  ;;  %v684_v29 = vld [vmem:[%s5714_s2] sm:$0x1] }
 0x14e   : > { %v538_v40 = vsel %vm536_vm5, %v537_v38, %v535_v39  ;;  %vm688_vm12 = vcmp.eq.f32.partialorder %v684_v29, 0.0  ;;  %vm1400_vm5 = vcmask 130048  }
 0x14f   : > { %v554_v41 = vadd.f32 1e-06, %v538_v40  ;;  %v689_v33 = vsel %vm688_vm12, 1, %v4867_v32 }
 0x150   : > { %v693_v34 = vrot.slane %v689_v33, %v5053_v31 }
 0x151   : > { %4672 = vrcp.f32 %v554_v41 }
 0x152   : > { %vm5057_vm13 = vcmp.eq.s32.totalorder %v693_v34, 1 }
 0x15a   : > { %v4671_v42 = vpop.eup %4670 }
 0x15b   : > { %v561_v44 = vmul.f32 %v4671_v42, %v501_v10 }
 0x15d   : > { %v565_v46 = vmul.f32 %v4992_v43, %v561_v44  ;;  %v5067_v44 = vld [vmem:[%s5713_s1] sm:$0xff]  }
 0x15e   : > { %v4673_v47 = vpop.eup %4672 }
 0x15f   : > { %v5001_v48 = vadd.f32 %v4997_v45, %v565_v46  ;;  %v562_v49 = vmul.f32 %v4673_v47, %v502_v14 }
 0x161   : > { %4409 = vmatprep.mubr.msk.f32.mxu0 %vm483_vm1, %v5001_v48  ;;  %v566_v50 = vmul.f32 %v4992_v43, %v562_v49 }
 0x163   : > { %v5007_v51 = vadd.f32 %v4997_v45, %v566_v50 }
 0x165   : > { %4410 = vmatmul.mubr.msk.f32.vlgmr.msra.gmra.mxu0 %vm483_vm1, %v5007_v51 }
 0x1cf   : > { %v517_v63 = vpop.xlane.xlu1 %516 }
 0x1d0   : > { %v523_v0 = vmul.f32 0.032258064, %v517_v63 }
 0x1d2   : > { %4674 = vrsqrt.f32 %v523_v0  ;;  %vm541_vm7 = vcmp.eq.f32.partialorder %v523_v0, inf  ;;  %v544_v8 = vand.u32 2147483648, %v523_v0  ;;  %vm543_vm8 = vcmp.eq.f32.partialorder %v523_v0, 0.0 }
 0x1d3   : > { %v520_v1 = vpop.xlane.xlu1 %519 }
 0x1d4   : > { %v524_v3 = vmul.f32 0.032258064, %v520_v1 }
 0x1d6   : > { %4676 = vrsqrt.f32 %v524_v3  ;;  %vm548_vm9 = vcmp.eq.f32.partialorder %v524_v3, inf  ;;  %v551_v13 = vand.u32 2147483648, %v524_v3  ;;  %vm550_vm10 = vcmp.eq.f32.partialorder %v524_v3, 0.0 }
 0x1df   : > { %v4675_v7 = vpop.eup %4674 }
 0x1e0   : > { %v540_v9 = vmul.f32 %v4675_v7, %v523_v0 }
 0x1e2   : > { %v542_v10 = vsel %vm541_vm7, %v523_v0, %v540_v9 }
 0x1e3   : > { %v4677_v11 = vpop.eup %4676  ;;  %v545_v12 = vsel %vm543_vm8, %v544_v8, %v542_v10 }
 0x1e4   : > { %v555_v14 = vadd.f32 1e-06, %v545_v12  ;;  %v547_v15 = vmul.f32 %v4677_v11, %v524_v3 }
 0x1e6   : > { %4678 = vrcp.f32 %v555_v14  ;;  %v549_v16 = vsel %vm548_vm9, %v524_v3, %v547_v15 }
 0x1e7   : > { %v552_v17 = vsel %vm550_vm10, %v551_v13, %v549_v16 }
 0x1e8   : > { %v556_v18 = vadd.f32 1e-06, %v552_v17 }
 0x1ea   : > { %4680 = vrcp.f32 %v556_v18 }
 0x1f3   : > { %v4679_v19 = vpop.eup %4678 }
 0x1f4   : > { %v563_v20 = vmul.f32 %v4679_v19, %v503_v54 }
 0x1f6   : > { %v567_v21 = vmul.f32 %v4992_v43, %v563_v20 }
 0x1f7   : > { %v4681_v22 = vpop.eup %4680 }
 0x1f8   : > { %v5032_v23 = vadd.f32 %v4997_v45, %v567_v21  ;;  %v564_v24 = vmul.f32 %v4681_v22, %v504_v58 }
 0x1fa   : > { %4412 = vmatprep.mubr.msk.f32.mxu0 %vm483_vm1, %v5032_v23  ;;  %v568_v25 = vmul.f32 %v4992_v43, %v564_v24 }
 0x1fc   : > { %v5038_v26 = vadd.f32 %v4997_v45, %v568_v25  ;;  %v5070_v45 = vunpack.c.l.bf16 %v5067_v44 }
 0x1fe   : > { %4413 = vmatmul.mubr.msk.f32.gmra.mxu0 %vm483_vm1, %v5038_v26 }
 0x1ff   : > { %4432 = vmatprep.mubr.msk.f32.mxu0 %vm4865_vm6, %v4864_v62 }
 0x225   : > { %v5021_v2 = vpop.f32.mrf.mxu0 }
 0x226   : > { %v5088_v52 = vadd.f32 %v5021_v2, %v5023_v4 }
 0x227   : > { %v657_v5 = vpop.f32.mrf.mxu0 }
 0x228   : > { %v5026_v6 = vadd.f32 %v5023_v4, %v657_v5 }
 0x22a   : > { %696 = vrot.lane.b32.xlu0 %v5026_v6, %s4866_s27 }
 0x29c   : > { %v697_v27 = vpop.permute.xlu0 %696 }
 0x29d   : > { %4416 = vmatpush3.xpose.msk.msra.mxu1 %vm698_vm11, %v697_v27 }
 0x29e   : > { %4420 = vmatprep.subr.mxu1 %v4864_v62 }
 0x2a0   : > { %4418 = vmatmul.mubr.msk.f32.vlgmr.msra.gmra.mxu1 %vm698_vm11, %v5026_v6 }
 0x2a1   : > { %4422 = vmatprep.mubr.msk.f32.mxu1 %vm4865_vm6, %v4864_v62 }
 0x2be   : > { %v4414_v53 = vpop.f32.mrf.mxu0 }
 0x2bf   : > { %v5110_v56 = vadd.f32 %v4414_v53, %v5023_v4 }
 0x2c0   : > { %v667_v54 = vpop.f32.mrf.mxu0 }
 0x2c1   : > { %v5097_v55 = vadd.f32 %v5023_v4, %v667_v54 }
 0x360   : > { %v769_v36 = vpop.f32.mrf.mxu1 }
 0x361   : > { %v773_v37 = vsel %vm5057_vm13, -1e+12, %v769_v36 }
 0x362   : > { %v774_v38 = vmul.f32 0.35355338, %v773_v37  ;;  %v4419_v39 = vpop.f32.mrf.mxu1 }
 0x364   : > { %v775_v40 = vsel %vm698_vm11, %v774_v38, -inf }
 0x365   : > { %776 = vmax.xlane.f32.xlu1 %v775_v40  ;;  %v685_v40 = vld [vmem:[%s5714_s2 + $0x1] sm:$0x1] }
 0x366   : > { %vm1404_vm14 = vcmp.eq.f32.partialorder %v685_v40, 0.0 }
 0x367   : > { %v1405_v54 = vsel %vm1404_vm14, 1, %v4867_v32 }
 0x3ee   : > { %v777_v41 = vpop.xlane.xlu1 %776 }
 0x3ef   : > { %v778_v42 = vsub.f32 %v774_v38, %v777_v41 }
 0x3f1   : > { %v779_v43 = vmul.f32 1.442695, %v778_v42 }
 0x3f3   : > { %4682 = vpow2.f32 %v779_v43 }
 0x400   : > { %v4683_v46 = vpop.eup %4682 }
 0x401   : > { %v785_v47 = vsel %vm698_vm11, %v4683_v46, 0.0  ;;  %v5074_v49 = vmul.f32 %v4683_v46, %v5070_v45 }
 0x402   : > { %786 = vadd.xlane.f32.xlu1 %v785_v47 }
 0x403   : > { %v782_v50 = vsel %vm698_vm11, %v5074_v49, 0.0 }
 0x404   : > { %783 = vadd.xlane.f32.xlu0 %v782_v50 }
 0x413   : > { %792 = vrot.lane.b32.xlu1 %v5026_v6, %s4868_s14 }
 0x417   : > { %870 = vrot.lane.b32.xlu1 %v5026_v6, %s4869_s15 }
 0x41a   : > { %1041 = vrot.lane.b32.xlu0 %v5026_v6, %s4870_s16 }
 0x41b   : > { %868 = vrot.lane.b32.xlu1 %v5026_v6, %s4871_s22 }
 0x41e   : > { %1756 = vrot.lane.b32.xlu0 %v5088_v52, %s4870_s16 }
 0x41f   : > { %1043 = vrot.lane.b32.xlu1 %v5026_v6, %s4872_s23 }
 0x422   : > { %1929 = vrot.lane.b32.xlu0 %v5088_v52, %s4873_s24 }
 0x423   : > { %1216 = vrot.lane.b32.xlu1 %v5026_v6, %s4874_s25 }
 0x426   : > { %2298 = vrot.lane.b32.xlu0 %v5097_v55, %s4869_s15 }
 0x427   : > { %1214 = vrot.lane.b32.xlu1 %v5026_v6, %s4873_s24 }
 0x42a   : > { %2471 = vrot.lane.b32.xlu0 %v5097_v55, %s4872_s23 }
 0x42b   : > { %1412 = vrot.lane.b32.xlu1 %v5088_v52, %s4866_s27 }
 0x42e   : > { %2644 = vrot.lane.b32.xlu0 %v5097_v55, %s4874_s25 }
 0x42f   : > { %1585 = vrot.lane.b32.xlu1 %v5088_v52, %s4869_s15 }
 0x432   : > { %2838 = vrot.lane.b32.xlu0 %v5110_v56, %s4866_s27 }
 0x433   : > { %1583 = vrot.lane.b32.xlu1 %v5088_v52, %s4871_s22 }
 0x436   : > { %3009 = vrot.lane.b32.xlu0 %v5110_v56, %s4871_s22 }
 0x437   : > { %1758 = vrot.lane.b32.xlu1 %v5088_v52, %s4872_s23 }
 0x43a   : > { %3182 = vrot.lane.b32.xlu0 %v5110_v56, %s4870_s16 }
 0x43b   : > { %1931 = vrot.lane.b32.xlu1 %v5088_v52, %s4874_s25 }
 0x43e   : > { %3355 = vrot.lane.b32.xlu0 %v5110_v56, %s4873_s24 }
 0x43f   : > { %2125 = vrot.lane.b32.xlu1 %v5097_v55, %s4866_s27  ;;  %s4876_s27 = smov 56  }
 0x442   : > { %1138 = vrot.lane.b32.xlu0 %v5026_v6, %s4875_s26 }
 0x443   : > { %2296 = vrot.lane.b32.xlu1 %v5097_v55, %s4871_s22 }
 0x446   : > { %1507 = vrot.lane.b32.xlu0 %v5088_v52, %s4868_s14 }
 0x447   : > { %2469 = vrot.lane.b32.xlu1 %v5097_v55, %s4870_s16 }
 0x44a   : > { %1853 = vrot.lane.b32.xlu0 %v5088_v52, %s4875_s26 }
 0x44b   : > { %2642 = vrot.lane.b32.xlu1 %v5097_v55, %s4873_s24 }
 0x44f   : > { %3011 = vrot.lane.b32.xlu1 %v5110_v56, %s4869_s15  ;;  %s4294_s15 = sshll.u32 %s4854_s17, 6 }
 0x453   : > { %3184 = vrot.lane.b32.xlu1 %v5110_v56, %s4872_s23  ;;  %s5616_s23 = scalar_lea.vmem %s5721_s9, %s4294_s15 }
 0x457   : > { %3357 = vrot.lane.b32.xlu1 %v5110_v56, %s4874_s25  ;;  %s4879_s25 = smov 16  }
 0x45b   : > { %965 = vrot.lane.b32.xlu1 %v5026_v6, %s4876_s27 }
 0x45f   : > { %1311 = vrot.lane.b32.xlu1 %v5026_v6, %s4877_s28 }
 0x48b   : > { %v787_v57 = vpop.xlane.xlu1 %786 }
 0x48c   : > { %v788_v58 = vmul.f32 1e-05, %v787_v57 }
 0x48d   : > { %v784_v59 = vpop.xlane.xlu0 %783 }
 0x48e   : > { %v789_v60 = vadd.f32 %v788_v58, %v784_v59  ;;  %v1409_v59 = vrot.slane %v1405_v54, %v5053_v31 }
 0x48f   : > { %v793_v61 = vpop.permute.xlu1 %792 }
 0x490   : > { %4684 = vrcp.f32 %v789_v60  ;;  %4421 = vmatpush3.msra.mxu1 %v793_v61  ;;  %vm5252_vm15 = vcmp.eq.s32.totalorder %v1409_v59, 1 }
 0x491   : > { %4425 = vmatprep.subr.mxu1 %v4864_v62  ;;  %v1042_v6 = vpop.permute.xlu0 %1041 }
 0x493   : > { %v871_v63 = vpop.permute.xlu1 %870 }
 0x495   : > { %v1757_v8 = vpop.permute.xlu0 %1756 }
 0x497   : > { %v869_v0 = vpop.permute.xlu1 %868 }
 0x499   : > { %v1930_v11 = vpop.permute.xlu0 %1929 }
 0x49b   : > { %v1044_v1 = vpop.permute.xlu1 %1043 }
 0x49d   : > { %v4685_v2 = vpop.eup %4684  ;;  %v2299_v13 = vpop.permute.xlu0 %2298 }
 0x49e   : > { %v791_v3 = vmul.f32 %v4685_v2, %v5074_v49 }
 0x49f   : > { %v1217_v4 = vpop.permute.xlu1 %1216 }
 0x4a0   : > { %4423 = vmatmul.mubr.msk.f32.vlgmr.msra.gmra.mxu1 %vm698_vm11, %v791_v3 }
 0x4a1   : > { %4426 = vmatpush3.xpose.msk.msra.mxu1 %vm698_vm11, %v871_v63  ;;  %4427 = vmatprep.mubr.msk.f32.mxu1 %vm4865_vm6, %v4864_v62  ;;  %v2472_v16 = vpop.permute.xlu0 %2471 }
 0x4a2   : > { %4435 = vmatprep.subr.mxu1 %v4864_v62 }
 0x4a3   : > { %v1215_v5 = vpop.permute.xlu1 %1214 }
 0x4a4   : > { %4428 = vmatmul.mubr.msk.f32.vlgmr.msra.gmra.mxu1 %vm698_vm11, %v869_v0 }
 0x4a5   : > { %4436 = vmatpush3.xpose.msk.msra.mxu1 %vm698_vm11, %v1044_v1  ;;  %4437 = vmatprep.mubr.msk.f32.mxu1 %vm4865_vm6, %v4864_v62  ;;  %v2645_v18 = vpop.permute.xlu0 %2644 }
 0x4a6   : > { %4445 = vmatprep.subr.mxu1 %v4864_v62 }
 0x4a7   : > { %v1413_v7 = vpop.permute.xlu1 %1412 }
 0x4a8   : > { %4438 = vmatmul.mubr.msk.f32.vlgmr.msra.gmra.mxu1 %vm698_vm11, %v1042_v6 }
 0x4a9   : > { %4446 = vmatpush3.xpose.msk.msra.mxu1 %vm698_vm11, %v1217_v4  ;;  %4447 = vmatprep.mubr.msk.f32.mxu1 %vm4865_vm6, %v4864_v62  ;;  %v2839_v21 = vpop.permute.xlu0 %2838  ;;  %v686_v4 = vld [vmem:[%s5714_s2 + $0x2] sm:$0x1] }
 0x4aa   : > { %4455 = vmatprep.subr.mxu1 %v4864_v62  ;;  %vm2117_vm0 = vcmp.eq.f32.partialorder %v686_v4, 0.0 }
 0x4ab   : > { %v1586_v9 = vpop.permute.xlu1 %1585 }
 0x4ac   : > { %4448 = vmatmul.mubr.msk.f32.vlgmr.msra.gmra.mxu1 %vm698_vm11, %v1215_v5 }
 0x4ad   : > { %4456 = vmatpush3.xpose.msk.msra.mxu1 %vm698_vm11, %v1413_v7  ;;  %4457 = vmatprep.mubr.msk.f32.mxu1 %vm4865_vm6, %v4864_v62  ;;  %v3010_v24 = vpop.permute.xlu0 %3009 }
 0x4ae   : > { %4465 = vmatprep.subr.mxu1 %v4864_v62 }
 0x4af   : > { %v1584_v10 = vpop.permute.xlu1 %1583 }
 0x4b0   : > { %4458 = vmatmul.mubr.msk.f32.vlgmr.msra.gmra.mxu1 %vm698_vm11, %v5088_v52 }
 0x4b1   : > { %4466 = vmatpush3.xpose.msk.msra.mxu1 %vm698_vm11, %v1586_v9  ;;  %4467 = vmatprep.mubr.msk.f32.mxu1 %vm4865_vm6, %v4864_v62  ;;  %v3183_v28 = vpop.permute.xlu0 %3182 }
 0x4b2   : > { %4475 = vmatprep.subr.mxu1 %v4864_v62 }
 0x4b3   : > { %v1759_v12 = vpop.permute.xlu1 %1758 }
 0x4b4   : > { %4468 = vmatmul.mubr.msk.f32.vlgmr.msra.gmra.mxu1 %vm698_vm11, %v1584_v10  ;;  %v2118_v10 = vsel %vm2117_vm0, 1, %v4867_v32 }
 0x4b5   : > { %4476 = vmatpush3.xpose.msk.msra.mxu1 %vm698_vm11, %v1759_v12  ;;  %4477 = vmatprep.mubr.msk.f32.mxu1 %vm4865_vm6, %v4864_v62  ;;  %v3356_v30 = vpop.permute.xlu0 %3355 }
 0x4b6   : > { %4485 = vmatprep.subr.mxu1 %v4864_v62 }
 0x4b7   : > { %v1932_v14 = vpop.permute.xlu1 %1931 }
 0x4b8   : > { %4478 = vmatmul.mubr.msk.f32.vlgmr.msra.gmra.mxu1 %vm698_vm11, %v1757_v8 }
 0x4b9   : > { %4486 = vmatpush3.xpose.msk.msra.mxu1 %vm698_vm11, %v1932_v14  ;;  %4487 = vmatprep.mubr.msk.f32.mxu1 %vm4865_vm6, %v4864_v62 }
 0x4ba   : > { %4495 = vmatprep.subr.mxu1 %v4864_v62 }
 0x4bb   : > { %v2126_v15 = vpop.permute.xlu1 %2125 }
 0x4bc   : > { %4488 = vmatmul.mubr.msk.f32.vlgmr.msra.gmra.mxu1 %vm698_vm11, %v1930_v11 }
 0x4bd   : > { %4496 = vmatpush3.xpose.msk.msra.mxu1 %vm698_vm11, %v2126_v15  ;;  %4497 = vmatprep.mubr.msk.f32.mxu1 %vm4865_vm6, %v4864_v62 }
 0x4be   : > { %4505 = vmatprep.subr.mxu1 %v4864_v62 }
 0x4bf   : > { %v2297_v17 = vpop.permute.xlu1 %2296 }
 0x4c0   : > { %4498 = vmatmul.mubr.msk.f32.vlgmr.msra.gmra.mxu1 %vm698_vm11, %v5097_v55 }
 0x4c1   : > { %4506 = vmatpush3.xpose.msk.msra.mxu1 %vm698_vm11, %v2299_v13  ;;  %4507 = vmatprep.mubr.msk.f32.mxu1 %vm4865_vm6, %v4864_v62  ;;  %v2122_v13 = vrot.slane %v2118_v10, %v5053_v31 }
 0x4c2   : > { %4515 = vmatprep.subr.mxu1 %v4864_v62 }
 0x4c3   : > { %v2470_v19 = vpop.permute.xlu1 %2469  ;;  %vm5275_vm2 = vcmp.eq.s32.totalorder %v2122_v13, 1 }
 0x4c4   : > { %4508 = vmatmul.mubr.msk.f32.vlgmr.msra.gmra.mxu1 %vm698_vm11, %v2297_v17 }
 0x4c5   : > { %4516 = vmatpush3.xpose.msk.msra.mxu1 %vm698_vm11, %v2472_v16  ;;  %4517 = vmatprep.mubr.msk.f32.mxu1 %vm4865_vm6, %v4864_v62 }
 0x4c6   : > { %4525 = vmatprep.subr.mxu1 %v4864_v62 }
 0x4c7   : > { %v2643_v20 = vpop.permute.xlu1 %2642 }
 0x4c8   : > { %4518 = vmatmul.mubr.msk.f32.vlgmr.msra.gmra.mxu1 %vm698_vm11, %v2470_v19 }
 0x4c9   : > { %4526 = vmatpush3.xpose.msk.msra.mxu1 %vm698_vm11, %v2645_v18  ;;  %4527 = vmatprep.mubr.msk.f32.mxu1 %vm4865_vm6, %v4864_v62 }
 0x4ca   : > { %4535 = vmatprep.subr.mxu1 %v4864_v62 }
 0x4cb   : > { %v3012_v22 = vpop.permute.xlu1 %3011 }
 0x4cc   : > { %4528 = vmatmul.mubr.msk.f32.vlgmr.msra.gmra.mxu1 %vm698_vm11, %v2643_v20 }
 0x4cd   : > { %4536 = vmatpush3.xpose.msk.msra.mxu1 %vm698_vm11, %v2839_v21  ;;  %4537 = vmatprep.mubr.msk.f32.mxu1 %vm4865_vm6, %v4864_v62 }
 0x4ce   : > { %4545 = vmatprep.subr.mxu1 %v4864_v62 }
 0x4cf   : > { %v3185_v25 = vpop.permute.xlu1 %3184 }
 0x4d0   : > { %4538 = vmatmul.mubr.msk.f32.vlgmr.msra.gmra.mxu1 %vm698_vm11, %v5110_v56 }
 0x4d1   : > { %4546 = vmatpush3.xpose.msk.msra.mxu1 %vm698_vm11, %v3012_v22  ;;  %4547 = vmatprep.mubr.msk.f32.mxu1 %vm4865_vm6, %v4864_v62  ;;  %v687_v22 = vld [vmem:[%s5714_s2 + $0x3] sm:$0x1] }
 0x4d2   : > { %4555 = vmatprep.subr.mxu1 %v4864_v62  ;;  %vm2830_vm3 = vcmp.eq.f32.partialorder %v687_v22, 0.0 }
 0x4d3   : > { %v3358_v27 = vpop.permute.xlu1 %3357 }
 0x4d4   : > { %4548 = vmatmul.mubr.msk.f32.vlgmr.msra.gmra.mxu1 %vm698_vm11, %v3010_v24 }
 0x4d5   : > { %4556 = vmatpush3.xpose.msk.msra.mxu1 %vm698_vm11, %v3185_v25  ;;  %4557 = vmatprep.mubr.msk.f32.mxu1 %vm4865_vm6, %v4864_v62 }
 0x4d6   : > { %4565 = vmatprep.subr.mxu1 %v4864_v62 }
 0x4d7   : > { %v966_v29 = vpop.permute.xlu1 %965 }
 0x4d8   : > { %4431 = vmatpush3.msra.mxu0 %v966_v29  ;;  %4558 = vmatmul.mubr.msk.f32.vlgmr.msra.gmra.mxu1 %vm698_vm11, %v3183_v28 }
 0x4d9   : > { %4566 = vmatpush3.xpose.msk.msra.mxu1 %vm698_vm11, %v3358_v27  ;;  %4567 = vmatprep.mubr.msk.f32.mxu1 %vm4865_vm6, %v4864_v62 }
 0x4da   : > { %4440 = vmatprep.subr.mxu0 %v4864_v62 }
 0x4dc   : > { %4568 = vmatmul.mubr.msk.f32.vlgmr.msra.gmra.mxu1 %vm698_vm11, %v3356_v30  ;;  %v2831_v30 = vsel %vm2830_vm3, 1, %v4867_v32 }
 0x560   : > { %v5227_v33 = vpop.f32.mrf.mxu1 }
 0x562   : > { %v4424_v34 = vpop.f32.mrf.mxu1 }
 0x564   : > { %v942_v36 = vpop.f32.mrf.mxu1 }
 0x565   : > { %v946_v37 = vsel %vm5057_vm13, -1e+12, %v942_v36 }
 0x566   : > { %v5231_v38 = vmul.f32 0.35355338, %v946_v37  ;;  %v4429_v39 = vpop.f32.mrf.mxu1  ;;  %v2835_v37 = vrot.slane %v2831_v30, %v5053_v31 }
 0x568   : > { %v1115_v41 = vpop.f32.mrf.mxu1  ;;  %v948_v42 = vsel %vm698_vm11, %v5231_v38, -inf  ;;  %vm5296_vm4 = vcmp.eq.s32.totalorder %v2835_v37, 1 }
 0x569   : > { %v1119_v43 = vsel %vm5057_vm13, -1e+12, %v1115_v41  ;;  %949 = vmax.xlane.f32.xlu1 %v948_v42 }
 0x56a   : > { %v5240_v46 = vmul.f32 0.35355338, %v1119_v43  ;;  %v4439_v47 = vpop.f32.mrf.mxu1 }
 0x56c   : > { %v1288_v49 = vpop.f32.mrf.mxu1  ;;  %v1121_v50 = vsel %vm698_vm11, %v5240_v46, -inf }
 0x56d   : > { %v1292_v53 = vsel %vm5057_vm13, -1e+12, %v1288_v49  ;;  %1122 = vmax.xlane.f32.xlu0 %v1121_v50 }
 0x56e   : > { %v5247_v57 = vmul.f32 0.35355338, %v1292_v53  ;;  %v4449_v58 = vpop.f32.mrf.mxu1 }
 0x570   : > { %v1484_v60 = vpop.f32.mrf.mxu1  ;;  %v1294_v61 = vsel %vm698_vm11, %v5247_v57, -inf }
 0x571   : > { %1295 = vmax.xlane.f32.xlu0 %v1294_v61  ;;  %v1488_v32 = vsel %vm5252_vm15, -1e+12, %v1484_v60 }
 0x572   : > { %v4459_v63 = vpop.f32.mrf.mxu1  ;;  %v5308_v54 = vmul.f32 0.35355338, %v1488_v32 }
 0x574   : > { %v1657_v35 = vpop.f32.mrf.mxu1  ;;  %v1490_v60 = vsel %vm698_vm11, %v5308_v54, -inf }
 0x575   : > { %v1661_v1 = vsel %vm5252_vm15, -1e+12, %v1657_v35 }
 0x576   : > { %v5258_v2 = vmul.f32 0.35355338, %v1661_v1  ;;  %v4469_v3 = vpop.f32.mrf.mxu1 }
 0x578   : > { %v1830_v5 = vpop.f32.mrf.mxu1  ;;  %v1663_v6 = vsel %vm698_vm11, %v5258_v2, -inf }
 0x579   : > { %1664 = vmax.xlane.f32.xlu0 %v1663_v6  ;;  %v1834_v58 = vsel %vm5252_vm15, -1e+12, %v1830_v5 }
 0x57a   : > { %1680 = vrot.lane.b32.xlu1 %v5088_v52, %s4876_s27  ;;  %v4479_v7 = vpop.f32.mrf.mxu1  ;;  %v5312_v63 = vmul.f32 0.35355338, %v1834_v58 }
 0x57c   : > { %v2003_v8 = vpop.f32.mrf.mxu1  ;;  %v1836_v4 = vsel %vm698_vm11, %v5312_v63, -inf }
 0x57d   : > { %v2007_v9 = vsel %vm5252_vm15, -1e+12, %v2003_v8 }
 0x57e   : > { %v5270_v11 = vmul.f32 0.35355338, %v2007_v9  ;;  %v4489_v12 = vpop.f32.mrf.mxu1 }
 0x580   : > { %v2197_v14 = vpop.f32.mrf.mxu1  ;;  %v2009_v15 = vsel %vm698_vm11, %v5270_v11, -inf }
 0x581   : > { %2010 = vmax.xlane.f32.xlu0 %v2009_v15  ;;  %v2201_v35 = vsel %vm5275_vm2, -1e+12, %v2197_v14 }
 0x582   : > { %v4499_v16 = vpop.f32.mrf.mxu1  ;;  %v5318_v3 = vmul.f32 0.35355338, %v2201_v35 }
 0x584   : > { %v2370_v18 = vpop.f32.mrf.mxu1  ;;  %v2203_v6 = vsel %vm698_vm11, %v5318_v3, -inf }
 0x585   : > { %v2374_v19 = vsel %vm5275_vm2, -1e+12, %v2370_v18  ;;  %v5356_v18 = vpop.permute.xlu0 %1138 }
 0x586   : > { %v5281_v20 = vmul.f32 0.35355338, %v2374_v19  ;;  %v4509_v21 = vpop.f32.mrf.mxu1 }
 0x587   : > { %v5362_v21 = vpop.permute.xlu1 %1311 }
 0x588   : > { %v2543_v24 = vpop.f32.mrf.mxu1  ;;  %v2376_v25 = vsel %vm698_vm11, %v5281_v20, -inf }
 0x589   : > { %2377 = vmax.xlane.f32.xlu0 %v2376_v25  ;;  %v2547_v0 = vsel %vm5275_vm2, -1e+12, %v2543_v24  ;;  %v5358_v19 = vpop.permute.xlu0 %1507 }
 0x58a   : > { %v4519_v27 = vpop.f32.mrf.mxu1  ;;  %v5324_v5 = vmul.f32 0.35355338, %v2547_v0 }
 0x58c   : > { %v2716_v28 = vpop.f32.mrf.mxu1  ;;  %v2549_v9 = vsel %vm698_vm11, %v5324_v5, -inf }
 0x58d   : > { %v2720_v29 = vsel %vm5275_vm2, -1e+12, %v2716_v28  ;;  %v5364_v22 = vpop.permute.xlu0 %1853 }
 0x58e   : > { %v5291_v34 = vmul.f32 0.35355338, %v2720_v29  ;;  %v4529_v36 = vpop.f32.mrf.mxu1 }
 0x590   : > { %v2910_v39 = vpop.f32.mrf.mxu1  ;;  %v2722_v40 = vsel %vm698_vm11, %v5291_v34, -inf }
 0x591   : > { %2723 = vmax.xlane.f32.xlu0 %v2722_v40  ;;  %v2914_v7 = vsel %vm5296_vm4, -1e+12, %v2910_v39 }
 0x592   : > { %v4539_v41 = vpop.f32.mrf.mxu1  ;;  %v5330_v8 = vmul.f32 0.35355338, %v2914_v7 }
 0x594   : > { %v3083_v43 = vpop.f32.mrf.mxu1  ;;  %v2916_v13 = vsel %vm698_vm11, %v5330_v8, -inf }
 0x595   : > { %v3087_v47 = vsel %vm5296_vm4, -1e+12, %v3083_v43 }
 0x596   : > { %v5304_v49 = vmul.f32 0.35355338, %v3087_v47  ;;  %v4549_v31 = vpop.f32.mrf.mxu1 }
 0x598   : > { %v3256_v50 = vpop.f32.mrf.mxu1  ;;  %v3089_v53 = vsel %vm698_vm11, %v5304_v49, -inf }
 0x599   : > { %3090 = vmax.xlane.f32.xlu0 %v3089_v53  ;;  %v3260_v10 = vsel %vm5296_vm4, -1e+12, %v3256_v50 }
 0x59a   : > { %v4559_v59 = vpop.f32.mrf.mxu1  ;;  %v5336_v12 = vmul.f32 0.35355338, %v3260_v10 }
 0x59c   : > { %v3429_v61 = vpop.f32.mrf.mxu1  ;;  %v3262_v14 = vsel %vm698_vm11, %v5336_v12, -inf }
 0x59d   : > { %v3433_v15 = vsel %vm5296_vm4, -1e+12, %v3429_v61 }
 0x59e   : > { %1491 = vmax.xlane.f32.xlu1 %v1490_v60  ;;  %v4569_v1 = vpop.f32.mrf.mxu1  ;;  %v5352_v16 = vmul.f32 0.35355338, %v3433_v15 }
 0x5a0   : > { %v3435_v17 = vsel %vm698_vm11, %v5352_v16, -inf }
 0x5a2   : > { %1837 = vmax.xlane.f32.xlu1 %v1836_v4 }
 0x5a6   : > { %2204 = vmax.xlane.f32.xlu1 %v2203_v6 }
 0x5aa   : > { %2550 = vmax.xlane.f32.xlu1 %v2549_v9 }
 0x5ae   : > { %2917 = vmax.xlane.f32.xlu1 %v2916_v13 }
 0x5af   : > { %2220 = vrot.lane.b32.xlu0 %v5097_v55, %s4868_s14 }
 0x5b2   : > { %3263 = vmax.xlane.f32.xlu1 %v3262_v14 }
 0x5b3   : > { %2393 = vrot.lane.b32.xlu0 %v5097_v55, %s4876_s27 }
 0x5b7   : > { %2566 = vrot.lane.b32.xlu0 %v5097_v55, %s4875_s26 }
 0x5c3   : > { %2026 = vrot.lane.b32.xlu1 %v5088_v52, %s4877_s28 }
 0x5d6   : > { %3436 = vmax.xlane.f32.xlu0 %v3435_v17 }
 0x5ec   : > { %2739 = vrot.lane.b32.xlu0 %v5097_v55, %s4877_s28 }
 0x5f2   : > { %v950_v52 = vpop.xlane.xlu1 %949 }
 0x5f3   : > { %v951_v24 = vsub.f32 %v5231_v38, %v950_v52 }
 0x5f5   : > { %v952_v25 = vmul.f32 1.442695, %v951_v24 }
 0x5f6   : > { %v1123_v27 = vpop.xlane.xlu0 %1122  ;;  %v5387_v53 = vpop.permute.xlu1 %1680 }
 0x5f7   : > { %4686 = vpow2.f32 %v952_v25  ;;  %v1124_v28 = vsub.f32 %v5240_v46, %v1123_v27 }
 0x5f9   : > { %v1125_v29 = vmul.f32 1.442695, %v1124_v28 }
 0x5fa   : > { %v1296_v30 = vpop.xlane.xlu0 %1295 }
 0x5fb   : > { %4688 = vpow2.f32 %v1125_v29  ;;  %v1297_v36 = vsub.f32 %v5247_v57, %v1296_v30 }
 0x5fd   : > { %v1298_v37 = vmul.f32 1.442695, %v1297_v36 }
 0x5ff   : > { %4690 = vpow2.f32 %v1298_v37 }
 0x602   : > { %v1665_v50 = vpop.xlane.xlu0 %1664 }
 0x603   : > { %v1666_v58 = vsub.f32 %v5258_v2, %v1665_v50 }
 0x604   : > { %v4687_v55 = vpop.eup %4686 }
 0x605   : > { %v958_v39 = vsel %vm698_vm11, %v4687_v55, 0.0  ;;  %v5371_v40 = vmul.f32 %v4687_v55, %v5070_v45  ;;  %v1667_v59 = vmul.f32 1.442695, %v1666_v58 }
 0x606   : > { %959 = vadd.xlane.f32.xlu1 %v958_v39 }
 0x607   : > { %v955_v46 = vsel %vm698_vm11, %v5371_v40, 0.0  ;;  %4692 = vpow2.f32 %v1667_v59 }
 0x608   : > { %v4689_v38 = vpop.eup %4688 }
 0x609   : > { %v1131_v41 = vsel %vm698_vm11, %v4689_v38, 0.0  ;;  %v5377_v42 = vmul.f32 %v4689_v38, %v5070_v45 }
 0x60a   : > { %1132 = vadd.xlane.f32.xlu1 %v1131_v41  ;;  %v2011_v35 = vpop.xlane.xlu0 %2010 }
 0x60b   : > { %956 = vadd.xlane.f32.xlu0 %v955_v46  ;;  %v1128_v47 = vsel %vm698_vm11, %v5377_v42, 0.0 }
 0x60c   : > { %v4691_v57 = vpop.eup %4690 }
 0x60d   : > { %v1304_v43 = vsel %vm698_vm11, %v4691_v57, 0.0  ;;  %v5383_v32 = vmul.f32 %v4691_v57, %v5070_v45  ;;  %v2012_v45 = vsub.f32 %v5270_v11, %v2011_v35 }
 0x60e   : > { %1305 = vadd.xlane.f32.xlu1 %v1304_v43 }
 0x60f   : > { %1129 = vadd.xlane.f32.xlu0 %v1128_v47  ;;  %v1301_v31 = vsel %vm698_vm11, %v5383_v32, 0.0  ;;  %v2013_v10 = vmul.f32 1.442695, %v2012_v45 }
 0x612   : > { %v2378_v6 = vpop.xlane.xlu0 %2377 }
 0x613   : > { %1302 = vadd.xlane.f32.xlu0 %v1301_v31  ;;  %v2379_v11 = vsub.f32 %v5281_v20, %v2378_v6 }
 0x614   : > { %v4693_v24 = vpop.eup %4692 }
 0x61a   : > { %v2724_v13 = vpop.xlane.xlu0 %2723 }
 0x61b   : > { %v2725_v47 = vsub.f32 %v5291_v34, %v2724_v13 }
 0x622   : > { %v3091_v15 = vpop.xlane.xlu0 %3090 }
 0x623   : > { %v3092_v27 = vsub.f32 %v5304_v49, %v3091_v15 }
 0x627   : > { %v1492_v61 = vpop.xlane.xlu1 %1491 }
 0x628   : > { %v1493_v60 = vsub.f32 %v5308_v54, %v1492_v61 }
 0x62a   : > { %v1494_v1 = vmul.f32 1.442695, %v1493_v60  ;;  %v2726_v60 = vmul.f32 1.442695, %v2725_v47 }
 0x62b   : > { %v1838_v4 = vpop.xlane.xlu1 %1837 }
 0x62c   : > { %4694 = vpow2.f32 %v1494_v1  ;;  %v1839_v0 = vsub.f32 %v5312_v63, %v1838_v4  ;;  %v4299_v63 = vunpack.c.h.bf16 %v5067_v44  ;;  %v3093_v44 = vmul.f32 1.442695, %v3092_v27 }
 0x62e   : > { %v1840_v7 = vmul.f32 1.442695, %v1839_v0  ;;  %v5404_v20 = vmul.f32 %v4693_v24, %v4299_v63 }
 0x62f   : > { %v2205_v9 = vpop.xlane.xlu1 %2204 }
 0x630   : > { %4696 = vpow2.f32 %v1840_v7  ;;  %v2206_v2 = vsub.f32 %v5318_v3, %v2205_v9  ;;  %v1670_v38 = vsel %vm698_vm11, %v5404_v20, 0.0 }
 0x631   : > { %4698 = vpow2.f32 %v2013_v10 }
 0x632   : > { %v2207_v54 = vmul.f32 1.442695, %v2206_v2  ;;  %v5430_v2 = vpop.permute.xlu0 %2220 }
 0x633   : > { %v2551_v14 = vpop.xlane.xlu1 %2550 }
 0x634   : > { %v2552_v17 = vsub.f32 %v5324_v5, %v2551_v14  ;;  %4700 = vpow2.f32 %v2207_v54  ;;  %v2380_v5 = vmul.f32 1.442695, %v2379_v11 }
 0x636   : > { %v2553_v28 = vmul.f32 1.442695, %v2552_v17  ;;  %v5442_v11 = vpop.permute.xlu0 %2393 }
 0x637   : > { %v2918_v52 = vpop.xlane.xlu1 %2917 }
 0x638   : > { %v2919_v3 = vsub.f32 %v5330_v8, %v2918_v52  ;;  %4702 = vpow2.f32 %v2553_v28  ;;  %v1673_v8 = vsel %vm698_vm11, %v4693_v24, 0.0 }
 0x639   : > { %v4695_v25 = vpop.eup %4694  ;;  %4704 = vpow2.f32 %v2380_v5 }
 0x63a   : > { %v1500_v29 = vsel %vm698_vm11, %v4695_v25, 0.0  ;;  %v5400_v30 = vmul.f32 %v4695_v25, %v4299_v63  ;;  %v2920_v49 = vmul.f32 1.442695, %v2919_v3  ;;  %4706 = vpow2.f32 %v3093_v44 }
 0x63b   : > { %v3264_v36 = vpop.xlane.xlu1 %3263  ;;  %1501 = vadd.xlane.f32.xlu1 %v1500_v29  ;;  %v5452_v29 = vpop.permute.xlu0 %2566 }
 0x63c   : > { %v1497_v37 = vsel %vm698_vm11, %v5400_v30, 0.0  ;;  %v3265_v39 = vsub.f32 %v5336_v12, %v3264_v36  ;;  %4708 = vpow2.f32 %v2920_v49  ;;  %v4304_v12 = vld [vmem:[%s5713_s1 + $0x8] sm:$0xff]  }
 0x63d   : > { %v4697_v55 = vpop.eup %4696  ;;  %1498 = vadd.xlane.f32.xlu0 %v1497_v37  ;;  %v4302_v61 = vunpack.c.l.bf16 %v4304_v12  ;;  %v4303_v9 = vunpack.c.h.bf16 %v4304_v12 }
 0x63e   : > { %v5410_v41 = vmul.f32 %v4697_v55, %v4299_v63  ;;  %v4699_v46 = vpop.eup %4698  ;;  %v3266_v57 = vmul.f32 1.442695, %v3265_v39  ;;  %v1846_v43 = vsel %vm698_vm11, %v4697_v55, 0.0 }
 0x63f   : > { %1674 = vadd.xlane.f32.xlu1 %v1673_v8  ;;  %v5419_v50 = vmul.f32 %v4699_v46, %v4299_v63  ;;  %v2019_v59 = vsel %vm698_vm11, %v4699_v46, 0.0  ;;  %v5475_v47 = vpop.permute.xlu1 %2026 }
 0x640   : > { %v1843_v31 = vsel %vm698_vm11, %v5410_v41, 0.0  ;;  %4710 = vpow2.f32 %v3266_v57 }
 0x641   : > { %1671 = vadd.xlane.f32.xlu0 %v1670_v38  ;;  %v4701_v58 = vpop.eup %4700  ;;  %v2016_v35 = vsel %vm698_vm11, %v5419_v50, 0.0  ;;  %4712 = vpow2.f32 %v2726_v60 }
 0x642   : > { %v5424_v1 = vmul.f32 %v4701_v58, %v4302_v61  ;;  %v2213_v34 = vsel %vm698_vm11, %v4701_v58, 0.0 }
 0x643   : > { %1847 = vadd.xlane.f32.xlu1 %v1846_v43 }
 0x644   : > { %v2210_v45 = vsel %vm698_vm11, %v5424_v1, 0.0 }
 0x645   : > { %1844 = vadd.xlane.f32.xlu0 %v1843_v31  ;;  %v4703_v4 = vpop.eup %4702 }
 0x646   : > { %v4705_v0 = vpop.eup %4704  ;;  %v2559_v7 = vsel %vm698_vm11, %v4703_v4, 0.0  ;;  %v5440_v24 = vmul.f32 %v4703_v4, %v4302_v61 }
 0x647   : > { %2020 = vadd.xlane.f32.xlu1 %v2019_v59  ;;  %v4707_v6 = vpop.eup %4706  ;;  %v2386_v13 = vsel %vm698_vm11, %v4705_v0, 0.0  ;;  %v5433_v14 = vmul.f32 %v4705_v0, %v4302_v61 }
 0x648   : > { %v5436_v15 = vmul.f32 %v4707_v6, %v4303_v9  ;;  %v2556_v27 = vsel %vm698_vm11, %v5440_v24, 0.0  ;;  %v3099_v38 = vsel %vm698_vm11, %v4707_v6, 0.0 }
 0x649   : > { %2017 = vadd.xlane.f32.xlu0 %v2016_v35  ;;  %v4709_v10 = vpop.eup %4708  ;;  %v2383_v52 = vsel %vm698_vm11, %v5433_v14, 0.0 }
 0x64a   : > { %v2926_v54 = vsel %vm698_vm11, %v4709_v10, 0.0  ;;  %v3096_v63 = vsel %vm698_vm11, %v5436_v15, 0.0  ;;  %v5460_v49 = vmul.f32 %v4709_v10, %v4303_v9 }
 0x64b   : > { %2214 = vadd.xlane.f32.xlu1 %v2213_v34 }
 0x64c   : > { %v2923_v8 = vsel %vm698_vm11, %v5460_v49, 0.0 }
 0x64d   : > { %2211 = vadd.xlane.f32.xlu0 %v2210_v45  ;;  %v4711_v17 = vpop.eup %4710 }
 0x64e   : > { %v5446_v25 = vmul.f32 %v4711_v17, %v4303_v9  ;;  %v4713_v28 = vpop.eup %4712  ;;  %v3272_v46 = vsel %vm698_vm11, %v4711_v17, 0.0 }
 0x64f   : > { %2560 = vadd.xlane.f32.xlu1 %v2559_v7  ;;  %v2732_v36 = vsel %vm698_vm11, %v4713_v28, 0.0  ;;  %v5455_v5 = vmul.f32 %v4713_v28, %v4302_v61 }
 0x650   : > { %v3269_v3 = vsel %vm698_vm11, %v5446_v25, 0.0 }
 0x651   : > { %2387 = vadd.xlane.f32.xlu0 %v2386_v13  ;;  %v2729_v44 = vsel %vm698_vm11, %v5455_v5, 0.0 }
 0x653   : > { %2927 = vadd.xlane.f32.xlu1 %v2926_v54 }
 0x655   : > { %2384 = vadd.xlane.f32.xlu0 %v2383_v52 }
 0x657   : > { %3097 = vadd.xlane.f32.xlu1 %v3096_v63 }
 0x659   : > { %2557 = vadd.xlane.f32.xlu0 %v2556_v27 }
 0x65b   : > { %3270 = vadd.xlane.f32.xlu1 %v3269_v3 }
 0x65d   : > { %2733 = vadd.xlane.f32.xlu0 %v2732_v36 }
 0x65f   : > { %v3437_v37 = vpop.xlane.xlu0 %3436 }
 0x660   : > { %v3438_v55 = vsub.f32 %v5352_v16, %v3437_v37 }
 0x661   : > { %2730 = vadd.xlane.f32.xlu0 %v2729_v44 }
 0x662   : > { %v3439_v39 = vmul.f32 1.442695, %v3438_v55 }
 0x663   : > { %v5479_v58 = vpop.permute.xlu0 %2739 }
 0x664   : > { %4714 = vpow2.f32 %v3439_v39 }
 0x665   : > { %2924 = vadd.xlane.f32.xlu0 %v2923_v8 }
 0x669   : > { %3100 = vadd.xlane.f32.xlu0 %v3099_v38 }
 0x66d   : > { %3273 = vadd.xlane.f32.xlu0 %v3272_v46 }
 0x671   : > { %v4715_v57 = vpop.eup %4714 }
 0x672   : > { %v3445_v16 = vsel %vm698_vm11, %v4715_v57, 0.0  ;;  %v5467_v43 = vmul.f32 %v4715_v57, %v4303_v9 }
 0x673   : > { %3446 = vadd.xlane.f32.xlu0 %v3445_v16 }
 0x674   : > { %v3442_v12 = vsel %vm698_vm11, %v5467_v43, 0.0 }
 0x675   : > { %3443 = vadd.xlane.f32.xlu1 %v3442_v12 }
 0x686   : > { %2933 = vrot.lane.b32.xlu1 %v5110_v56, %s4868_s14  ;;  %s4878_s14 = smov 8  }
 0x689   : > { %3106 = vrot.lane.b32.xlu0 %v5110_v56, %s4876_s27 }
 0x68d   : > { %3279 = vrot.lane.b32.xlu0 %v5110_v56, %s4875_s26  ;;  %s4880_s26 = smov 24  }
 0x68f   : > { %v960_v31 = vpop.xlane.xlu1 %959 }
 0x690   : > { %v961_v59 = vmul.f32 1e-05, %v960_v31 }
 0x691   : > { %3452 = vrot.lane.b32.xlu0 %v5110_v56, %s4877_s28  ;;  %s4269_s28 = sshll.u32 %s4854_s17, 1 }
 0x692   : > { %s5664_s12 = scalar_lea.vmem %s5722_s10, %s4269_s28 }
 0x693   : > { %v1133_v61 = vpop.xlane.xlu1 %1132 }
 0x694   : > { %v957_v60 = vpop.xlane.xlu0 %956  ;;  %v1134_v34 = vmul.f32 1e-05, %v1133_v61 }
 0x695   : > { %v962_v35 = vadd.f32 %v961_v59, %v957_v60 }
 0x697   : > { %4716 = vrcp.f32 %v962_v35  ;;  %v1306_v4 = vpop.xlane.xlu1 %1305 }
 0x698   : > { %v1130_v45 = vpop.xlane.xlu0 %1129  ;;  %v1307_v6 = vmul.f32 1e-05, %v1306_v4 }
 0x699   : > { %v1135_v0 = vadd.f32 %v1134_v34, %v1130_v45 }
 0x69b   : > { %4718 = vrcp.f32 %v1135_v0 }
 0x69c   : > { %v1303_v7 = vpop.xlane.xlu0 %1302 }
 0x69d   : > { %v1308_v9 = vadd.f32 %v1307_v6, %v1303_v7 }
 0x69f   : > { %4720 = vrcp.f32 %v1308_v9 }
 0x6a4   : > { %v4717_v10 = vpop.eup %4716 }
 0x6a5   : > { %v964_v13 = vmul.f32 %v4717_v10, %v5371_v40 }
 0x6a7   : > { %4433 = vmatmul.mubr.msk.f32.vlgmr.msra.gmra.mxu0 %vm698_vm11, %v964_v13 }
 0x6a8   : > { %v4719_v56 = vpop.eup %4718  ;;  %4441 = vmatpush3.msra.mxu0 %v5356_v18  ;;  %4442 = vmatprep.mubr.msk.f32.mxu0 %vm4865_vm6, %v4864_v62 }
 0x6a9   : > { %4450 = vmatprep.subr.mxu0 %v4864_v62  ;;  %v1137_v54 = vmul.f32 %v4719_v56, %v5377_v42 }
 0x6ab   : > { %4443 = vmatmul.mubr.msk.f32.vlgmr.msra.gmra.mxu0 %vm698_vm11, %v1137_v54 }
 0x6ac   : > { %v4721_v17 = vpop.eup %4720  ;;  %4451 = vmatpush3.msra.mxu0 %v5362_v21  ;;  %4452 = vmatprep.mubr.msk.f32.mxu0 %vm4865_vm6, %v4864_v62 }
 0x6ad   : > { %4460 = vmatprep.subr.mxu0 %v4864_v62  ;;  %v1310_v40 = vmul.f32 %v4721_v17, %v5383_v32 }
 0x6af   : > { %4453 = vmatmul.mubr.msk.f32.vlgmr.msra.gmra.mxu0 %vm698_vm11, %v1310_v40 }
 0x6b0   : > { %4461 = vmatpush3.msra.mxu0 %v5358_v19  ;;  %4462 = vmatprep.mubr.msk.f32.mxu0 %vm4865_vm6, %v4864_v62 }
 0x6b1   : > { %4470 = vmatprep.subr.mxu0 %v4864_v62 }
 0x6c4   : > { %v1502_v18 = vpop.xlane.xlu1 %1501 }
 0x6c5   : > { %v1503_v42 = vmul.f32 1e-05, %v1502_v18 }
 0x6c6   : > { %v1499_v52 = vpop.xlane.xlu0 %1498 }
 0x6c7   : > { %v1504_v21 = vadd.f32 %v1503_v42, %v1499_v52 }
 0x6c8   : > { %v1675_v63 = vpop.xlane.xlu1 %1674 }
 0x6c9   : > { %4722 = vrcp.f32 %v1504_v21  ;;  %v1676_v27 = vmul.f32 1e-05, %v1675_v63 }
 0x6ca   : > { %v1672_v28 = vpop.xlane.xlu0 %1671 }
 0x6cb   : > { %v1677_v3 = vadd.f32 %v1676_v27, %v1672_v28 }
 0x6cc   : > { %v1848_v36 = vpop.xlane.xlu1 %1847 }
 0x6cd   : > { %4724 = vrcp.f32 %v1677_v3  ;;  %v1849_v32 = vmul.f32 1e-05, %v1848_v36 }
 0x6ce   : > { %v1845_v37 = vpop.xlane.xlu0 %1844 }
 0x6cf   : > { %v1850_v55 = vadd.f32 %v1849_v32, %v1845_v37 }
 0x6d0   : > { %v2021_v19 = vpop.xlane.xlu1 %2020 }
 0x6d1   : > { %4726 = vrcp.f32 %v1850_v55  ;;  %v2022_v44 = vmul.f32 1e-05, %v2021_v19 }
 0x6d2   : > { %v2018_v39 = vpop.xlane.xlu0 %2017 }
 0x6d3   : > { %v2023_v8 = vadd.f32 %v2022_v44, %v2018_v39 }
 0x6d4   : > { %v2215_v38 = vpop.xlane.xlu1 %2214 }
 0x6d5   : > { %4728 = vrcp.f32 %v2023_v8  ;;  %v2216_v46 = vmul.f32 1e-05, %v2215_v38 }
 0x6d6   : > { %v4723_v57 = vpop.eup %4722  ;;  %v2212_v16 = vpop.xlane.xlu0 %2211 }
 0x6d7   : > { %v2217_v12 = vadd.f32 %v2216_v46, %v2212_v16  ;;  %v1506_v31 = vmul.f32 %v4723_v57, %v5400_v30 }
 0x6d8   : > { %v2561_v4 = vpop.xlane.xlu1 %2560 }
 0x6d9   : > { %4730 = vrcp.f32 %v2217_v12  ;;  %4463 = vmatmul.mubr.msk.f32.vlgmr.msra.gmra.mxu0 %vm698_vm11, %v1506_v31  ;;  %v2562_v0 = vmul.f32 1e-05, %v2561_v4 }
 0x6da   : > { %v4725_v59 = vpop.eup %4724  ;;  %4471 = vmatpush3.msra.mxu0 %v5387_v53  ;;  %v2388_v61 = vpop.xlane.xlu0 %2387  ;;  %4472 = vmatprep.mubr.msk.f32.mxu0 %vm4865_vm6, %v4864_v62 }
 0x6db   : > { %4480 = vmatprep.subr.mxu0 %v4864_v62  ;;  %v1679_v60 = vmul.f32 %v4725_v59, %v5404_v20  ;;  %v2389_v35 = vmul.f32 1e-05, %v2388_v61 }
 0x6dc   : > { %v2928_v13 = vpop.xlane.xlu1 %2927 }
 0x6dd   : > { %4473 = vmatmul.mubr.msk.f32.vlgmr.msra.gmra.mxu0 %vm698_vm11, %v1679_v60  ;;  %v479_v60 = vld [vmem:[%s476_s29 + $0x10] sm:$0xff] }
 0x6de   : > { %v4727_v34 = vpop.eup %4726  ;;  %4481 = vmatpush3.msra.mxu0 %v5364_v22  ;;  %v2385_v30 = vpop.xlane.xlu0 %2384  ;;  %4482 = vmatprep.mubr.msk.f32.mxu0 %vm4865_vm6, %v4864_v62 }
 0x6df   : > { %v2390_v53 = vadd.f32 %v2389_v35, %v2385_v30  ;;  %4490 = vmatprep.subr.mxu0 %v4864_v62  ;;  %v1852_v45 = vmul.f32 %v4727_v34, %v5410_v41  ;;  %v478_v35 = vld [vmem:[%s476_s29 + $0x8] sm:$0xff]  ;;  %v477_v34 = vld [vmem:[%s476_s29] sm:$0xff] }
 0x6e0   : > { %v3098_v42 = vpop.xlane.xlu1 %3097 }
 0x6e1   : > { %4732 = vrcp.f32 %v2390_v53  ;;  %4483 = vmatmul.mubr.msk.f32.vlgmr.msra.gmra.mxu0 %vm698_vm11, %v1852_v45 }
 0x6e2   : > { %v4729_v20 = vpop.eup %4728  ;;  %4491 = vmatpush3.msra.mxu0 %v5475_v47  ;;  %v2558_v6 = vpop.xlane.xlu0 %2557  ;;  %4492 = vmatprep.mubr.msk.f32.mxu0 %vm4865_vm6, %v4864_v62 }
 0x6e3   : > { %v2563_v22 = vadd.f32 %v2562_v0, %v2558_v6  ;;  %4500 = vmatprep.subr.mxu0 %v4864_v62  ;;  %v2025_v7 = vmul.f32 %v4729_v20, %v5419_v50 }
 0x6e4   : > { %v3271_v27 = vpop.xlane.xlu1 %3270 }
 0x6e5   : > { %4734 = vrcp.f32 %v2563_v22  ;;  %4493 = vmatmul.mubr.msk.f32.vlgmr.msra.gmra.mxu0 %vm698_vm11, %v2025_v7 }
 0x6e6   : > { %v4731_v41 = vpop.eup %4730  ;;  %4501 = vmatpush3.msra.mxu0 %v5430_v2  ;;  %v2734_v9 = vpop.xlane.xlu0 %2733  ;;  %4502 = vmatprep.mubr.msk.f32.mxu0 %vm4865_vm6, %v4864_v62  ;;  %v2929_v2 = vmul.f32 1e-05, %v2928_v13 }
 0x6e7   : > { %4510 = vmatprep.subr.mxu0 %v4864_v62  ;;  %v2219_v47 = vmul.f32 %v4731_v41, %v5424_v1  ;;  %v2735_v10 = vmul.f32 1e-05, %v2734_v9 }
 0x6e9   : > { %4503 = vmatmul.mubr.msk.f32.vlgmr.msra.gmra.mxu0 %vm698_vm11, %v2219_v47 }
 0x6ea   : > { %4511 = vmatpush3.msra.mxu0 %v5442_v11  ;;  %v2731_v50 = vpop.xlane.xlu0 %2730  ;;  %4512 = vmatprep.mubr.msk.f32.mxu0 %vm4865_vm6, %v4864_v62 }
 0x6eb   : > { %v2736_v56 = vadd.f32 %v2735_v10, %v2731_v50  ;;  %4520 = vmatprep.subr.mxu0 %v4864_v62 }
 0x6ed   : > { %4736 = vrcp.f32 %v2736_v56 }
 0x6ee   : > { %v4733_v54 = vpop.eup %4732  ;;  %v2925_v17 = vpop.xlane.xlu0 %2924 }
 0x6ef   : > { %v2930_v40 = vadd.f32 %v2929_v2, %v2925_v17  ;;  %v2392_v1 = vmul.f32 %v4733_v54, %v5433_v14 }
 0x6f1   : > { %4513 = vmatmul.mubr.msk.f32.vlgmr.msra.gmra.mxu0 %vm698_vm11, %v2392_v1  ;;  %4738 = vrcp.f32 %v2930_v40 }
 0x6f2   : > { %v4735_v18 = vpop.eup %4734  ;;  %4521 = vmatpush3.msra.mxu0 %v5452_v29  ;;  %v3101_v11 = vpop.xlane.xlu0 %3100  ;;  %4522 = vmatprep.mubr.msk.f32.mxu0 %vm4865_vm6, %v4864_v62 }
 0x6f3   : > { %v3102_v52 = vmul.f32 1e-05, %v3101_v11  ;;  %4530 = vmatprep.subr.mxu0 %v4864_v62  ;;  %v2565_v21 = vmul.f32 %v4735_v18, %v5440_v24 }
 0x6f5   : > { %v3103_v63 = vadd.f32 %v3102_v52, %v3098_v42  ;;  %4523 = vmatmul.mubr.msk.f32.vlgmr.msra.gmra.mxu0 %vm698_vm11, %v2565_v21 }
 0x6f6   : > { %4531 = vmatpush3.msra.mxu0 %v5479_v58  ;;  %v3274_v14 = vpop.xlane.xlu0 %3273  ;;  %4532 = vmatprep.mubr.msk.f32.mxu0 %vm4865_vm6, %v4864_v62 }
 0x6f7   : > { %4740 = vrcp.f32 %v3103_v63  ;;  %v3275_v29 = vmul.f32 1e-05, %v3274_v14  ;;  %4540 = vmatprep.subr.mxu0 %v4864_v62 }
 0x6f9   : > { %v3276_v28 = vadd.f32 %v3275_v29, %v3271_v27 }
 0x6fa   : > { %v4737_v3 = vpop.eup %4736 }
 0x6fb   : > { %4742 = vrcp.f32 %v3276_v28  ;;  %v2738_v36 = vmul.f32 %v4737_v3, %v5455_v5 }
 0x6fc   : > { %v3447_v24 = vpop.xlane.xlu0 %3446 }
 0x6fd   : > { %v3448_v32 = vmul.f32 1e-05, %v3447_v24  ;;  %4533 = vmatmul.mubr.msk.f32.vlgmr.msra.gmra.mxu0 %vm698_vm11, %v2738_v36 }
 0x6fe   : > { %v3444_v37 = vpop.xlane.xlu1 %3443  ;;  %4542 = vmatprep.mubr.msk.f32.mxu0 %vm4865_vm6, %v4864_v62  ;;  %v4739_v58 = vpop.eup %4738 }
 0x6ff   : > { %v3449_v55 = vadd.f32 %v3448_v32, %v3444_v37  ;;  %v2932_v39 = vmul.f32 %v4739_v58, %v5460_v49 }
 0x700   : > { %v3107_v19 = vpop.permute.xlu0 %3106 }
 0x701   : > { %4744 = vrcp.f32 %v3449_v55 }
 0x702   : > { %v2934_v44 = vpop.permute.xlu1 %2933 }
 0x703   : > { %4541 = vmatpush3.msra.mxu0 %v2934_v44 }
 0x704   : > { %v4741_v8 = vpop.eup %4740  ;;  %4543 = vmatmul.mubr.msk.f32.vlgmr.msra.gmra.mxu0 %vm698_vm11, %v2932_v39  ;;  %4550 = vmatprep.subr.mxu0 %v4864_v62  ;;  %v3280_v38 = vpop.permute.xlu0 %3279 }
 0x705   : > { %4551 = vmatpush3.msra.mxu0 %v3107_v19  ;;  %4552 = vmatprep.mubr.msk.f32.mxu0 %vm4865_vm6, %v4864_v62  ;;  %v3105_v5 = vmul.f32 %v4741_v8, %v5436_v15 }
 0x706   : > { %4560 = vmatprep.subr.mxu0 %v4864_v62 }
 0x708   : > { %v4743_v46 = vpop.eup %4742  ;;  %4553 = vmatmul.mubr.msk.f32.vlgmr.msra.gmra.mxu0 %vm698_vm11, %v3105_v5  ;;  %v3453_v57 = vpop.permute.xlu0 %3452 }
 0x709   : > { %4561 = vmatpush3.msra.mxu0 %v3280_v38  ;;  %4562 = vmatprep.mubr.msk.f32.mxu0 %vm4865_vm6, %v4864_v62  ;;  %v3278_v49 = vmul.f32 %v4743_v46, %v5446_v25 }
 0x70a   : > { %4570 = vmatprep.subr.mxu0 %v4864_v62 }
 0x70c   : > { %4563 = vmatmul.mubr.msk.f32.vlgmr.msra.gmra.mxu0 %vm698_vm11, %v3278_v49 }
 0x70d   : > { %4571 = vmatpush3.msra.mxu0 %v3453_v57  ;;  %4572 = vmatprep.mubr.msk.f32.mxu0 %vm4865_vm6, %v4864_v62  ;;  %vm1402_vm6 = vcmask 195584  }
 0x70e   : > { %v4745_v15 = vpop.eup %4744 }
 0x70f   : > { %v3451_v16 = vmul.f32 %v4745_v15, %v5467_v43  ;;  %v480_v43 = vld [vmem:[%s476_s29 + $0x18] sm:$0xff]  ;;  %v4264_v15 = vld [vmem:[%s481_s13] ss:$0 sm:$0xff] }
 0x710   : > { %4575 = vmatprep.subr.mxu1 %v480_v43 }
 0x711   : > { %4573 = vmatmul.mubr.msk.f32.vlgmr.msra.gmra.mxu0 %vm698_vm11, %v3451_v16  ;;  %4576 = vmatpush3.msra.mxu1 %v480_v43 }
 0x712   : > { %4577 = vmatprep.subr.mxu1 %v479_v60 }
 0x713   : > { %4578 = vmatpush3.msra.mxu1 %v479_v60 }
 0x714   : > { %4579 = vmatprep.subr.mxu1 %v478_v35 }
 0x715   : > { %4580 = vmatpush3.msra.mxu1 %v478_v35 }
 0x716   : > { %4581 = vmatprep.subr.mxu1 %v477_v34 }
 0x717   : > { %4582 = vmatpush3.msra.mxu1 %v477_v34 }
 0x767   : > { %v1037_v12 = vpop.f32.mrf.mxu0 }
 0x768   : > { %1388 = vrot.lane.b32.xlu0 %v1037_v12, %s4878_s14 }
 0x769   : > { %v4434_v25 = vpop.f32.mrf.mxu0 }
 0x76b   : > { %v1210_v31 = vpop.f32.mrf.mxu0 }
 0x76c   : > { %1392 = vrot.lane.b32.xlu1 %v1210_v31, %s4879_s25 }
 0x76d   : > { %v4444_v59 = vpop.f32.mrf.mxu0 }
 0x76f   : > { %v1383_v61 = vpop.f32.mrf.mxu0 }
 0x770   : > { %1396 = vrot.lane.b32.xlu1 %v1383_v61, %s4880_s26 }
 0x771   : > { %v4454_v62 = vpop.f32.mrf.mxu0 }
 0x799   : > { %v1579_v4 = vpop.f32.mrf.mxu0 }
 0x79b   : > { %v4464_v30 = vpop.f32.mrf.mxu0 }
 0x79d   : > { %v1752_v53 = vpop.f32.mrf.mxu0 }
 0x79e   : > { %2103 = vrot.lane.b32.xlu0 %v1752_v53, %s4878_s14 }
 0x79f   : > { %v4474_v45 = vpop.f32.mrf.mxu0 }
 0x7a1   : > { %v1925_v0 = vpop.f32.mrf.mxu0 }
 0x7a2   : > { %2107 = vrot.lane.b32.xlu0 %v1925_v0, %s4879_s25 }
 0x7a3   : > { %v4484_v20 = vpop.f32.mrf.mxu0 }
 0x7a5   : > { %v2098_v6 = vpop.f32.mrf.mxu0 }
 0x7a6   : > { %2111 = vrot.lane.b32.xlu1 %v2098_v6, %s4880_s26 }
 0x7a7   : > { %v4494_v22 = vpop.f32.mrf.mxu0 }
 0x7a9   : > { %v2292_v7 = vpop.f32.mrf.mxu0 }
 0x7ab   : > { %v4504_v41 = vpop.f32.mrf.mxu0 }
 0x7b1   : > { %v2465_v9 = vpop.f32.mrf.mxu0 }
 0x7b2   : > { %2816 = vrot.lane.b32.xlu0 %v2465_v9, %s4878_s14 }
 0x7b3   : > { %v4514_v47 = vpop.f32.mrf.mxu0 }
 0x7b5   : > { %v2638_v10 = vpop.f32.mrf.mxu0 }
 0x7b6   : > { %2820 = vrot.lane.b32.xlu1 %v2638_v10, %s4879_s25 }
 0x7b7   : > { %v4524_v13 = vpop.f32.mrf.mxu0 }
 0x7bd   : > { %v2811_v50 = vpop.f32.mrf.mxu0 }
 0x7be   : > { %2824 = vrot.lane.b32.xlu1 %v2811_v50, %s4880_s26 }
 0x7bf   : > { %v4534_v56 = vpop.f32.mrf.mxu0 }
 0x7c4   : > { %v3005_v2 = vpop.f32.mrf.mxu0 }
 0x7c6   : > { %v4544_v54 = vpop.f32.mrf.mxu0 }
 0x7c8   : > { %v3178_v17 = vpop.f32.mrf.mxu0 }
 0x7c9   : > { %3529 = vrot.lane.b32.xlu0 %v3178_v17, %s4878_s14 }
 0x7ca   : > { %v4554_v40 = vpop.f32.mrf.mxu0 }
 0x7cc   : > { %v3351_v1 = vpop.f32.mrf.mxu0 }
 0x7cd   : > { %3533 = vrot.lane.b32.xlu0 %v3351_v1, %s4879_s25 }
 0x7ce   : > { %v4564_v18 = vpop.f32.mrf.mxu0 }
 0x7d1   : > { %v3524_v42 = vpop.f32.mrf.mxu0 }
 0x7d2   : > { %3537 = vrot.lane.b32.xlu1 %v3524_v42, %s4880_s26 }
 0x7d3   : > { %v4574_v11 = vpop.f32.mrf.mxu0 }
 0x7da   : > { %v1389_v52 = vpop.permute.xlu0 %1388 }
 0x7db   : > { %v1399_v63 = vsel %vm698_vm11, %v5227_v33, %v1389_v52 }
 0x7de   : > { %v1393_v21 = vpop.permute.xlu1 %1392 }
 0x7df   : > { %v1401_v14 = vsel %vm1400_vm5, %v1399_v63, %v1393_v21 }
 0x7e2   : > { %v1397_v29 = vpop.permute.xlu1 %1396 }
 0x7e3   : > { %v1403_v27 = vsel %vm1402_vm6, %v1401_v14, %v1397_v29 }
 0x7e4   : > { %4583 = vmatprep.mubr.msk.f32.mxu1 %vm483_vm1, %v1403_v27 }
 0x810   : > { %v2104_v28 = vpop.permute.xlu0 %2103 }
 0x811   : > { %v2114_v36 = vsel %vm698_vm11, %v1579_v4, %v2104_v28 }
 0x814   : > { %v2108_v3 = vpop.permute.xlu0 %2107 }
 0x815   : > { %v2115_v24 = vsel %vm1400_vm5, %v2114_v36, %v2108_v3 }
 0x818   : > { %v2112_v32 = vpop.permute.xlu1 %2111 }
 0x819   : > { %v2116_v37 = vsel %vm1402_vm6, %v2115_v24, %v2112_v32 }
 0x81a   : > { %4584 = vmatmul.mubr.msk.f32.vlgmr.msra.gmra.mxu1 %vm483_vm1, %v2116_v37 }
 0x824   : > { %v2817_v33 = vpop.permute.xlu0 %2816 }
 0x825   : > { %v2827_v55 = vsel %vm698_vm11, %v2292_v7, %v2817_v33 }
 0x828   : > { %v2821_v58 = vpop.permute.xlu1 %2820 }
 0x829   : > { %v2828_v19 = vsel %vm1400_vm5, %v2827_v55, %v2821_v58 }
 0x830   : > { %v2825_v44 = vpop.permute.xlu1 %2824 }
 0x831   : > { %v2829_v39 = vsel %vm1402_vm6, %v2828_v19, %v2825_v44 }
 0x832   : > { %4586 = vmatprep.mubr.msk.f32.mxu1 %vm483_vm1, %v2829_v39 }
 0x83b   : > { %v3530_v8 = vpop.permute.xlu0 %3529 }
 0x83c   : > { %v3540_v38 = vsel %vm698_vm11, %v3005_v2, %v3530_v8 }
 0x83f   : > { %v3534_v5 = vpop.permute.xlu0 %3533 }
 0x840   : > { %v3541_v46 = vsel %vm1400_vm5, %v3540_v38, %v3534_v5 }
 0x844   : > { %v3538_v49 = vpop.permute.xlu1 %3537 }
 0x845   : > { %v3542_v57 = vsel %vm1402_vm6, %v3541_v46, %v3538_v49 }
 0x846   : > { %4587 = vmatmul.mubr.msk.f32.gmra.mxu1 %vm483_vm1, %v3542_v57 }
 0x8da   : > { %v4585_v16 = vpop.f32.mrf.mxu1 }
 0x8db   : > { %v3633_v12 = vadd.f32 %v4585_v16, %v4264_v15 }
 0x8dc   : > { %v3627_v25 = vpop.f32.mrf.mxu1 }
 0x8dd   : > { %v3647_v31 = vmin.f32 %v3633_v12, 30.0  ;;  %v3628_v59 = vadd.f32 %v4264_v15, %v3627_v25  ;;  %v3778_v25 = vld [vmem:[%s5616_s23 + $0x8] sm:$0xff] }
 0x8df   : > { %v3652_v61 = vmul.f32 1.442695, %v3647_v31  ;;  %v3646_v62 = vmin.f32 %v3628_v59, 30.0 }
 0x8e1   : > { %4746 = vpow2.f32 %v3652_v61  ;;  %v3650_v43 = vmul.f32 1.442695, %v3646_v62 }
 0x8e3   : > { %4748 = vpow2.f32 %v3650_v43 }
 0x8ee   : > { %v4747_v60 = vpop.eup %4746 }
 0x8ef   : > { %v3659_v35 = vadd.f32 2.0, %v4747_v60 }
 0x8f0   : > { %v4749_v34 = vpop.eup %4748 }
 0x8f1   : > { %v3663_v4 = vmul.f32 %v4747_v60, %v3659_v35  ;;  %v3658_v30 = vadd.f32 2.0, %v4749_v34 }
 0x8f3   : > { %v3667_v53 = vadd.f32 2.0, %v3663_v4  ;;  %v3662_v45 = vmul.f32 %v4749_v34, %v3658_v30 }
 0x8f5   : > { %4750 = vrcp.f32 %v3667_v53  ;;  %v3666_v0 = vadd.f32 2.0, %v3662_v45 }
 0x8f7   : > { %4752 = vrcp.f32 %v3666_v0 }
 0x902   : > { %v4751_v20 = vpop.eup %4750 }
 0x903   : > { %v3675_v6 = vmul.f32 %v4751_v20, %v3663_v4 }
 0x904   : > { %v4753_v22 = vpop.eup %4752 }
 0x905   : > { %v3679_v7 = vmul.f32 %v3675_v6, %v3633_v12  ;;  %v3674_v41 = vmul.f32 %v4753_v22, %v3662_v45 }
 0x906   : > { %v4588_v9 = vpop.f32.mrf.mxu1 }
 0x907   : > { %v3678_v47 = vmul.f32 %v3674_v41, %v3628_v59  ;;  %v3643_v10 = vadd.f32 %v4588_v9, %v4264_v15  ;;  %v3683_v13 = vadd.f32 %v3679_v7, %v5007_v51  ;;  %v3777_v59 = vld [vmem:[%s5616_s23] sm:$0xff] }
 0x908   : > { %v3637_v50 = vpop.f32.mrf.mxu1 }
 0x909   : > { %v3649_v56 = vmin.f32 %v3643_v10, 30.0  ;;  %v3638_v2 = vadd.f32 %v4264_v15, %v3637_v50  ;;  %v3689_v54 = vsel %vm483_vm1, %v3683_v13, 0.0  ;;  %v3682_v17 = vadd.f32 %v3678_v47, %v5001_v48  ;;  %v3779_v15 = vld [vmem:[%s5616_s23 + $0x10] sm:$0xff] }
 0x90a   : > { %3690 = vadd.xlane.f32.xlu1 %v3689_v54 }
 0x90b   : > { %v3656_v40 = vmul.f32 1.442695, %v3649_v56  ;;  %v3648_v1 = vmin.f32 %v3638_v2, 30.0  ;;  %v3686_v18 = vsel %vm483_vm1, %v3682_v17, 0.0 }
 0x90c   : > { %3687 = vadd.xlane.f32.xlu0 %v3686_v18  ;;  %v4810_v18 = vld [vmem:[%s5715_s3] ss:$0 sm:$0xff] }
 0x90d   : > { %4754 = vpow2.f32 %v3656_v40  ;;  %v3654_v42 = vmul.f32 1.442695, %v3648_v1 }
 0x90f   : > { %4756 = vpow2.f32 %v3654_v42 }
 0x91a   : > { %v4755_v11 = vpop.eup %4754 }
 0x91b   : > { %v3661_v52 = vadd.f32 2.0, %v4755_v11 }
 0x91c   : > { %v4757_v21 = vpop.eup %4756 }
 0x91d   : > { %v3665_v51 = vmul.f32 %v4755_v11, %v3661_v52  ;;  %v3660_v63 = vadd.f32 2.0, %v4757_v21  ;;  %v4811_v52 = vld [vmem:[%s5716_s4] ss:$0 sm:$0xff] }
 0x91f   : > { %v3669_v14 = vadd.f32 2.0, %v3665_v51  ;;  %v3664_v29 = vmul.f32 %v4757_v21, %v3660_v63 }
 0x921   : > { %4758 = vrcp.f32 %v3669_v14  ;;  %v3668_v27 = vadd.f32 2.0, %v3664_v29 }
 0x923   : > { %4760 = vrcp.f32 %v3668_v27 }
 0x92e   : > { %v4759_v48 = vpop.eup %4758 }
 0x92f   : > { %v3677_v28 = vmul.f32 %v4759_v48, %v3665_v51 }
 0x930   : > { %v4761_v3 = vpop.eup %4760 }
 0x931   : > { %v3676_v36 = vmul.f32 %v4761_v3, %v3664_v29  ;;  %v3681_v24 = vmul.f32 %v3677_v28, %v3643_v10 }
 0x933   : > { %v3680_v32 = vmul.f32 %v3676_v36, %v3638_v2  ;;  %v3685_v58 = vadd.f32 %v3681_v24, %v5038_v26  ;;  %v3780_v26 = vld [vmem:[%s5616_s23 + $0x18] sm:$0xff] }
 0x934   : > { %4589 = vmatprep.subr.mxu0 %v3780_v26 }
 0x935   : > { %v3684_v37 = vadd.f32 %v3680_v32, %v5032_v23  ;;  %v3695_v55 = vsel %vm483_vm1, %v3685_v58, 0.0  ;;  %4590 = vmatpush3.msra.mxu0 %v3780_v26  ;;  %v4281_v26 = vld [vmem:[%s5616_s23 + $0x38] sm:$0xff] }
 0x936   : > { %4591 = vmatprep.subr.mxu0 %v3779_v15  ;;  %4603 = vmatprep.subr.mxu1 %v4281_v26 }
 0x937   : > { %v3692_v33 = vsel %vm483_vm1, %v3684_v37, 0.0  ;;  %4592 = vmatpush3.msra.mxu0 %v3779_v15  ;;  %4604 = vmatpush3.msra.mxu1 %v4281_v26  ;;  %v4280_v15 = vld [vmem:[%s5616_s23 + $0x30] sm:$0xff] }
 0x938   : > { %3693 = vadd.xlane.f32.xlu0 %v3692_v33  ;;  %4593 = vmatprep.subr.mxu0 %v3778_v25 }
 0x939   : > { %4594 = vmatpush3.msra.mxu0 %v3778_v25  ;;  %4605 = vmatprep.subr.mxu1 %v4280_v15  ;;  %v4271_v25 = vld [vmem:[%s5664_s12] ss:$0 sm:$0xff] }
 0x93a   : > { %4595 = vmatprep.subr.mxu0 %v3777_v59  ;;  %4606 = vmatpush3.msra.mxu1 %v4280_v15 }
 0x93b   : > { %4596 = vmatpush3.msra.mxu0 %v3777_v59 }
 0x93c   : > { %3696 = vadd.xlane.f32.xlu0 %v3695_v55 }
 0x993   : > { %v3691_v19 = vpop.xlane.xlu1 %3690 }
 0x994   : > { %v3699_v44 = vmul.f32 0.03125, %v3691_v19 }
 0x995   : > { %v3688_v39 = vpop.xlane.xlu0 %3687 }
 0x996   : > { %v3703_v8 = vsub.f32 %v3683_v13, %v3699_v44  ;;  %v3698_v5 = vmul.f32 0.03125, %v3688_v39 }
 0x998   : > { %v3702_v38 = vsub.f32 %v3682_v17, %v3698_v5  ;;  %v3707_v46 = vmul.f32 %v3703_v8, %v3703_v8 }
 0x99a   : > { %v3713_v49 = vsel %vm483_vm1, %v3707_v46, 0.0  ;;  %v3706_v57 = vmul.f32 %v3702_v38, %v3702_v38 }
 0x99b   : > { %3714 = vadd.xlane.f32.xlu1 %v3713_v49 }
 0x99c   : > { %v3710_v23 = vsel %vm483_vm1, %v3706_v57, 0.0 }
 0x99d   : > { %3711 = vadd.xlane.f32.xlu0 %v3710_v23 }
 0x9c1   : > { %v3694_v16 = vpop.xlane.xlu0 %3693 }
 0x9c2   : > { %v3700_v12 = vmul.f32 0.03125, %v3694_v16  ;;  %v4279_v16 = vld [vmem:[%s5616_s23 + $0x28] sm:$0xff] }
 0x9c3   : > { %4607 = vmatprep.subr.mxu1 %v4279_v16 }
 0x9c4   : > { %v5621_v31 = vsub.f32 %v3684_v37, %v3700_v12  ;;  %4608 = vmatpush3.msra.mxu1 %v4279_v16  ;;  %v4278_v12 = vld [vmem:[%s5616_s23 + $0x20] sm:$0xff] }
 0x9c5   : > { %v3697_v61 = vpop.xlane.xlu0 %3696  ;;  %4609 = vmatprep.subr.mxu1 %v4278_v12 }
 0x9c6   : > { %v3701_v62 = vmul.f32 0.03125, %v3697_v61  ;;  %v3708_v43 = vmul.f32 %v5621_v31, %v5621_v31  ;;  %4610 = vmatpush3.msra.mxu1 %v4278_v12 }
 0x9c8   : > { %v5626_v60 = vsub.f32 %v3685_v58, %v3701_v62  ;;  %v3716_v35 = vsel %vm483_vm1, %v3708_v43, 0.0 }
 0x9c9   : > { %3717 = vadd.xlane.f32.xlu0 %v3716_v35 }
 0x9ca   : > { %v3709_v34 = vmul.f32 %v5626_v60, %v5626_v60 }
 0x9cc   : > { %v3719_v4 = vsel %vm483_vm1, %v3709_v34, 0.0 }
 0x9cd   : > { %3720 = vadd.xlane.f32.xlu1 %v3719_v4 }
 0xa24   : > { %v3715_v30 = vpop.xlane.xlu1 %3714 }
 0xa25   : > { %v3723_v53 = vmul.f32 0.032258064, %v3715_v30 }
 0xa26   : > { %v3712_v45 = vpop.xlane.xlu0 %3711 }
 0xa27   : > { %4762 = vrsqrt.f32 %v3723_v53  ;;  %v3722_v0 = vmul.f32 0.032258064, %v3712_v45  ;;  %vm3735_vm7 = vcmp.eq.f32.partialorder %v3723_v53, inf  ;;  %v3738_v22 = vand.u32 2147483648, %v3723_v53 }
 0xa28   : > { %vm3737_vm8 = vcmp.eq.f32.partialorder %v3723_v53, 0.0 }
 0xa29   : > { %4764 = vrsqrt.f32 %v3722_v0  ;;  %vm3728_vm9 = vcmp.eq.f32.partialorder %v3722_v0, inf  ;;  %v3731_v13 = vand.u32 2147483648, %v3722_v0  ;;  %vm3730_vm10 = vcmp.eq.f32.partialorder %v3722_v0, 0.0 }
 0xa34   : > { %v4763_v20 = vpop.eup %4762 }
 0xa35   : > { %v3734_v6 = vmul.f32 %v4763_v20, %v3723_v53 }
 0xa36   : > { %v4765_v7 = vpop.eup %4764 }
 0xa37   : > { %v3736_v41 = vsel %vm3735_vm7, %v3723_v53, %v3734_v6  ;;  %v3727_v47 = vmul.f32 %v4765_v7, %v3722_v0 }
 0xa38   : > { %v3739_v9 = vsel %vm3737_vm8, %v3738_v22, %v3736_v41 }
 0xa39   : > { %v3755_v10 = vadd.f32 1e-06, %v3739_v9  ;;  %v3729_v50 = vsel %vm3728_vm9, %v3722_v0, %v3727_v47 }
 0xa3a   : > { %v3732_v56 = vsel %vm3730_vm10, %v3731_v13, %v3729_v50 }
 0xa3b   : > { %4766 = vrcp.f32 %v3755_v10  ;;  %v3754_v2 = vadd.f32 1e-06, %v3732_v56 }
 0xa3d   : > { %4768 = vrcp.f32 %v3754_v2 }
 0xa48   : > { %v4767_v54 = vpop.eup %4766 }
 0xa49   : > { %v3763_v17 = vmul.f32 %v4767_v54, %v3703_v8 }
 0xa4a   : > { %v4769_v40 = vpop.eup %4768 }
 0xa4b   : > { %v3762_v1 = vmul.f32 %v4769_v40, %v3702_v38  ;;  %v3767_v42 = vmul.f32 %v4810_v18, %v3763_v17 }
 0xa4d   : > { %v3766_v11 = vmul.f32 %v4810_v18, %v3762_v1  ;;  %v5640_v51 = vadd.f32 %v4811_v52, %v3767_v42 }
 0xa4f   : > { %v5638_v21 = vadd.f32 %v4811_v52, %v3766_v11 }
 0xa51   : > { %4597 = vmatprep.mubr.msk.f32.mxu0 %vm483_vm1, %v5638_v21 }
 0xa52   : > { %v3718_v63 = vpop.xlane.xlu0 %3717  ;;  %4598 = vmatmul.mubr.msk.f32.vlgmr.msra.gmra.mxu0 %vm483_vm1, %v5640_v51 }
 0xa53   : > { %v3724_v14 = vmul.f32 0.032258064, %v3718_v63 }
 0xa55   : > { %4770 = vrsqrt.f32 %v3724_v14  ;;  %vm3742_vm11 = vcmp.eq.f32.partialorder %v3724_v14, inf  ;;  %v3745_v3 = vand.u32 2147483648, %v3724_v14  ;;  %vm3744_vm12 = vcmp.eq.f32.partialorder %v3724_v14, 0.0 }
 0xa56   : > { %v3721_v29 = vpop.xlane.xlu1 %3720 }
 0xa57   : > { %v3725_v27 = vmul.f32 0.032258064, %v3721_v29 }
 0xa59   : > { %4772 = vrsqrt.f32 %v3725_v27  ;;  %vm3749_vm13 = vcmp.eq.f32.partialorder %v3725_v27, inf  ;;  %v3752_v58 = vand.u32 2147483648, %v3725_v27  ;;  %vm3751_vm14 = vcmp.eq.f32.partialorder %v3725_v27, 0.0 }
 0xa62   : > { %v4771_v48 = vpop.eup %4770 }
 0xa63   : > { %v3741_v28 = vmul.f32 %v4771_v48, %v3724_v14 }
 0xa65   : > { %v3743_v36 = vsel %vm3742_vm11, %v3724_v14, %v3741_v28 }
 0xa66   : > { %v4773_v24 = vpop.eup %4772  ;;  %v3746_v32 = vsel %vm3744_vm12, %v3745_v3, %v3743_v36 }
 0xa67   : > { %v3756_v37 = vadd.f32 1e-06, %v3746_v32  ;;  %v3748_v33 = vmul.f32 %v4773_v24, %v3725_v27 }
 0xa69   : > { %4774 = vrcp.f32 %v3756_v37  ;;  %v3750_v55 = vsel %vm3749_vm13, %v3725_v27, %v3748_v33  ;;  %v4284_v33 = vld [vmem:[%s5664_s12 + $0x1] ss:$0 sm:$0xff] }
 0xa6a   : > { %v3753_v19 = vsel %vm3751_vm14, %v3752_v58, %v3750_v55 }
 0xa6b   : > { %v3757_v44 = vadd.f32 1e-06, %v3753_v19 }
 0xa6d   : > { %4776 = vrcp.f32 %v3757_v44 }
 0xa76   : > { %v4775_v39 = vpop.eup %4774 }
 0xa77   : > { %v3764_v8 = vmul.f32 %v4775_v39, %v5621_v31 }
 0xa79   : > { %v3768_v5 = vmul.f32 %v4810_v18, %v3764_v8 }
 0xa7a   : > { %v4777_v38 = vpop.eup %4776 }
 0xa7b   : > { %v5647_v46 = vadd.f32 %v4811_v52, %v3768_v5  ;;  %v3765_v49 = vmul.f32 %v4777_v38, %v5626_v60 }
 0xa7d   : > { %4600 = vmatprep.mubr.msk.f32.mxu0 %vm483_vm1, %v5647_v46  ;;  %v3769_v57 = vmul.f32 %v4810_v18, %v3765_v49 }
 0xa7f   : > { %v5652_v23 = vadd.f32 %v4811_v52, %v3769_v57 }
 0xa81   : > { %4601 = vmatmul.mubr.msk.f32.gmra.mxu0 %vm483_vm1, %v5652_v23 }
 0xb12   : > { %v4599_v31 = vpop.f32.mrf.mxu0 }
 0xb13   : > { %v3873_v59 = vadd.f32 %v4599_v31, %v4271_v25 }
 0xb14   : > { %v3867_v61 = vpop.f32.mrf.mxu0 }
 0xb15   : > { %v3887_v62 = vmin.f32 %v3873_v59, 30.0  ;;  %v3868_v43 = vadd.f32 %v4271_v25, %v3867_v61 }
 0xb17   : > { %v3892_v60 = vmul.f32 1.442695, %v3887_v62  ;;  %v3886_v35 = vmin.f32 %v3868_v43, 30.0 }
 0xb19   : > { %4778 = vpow2.f32 %v3892_v60  ;;  %v3890_v34 = vmul.f32 1.442695, %v3886_v35 }
 0xb1b   : > { %4780 = vpow2.f32 %v3890_v34 }
 0xb26   : > { %v4779_v4 = vpop.eup %4778 }
 0xb27   : > { %v3899_v30 = vadd.f32 2.0, %v4779_v4 }
 0xb28   : > { %v4781_v53 = vpop.eup %4780 }
 0xb29   : > { %v3903_v45 = vmul.f32 %v4779_v4, %v3899_v30  ;;  %v3898_v0 = vadd.f32 2.0, %v4781_v53 }
 0xb2b   : > { %v3907_v20 = vadd.f32 2.0, %v3903_v45  ;;  %v3902_v6 = vmul.f32 %v4781_v53, %v3898_v0 }
 0xb2d   : > { %4782 = vrcp.f32 %v3907_v20  ;;  %v3906_v22 = vadd.f32 2.0, %v3902_v6 }
 0xb2f   : > { %4784 = vrcp.f32 %v3906_v22 }
 0xb3a   : > { %v4783_v7 = vpop.eup %4782 }
 0xb3b   : > { %v3915_v9 = vmul.f32 %v4783_v7, %v3903_v45 }
 0xb3c   : > { %v4785_v41 = vpop.eup %4784 }
 0xb3d   : > { %v3914_v47 = vmul.f32 %v4785_v41, %v3902_v6  ;;  %v3919_v13 = vmul.f32 %v3915_v9, %v3873_v59 }
 0xb3f   : > { %v3918_v10 = vmul.f32 %v3914_v47, %v3868_v43 }
 0xb41   : > { %v4602_v50 = vpop.f32.mrf.mxu0  ;;  %4611 = vmatprep.mubr.msk.f32.mxu1 %vm483_vm1, %v3918_v10 }
 0xb42   : > { %v3883_v56 = vadd.f32 %v4602_v50, %v4271_v25  ;;  %4612 = vmatmul.mubr.msk.f32.vlgmr.msra.gmra.mxu1 %vm483_vm1, %v3919_v13 }
 0xb43   : > { %v3877_v2 = vpop.f32.mrf.mxu0 }
 0xb44   : > { %v3889_v54 = vmin.f32 %v3883_v56, 30.0  ;;  %v3878_v17 = vadd.f32 %v4271_v25, %v3877_v2 }
 0xb46   : > { %v3896_v40 = vmul.f32 1.442695, %v3889_v54  ;;  %v3888_v1 = vmin.f32 %v3878_v17, 30.0 }
 0xb48   : > { %4786 = vpow2.f32 %v3896_v40  ;;  %v3894_v18 = vmul.f32 1.442695, %v3888_v1 }
 0xb4a   : > { %4788 = vpow2.f32 %v3894_v18 }
 0xb55   : > { %v4787_v42 = vpop.eup %4786 }
 0xb56   : > { %v3901_v11 = vadd.f32 2.0, %v4787_v42 }
 0xb57   : > { %v4789_v52 = vpop.eup %4788 }
 0xb58   : > { %v3905_v63 = vmul.f32 %v4787_v42, %v3901_v11  ;;  %v3900_v14 = vadd.f32 2.0, %v4789_v52 }
 0xb5a   : > { %v3909_v29 = vadd.f32 2.0, %v3905_v63  ;;  %v3904_v27 = vmul.f32 %v4789_v52, %v3900_v14 }
 0xb5c   : > { %4790 = vrcp.f32 %v3909_v29  ;;  %v3908_v48 = vadd.f32 2.0, %v3904_v27 }
 0xb5e   : > { %4792 = vrcp.f32 %v3908_v48 }
 0xb69   : > { %v4791_v28 = vpop.eup %4790 }
 0xb6a   : > { %v3917_v36 = vmul.f32 %v4791_v28, %v3905_v63 }
 0xb6b   : > { %v4793_v3 = vpop.eup %4792 }
 0xb6c   : > { %v3916_v24 = vmul.f32 %v4793_v3, %v3904_v27  ;;  %v3921_v37 = vmul.f32 %v3917_v36, %v3883_v56 }
 0xb6e   : > { %v3920_v32 = vmul.f32 %v3916_v24, %v3878_v17 }
 0xb70   : > { %4614 = vmatprep.mubr.msk.f32.mxu1 %vm483_vm1, %v3920_v32 }
 0xb71   : > { %4615 = vmatmul.mubr.msk.f32.gmra.mxu1 %vm483_vm1, %v3921_v37 }
 0xc02   : > { %v4613_v58 = vpop.f32.mrf.mxu1 }
 0xc03   : > { %v4021_v55 = vadd.f32 %v4613_v58, %v4284_v33 }
 0xc04   : > { %v4015_v19 = vpop.f32.mrf.mxu1 }
 0xc05   : > { %v4035_v44 = vmin.f32 %v4021_v55, 30.0  ;;  %v4016_v39 = vadd.f32 %v4284_v33, %v4015_v19 }
 0xc07   : > { %v4040_v8 = vmul.f32 1.442695, %v4035_v44  ;;  %v4034_v5 = vmin.f32 %v4016_v39, 30.0 }
 0xc09   : > { %4794 = vpow2.f32 %v4040_v8  ;;  %v4038_v38 = vmul.f32 1.442695, %v4034_v5 }
 0xc0b   : > { %4796 = vpow2.f32 %v4038_v38 }
 0xc16   : > { %v4795_v49 = vpop.eup %4794 }
 0xc17   : > { %v4047_v57 = vadd.f32 2.0, %v4795_v49 }
 0xc18   : > { %v4797_v26 = vpop.eup %4796 }
 0xc19   : > { %v4051_v15 = vmul.f32 %v4795_v49, %v4047_v57  ;;  %v4046_v16 = vadd.f32 2.0, %v4797_v26 }
 0xc1b   : > { %v4055_v12 = vadd.f32 2.0, %v4051_v15  ;;  %v4050_v25 = vmul.f32 %v4797_v26, %v4046_v16 }
 0xc1d   : > { %4798 = vrcp.f32 %v4055_v12  ;;  %v4054_v31 = vadd.f32 2.0, %v4050_v25 }
 0xc1f   : > { %4800 = vrcp.f32 %v4054_v31 }
 0xc2a   : > { %v4799_v59 = vpop.eup %4798 }
 0xc2b   : > { %v4063_v61 = vmul.f32 %v4799_v59, %v4051_v15 }
 0xc2c   : > { %v4801_v62 = vpop.eup %4800 }
 0xc2d   : > { %v4067_v43 = vmul.f32 %v4063_v61, %v4021_v55  ;;  %v4062_v60 = vmul.f32 %v4801_v62, %v4050_v25 }
 0xc2f   : > { %v4071_v35 = vadd.f32 %v4067_v43, %v5640_v51  ;;  %v4066_v34 = vmul.f32 %v4062_v60, %v4016_v39 }
 0xc31   : > { %v4616_v4 = vpop.f32.mrf.mxu1  ;;  %4075 = vst.msk [vmem:[#allocation2 + $0x8] sm:$0xff] %vm483_vm1, %v4071_v35  ;;  %v4070_v30 = vadd.f32 %v4066_v34, %v5638_v21 }
 0xc32   : > { %v4031_v53 = vadd.f32 %v4616_v4, %v4284_v33 }
 0xc33   : > { %v4025_v45 = vpop.f32.mrf.mxu1  ;;  %4074 = vst.msk [vmem:[#allocation2] sm:$0xff] %vm483_vm1, %v4070_v30 }
 0xc34   : > { %v4037_v0 = vmin.f32 %v4031_v53, 30.0  ;;  %v4026_v20 = vadd.f32 %v4284_v33, %v4025_v45 }
 0xc36   : > { %v4044_v6 = vmul.f32 1.442695, %v4037_v0  ;;  %v4036_v22 = vmin.f32 %v4026_v20, 30.0 }
 0xc38   : > { %4802 = vpow2.f32 %v4044_v6  ;;  %v4042_v7 = vmul.f32 1.442695, %v4036_v22 }
 0xc3a   : > { %4804 = vpow2.f32 %v4042_v7 }
 0xc45   : > { %v4803_v41 = vpop.eup %4802 }
 0xc46   : > { %v4049_v9 = vadd.f32 2.0, %v4803_v41 }
 0xc47   : > { %v4805_v51 = vpop.eup %4804 }
 0xc48   : > { %v4053_v47 = vmul.f32 %v4803_v41, %v4049_v9  ;;  %v4048_v10 = vadd.f32 2.0, %v4805_v51 }
 0xc4a   : > { %v4057_v13 = vadd.f32 2.0, %v4053_v47  ;;  %v4052_v50 = vmul.f32 %v4805_v51, %v4048_v10 }
 0xc4c   : > { %4806 = vrcp.f32 %v4057_v13  ;;  %v4056_v21 = vadd.f32 2.0, %v4052_v50 }
 0xc4e   : > { %4808 = vrcp.f32 %v4056_v21 }
 0xc59   : > { %v4807_v56 = vpop.eup %4806 }
 0xc5a   : > { %v4065_v2 = vmul.f32 %v4807_v56, %v4053_v47 }
 0xc5b   : > { %v4809_v54 = vpop.eup %4808 }
 0xc5c   : > { %v4069_v17 = vmul.f32 %v4065_v2, %v4031_v53  ;;  %v4064_v40 = vmul.f32 %v4809_v54, %v4052_v50 }
 0xc5e   : > { %v4073_v1 = vadd.f32 %v4069_v17, %v5652_v23  ;;  %v4068_v18 = vmul.f32 %v4064_v40, %v4026_v20  ;;  %4081 = sbr.rel (%p4289_p5) target bundleno = 3173 (0xc65), region = 72 }
 0xc60   : > { %4077 = vst.msk [vmem:[#allocation2 + $0x18] sm:$0xff] %vm483_vm1, %v4073_v1  ;;  %v4072_v42 = vadd.f32 %v4068_v18, %v5647_v46 }
 0xc62   : > { %4076 = vst.msk [vmem:[#allocation2 + $0x10] sm:$0xff] %vm483_vm1, %v4072_v42 }
 0xc63   : > { %4082 = vst.msk [vmem:[#allocation3] sm:$0xff] %vm483_vm1, %v4070_v30  ;;  %4084 = vst.msk [vmem:[#allocation3 + $0x8] sm:$0xff] %vm483_vm1, %v4071_v35 }
 0xc64   : > { %4086 = vst.msk [vmem:[#allocation3 + $0x10] sm:$0xff] %vm483_vm1, %v4072_v42  ;;  %4088 = vst.msk [vmem:[#allocation3 + $0x18] sm:$0xff] %vm483_vm1, %v4073_v1 }
 0xc65 PF: > { %p5687_p6 = scmp.eq.s32.totalorder %s4198_s20, 1  ;;  %s4881_s15 = smov [#allocation3]  }
 0xc66   : > { %s4098_s16 = sshll.u32 %s4881_s15, 4  ;;  %s4099_s16 = int_to_ptr.vmem [resolvable:$true] %s4098_s16 }
 0xc67   : > { %s4812_s17 = scalar_lea.vmem %s4099_s16, 512  ;;  %p4819_p10 = scmp.lt.s32.totalorder %s4099_s16, %s4099_s16 }
 0xc68   : > { %p4813_p7 = scmp.ne.s32.totalorder %s4099_s16, %s4812_s17  ;;  %p4820_p11 = scmp.lt.s32.totalorder %s4812_s17, %s4812_s17 }
 0xc6a   : > { %p4814_p8 = pnand %p4813_p7, %p5687_p6  ;;  %p4821_p12 = por %p4820_p11, %p4819_p10 }
 0xc6c   : > { %p4815_p9 = pneg %p4814_p8 }
 0xc6e   : > { %p4822_p13 = pnand %p4821_p12, %p4815_p9 }
 0xc70   : > { %4825 = shalt.err (!%p4822_p13)
}
 0xc71   : > { %s4882_s22 = smov 128  }
 0xc72   : > { %4618 = dma.vmem_to_hbm [thread:$0]  (%p5687_p6), %s4099_s16, 512, %s5723_s11, [#allocation4], %s4882_s22, %s4882_s22, %s4878_s14  }
 0xc73   : > { %4849 = dma.done.wait (%p5687_p6), [#allocation4], 512  }
 0xc74   : > { %4851 = vsyncadd (%p5687_p6), [#allocation4], 4294966784 }
 0xc75 PF: > { %s22_s19 = sadd.s32 1, %s4862_s19   ;;  %s5733_s17 = smov %s4858_s18 }
 0xc76   : > { %p19_p0 = scmp.ge.s32.totalorder %s22_s19, 4   ;;  %s5734_s18 = smov %s5736_s21 }
 0xc78   :  { %21 = sbr.rel (!%p19_p0) target bundleno = 2 (0x2), region = 120 }
 0xc7d   :  { %4114 = vsyncpa [#allocation4], 1 }
 0xc7e   :  { %4116 = vsyncpa [#allocation4 + $0x1], 1 }

</bundles_post_ra>
